<compile_context>
chip_gen: v7x
topology: tpu7x:2x2x1
jax: 0.10.0
libtpu: 0.0.40
codegen_flags: <defaults>
</compile_context>

<pallas_src>
import functools

import jax
import jax.numpy as jnp
from jax.experimental import pallas as pl
from jax.experimental.pallas import tpu as pltpu

NEG_SLOPE = 0.01


# ----------------------------------------------------------------------------
# Kernel 1: element-wise complex multiply of rfft(x) by the global filter.
# Inputs/outputs flattened to (B, Hf, Wf*C) for lane-dense blocks.
# ----------------------------------------------------------------------------
def _gf_mul_kernel(xr_ref, xi_ref, wr_ref, wi_ref, or_ref, oi_ref):
    xr = xr_ref[...]
    xi = xi_ref[...]
    wr = wr_ref[...]
    wi = wi_ref[...]
    or_ref[...] = xr * wr - xi * wi
    oi_ref[...] = xr * wi + xi * wr


def gf_complex_mul(xr, xi, wr, wi):
    # xr, xi: (B, Hf, N) float32 ; wr, wi: (1, Hf, N) float32, N = Wf * C
    B, Hf, N = xr.shape
    x_spec = pl.BlockSpec((1, Hf, N), lambda b: (b, 0, 0))
    w_spec = pl.BlockSpec((1, Hf, N), lambda b: (0, 0, 0))
    return pl.pallas_call(
        _gf_mul_kernel,
        grid=(B,),
        in_specs=[x_spec, x_spec, w_spec, w_spec],
        out_specs=[x_spec, x_spec],
        out_shape=[jax.ShapeDtypeStruct(xr.shape, jnp.float32)] * 2,
        compiler_params=pltpu.CompilerParams(dimension_semantics=("parallel",)),
    )(xr, xi, wr, wi)


# ----------------------------------------------------------------------------
# Kernel 2 (fused): conv3x3+bias+LReLU -> conv3x3+bias+LReLU + 1x1 residual.
# All convs are MXU matmuls; the intermediate stays on-chip.
# ----------------------------------------------------------------------------
def _fused_conv_kernel(xp_ref, x0_ref, w1_ref, b1_ref, w2_ref, b2_ref,
                       wr_ref, br_ref, o_ref, *, H, W, He, We):
    # xp_ref: (1, He+2, We+2, Cin)  attn map padded by (2, halo) in H/W
    # x0_ref: (1, H, W, Cin0)       original block input (for the residual)
    # w1_ref: (9, Cin, Cout)  w2_ref: (9, Cout, Cout)  wr_ref: (Cin0, Cout)
    # b*_ref: (1, Cout)             o_ref: (1, H, W, Cout)
    Cin = xp_ref.shape[3]
    Cin0 = x0_ref.shape[3]
    Cout = o_ref.shape[3]

    def lrelu(z):
        return jnp.where(z >= 0, z, NEG_SLOPE * z)

    # ---- conv1 on the extended (He, We) grid: 9 per-tap MXU matmuls --------
    # Computing conv1 on the extended grid lets its (masked) border ring play
    # the role of conv2's zero padding, so y1 never leaves VMEM/vregs.
    xe = xp_ref[0]                                    # (He+2, We+2, Cin)
    w1 = w1_ref[...]                                  # (9, Cin, Cout)
    acc1 = jnp.zeros((He * We, Cout), jnp.float32)
    for dh in range(3):
        for dw in range(3):
            patch = xe[dh:dh + He, dw:dw + We, :].reshape(He * We, Cin)
            acc1 = acc1 + jnp.dot(patch, w1[dh * 3 + dw],
                                  preferred_element_type=jnp.float32)
    y1 = lrelu(acc1 + b1_ref[...]).reshape(He, We, Cout)

    # Zero everything outside the true H x W image so conv2 sees exactly the
    # zero-padded y1 that PyTorch's padding=1 would produce.
    hh = jax.lax.broadcasted_iota(jnp.int32, (He, We, 1), 0)
    ww = jax.lax.broadcasted_iota(jnp.int32, (He, We, 1), 1)
    interior = (hh >= 1) & (hh <= H) & (ww >= 1) & (ww <= W)
    y1 = jnp.where(interior, y1, 0.0)

    # ---- conv2 (+bias, LeakyReLU) on the H x W grid: 9 MXU matmuls ---------
    w2 = w2_ref[...]                                  # (9, Cout, Cout)
    acc2 = jnp.zeros((H * W, Cout), jnp.float32)
    for dh in range(3):
        for dw in range(3):
            patch = y1[dh:dh + H, dw:dw + W, :].reshape(H * W, Cout)
            acc2 = acc2 + jnp.dot(patch, w2[dh * 3 + dw],
                                  preferred_element_type=jnp.float32)
    y2 = lrelu(acc2 + b2_ref[...])                    # (H*W, Cout)

    # ---- residual 1x1 conv + bias: a single MXU matmul ---------------------
    res = jnp.dot(x0_ref[0].reshape(H * W, Cin0), wr_ref[...],
                  preferred_element_type=jnp.float32) + br_ref[...]

    # TODO(synk): with production Cout >= 128 this store is lane-dense; for
    # tiny Cout a (H, W*Cout) output layout would avoid masked stores.
    o_ref[0] = (y2 + res).reshape(H, W, Cout)


def fused_convs(attn, x0, w1_taps, b1, w2_taps, b2, wr_io, br):
    # attn: (B, H, W, Cin)  x0: (B, H, W, Cin0)
    # w1_taps: (9, Cin, Cout)  w2_taps: (9, Cout, Cout)  wr_io: (Cin0, Cout)
    B, H, W, Cin = attn.shape
    Cin0 = x0.shape[-1]
    Cout = w1_taps.shape[-1]
    # TODO(synk): W is assumed a multiple of 8 so all in-kernel reshapes are
    # pure layout reinterpretations; general W would need a small W pad.
    assert W % 8 == 0

    # Extended conv1 grid: height H+2; width rounded up (>= W+2) to a multiple
    # of 8 so (He, We, C) <-> (He*We, C) reshapes stay layout no-ops.
    pr_w = (-W) % 8
    if pr_w < 2:
        pr_w += 8
    He, We = H + 2, W + pr_w
    Hp, Wp = He + 2, We + 2
    xp = jnp.pad(attn, ((0, 0), (2, 2), (2, pr_w), (0, 0)))

    kernel = functools.partial(_fused_conv_kernel, H=H, W=W, He=He, We=We)
    # TODO(synk): at production spatial sizes add a row-tiled grid axis (with a
    # halo) so double-buffered blocks fit v7x's 64 MiB VMEM.
    return pl.pallas_call(
        kernel,
        grid=(B,),
        in_specs=[
            pl.BlockSpec((1, Hp, Wp, Cin), lambda i: (i, 0, 0, 0)),
            pl.BlockSpec((1, H, W, Cin0), lambda i: (i, 0, 0, 0)),
            pl.BlockSpec((9, Cin, Cout), lambda i: (0, 0, 0)),
            pl.BlockSpec((1, Cout), lambda i: (0, 0)),
            pl.BlockSpec((9, Cout, Cout), lambda i: (0, 0, 0)),
            pl.BlockSpec((1, Cout), lambda i: (0, 0)),
            pl.BlockSpec((Cin0, Cout), lambda i: (0, 0)),
            pl.BlockSpec((1, Cout), lambda i: (0, 0)),
        ],
        out_specs=pl.BlockSpec((1, H, W, Cout), lambda i: (i, 0, 0, 0)),
        out_shape=jax.ShapeDtypeStruct((B, H, W, Cout), jnp.float32),
        compiler_params=pltpu.CompilerParams(dimension_semantics=("parallel",)),
    )(xp, x0, w1_taps, b1.reshape(1, Cout), w2_taps, b2.reshape(1, Cout),
      wr_io, br.reshape(1, Cout))


# ----------------------------------------------------------------------------
# GlobalFilter + conv_block_gf forward
# ----------------------------------------------------------------------------
def global_filter(x_nchw, complex_weight):
    B, C, a, b = x_nchw.shape
    x = jnp.transpose(x_nchw, (0, 2, 3, 1)).astype(jnp.float32)      # (B, a, b, C)
    xf = jnp.fft.rfft2(x, axes=(1, 2), norm="ortho")                  # (B, a, b//2+1, C)
    h, wf = complex_weight.shape[0], complex_weight.shape[1]
    # TODO(synk): bilinear-interpolation branch (rfft dims != (h, w)) not
    # implemented; the module is constructed with h == a, w == b//2 + 1.
    assert xf.shape[1] == h and xf.shape[2] == wf
    xr = jnp.real(xf).astype(jnp.float32).reshape(B, h, wf * C)
    xi = jnp.imag(xf).astype(jnp.float32).reshape(B, h, wf * C)
    wr = complex_weight[..., 0].reshape(1, h, wf * C)
    wi = complex_weight[..., 1].reshape(1, h, wf * C)
    yr, yi = gf_complex_mul(xr, xi, wr, wi)
    yf = jax.lax.complex(yr, yi).reshape(B, h, wf, C)
    y = jnp.fft.irfft2(yf, s=(a, b), axes=(1, 2), norm="ortho")       # (B, a, b, C)
    return y                                                          # NHWC


def conv_block_gf_forward(x_nchw, params):
    attn_nhwc = global_filter(x_nchw, params["complex_weight"])
    x_nhwc = jnp.transpose(x_nchw, (0, 2, 3, 1)).astype(jnp.float32)
    y = fused_convs(attn_nhwc, x_nhwc,
                    params["w1_taps"], params["b1"],
                    params["w2_taps"], params["b2"],
                    params["wr_io"], params["br"])
    return jnp.transpose(y, (0, 3, 1, 2))                             # back to NCHW


# ----------------------------------------------------------------------------
# Pure-JAX reference (for verification only)
# ----------------------------------------------------------------------------
def _ref_forward(x_nchw, params):
    B, C, a, b = x_nchw.shape
    x = jnp.transpose(x_nchw, (0, 2, 3, 1)).astype(jnp.float32)
    xf = jnp.fft.rfft2(x, axes=(1, 2), norm="ortho")
    w = params["complex_weight"]
    wc = jax.lax.complex(w[..., 0], w[..., 1])[None]
    y = jnp.fft.irfft2(xf * wc, s=(a, b), axes=(1, 2), norm="ortho")
    attn = jnp.transpose(y, (0, 3, 1, 2))                             # NCHW

    def conv(z, w_oihw, bias, pad):
        out = jax.lax.conv_general_dilated(
            z, w_oihw, (1, 1), [(pad, pad), (pad, pad)],
            dimension_numbers=("NCHW", "OIHW", "NCHW"))
        return out + bias[None, :, None, None]

    def lrelu(z):
        return jnp.where(z >= 0, z, NEG_SLOPE * z)

    c = lrelu(conv(attn, params["w1_oihw"], params["b1"], 1))
    c = lrelu(conv(c, params["w2_oihw"], params["b2"], 1))
    r = conv(x_nchw.astype(jnp.float32), params["wr_oihw"], params["br"], 0)
    return c + r


# ----------------------------------------------------------------------------
if __name__ == "__main__":
    B, IN_CH, OUT_CH, H, W = 2, 4, 8, 16, 16
    WF = W // 2 + 1            # rfft width -> GlobalFilter(h=H, w=WF): no interp path

    key = jax.random.PRNGKey(0)
    ks = jax.random.split(key, 8)

    complex_weight = jax.random.normal(ks[0], (H, WF, IN_CH, 2), jnp.float32) * 0.02
    w1_oihw = jax.random.normal(ks[1], (OUT_CH, IN_CH, 3, 3), jnp.float32) * 0.1
    b1 = jax.random.normal(ks[2], (OUT_CH,), jnp.float32) * 0.1
    w2_oihw = jax.random.normal(ks[3], (OUT_CH, OUT_CH, 3, 3), jnp.float32) * 0.1
    b2 = jax.random.normal(ks[4], (OUT_CH,), jnp.float32) * 0.1
    wr_oihw = jax.random.normal(ks[5], (OUT_CH, IN_CH, 1, 1), jnp.float32) * 0.1
    br = jax.random.normal(ks[6], (OUT_CH,), jnp.float32) * 0.1

    params = dict(
        complex_weight=complex_weight,
        w1_oihw=w1_oihw, b1=b1,
        w2_oihw=w2_oihw, b2=b2,
        wr_oihw=wr_oihw, br=br,
        # kernel-layout weights: per-tap (9, Cin, Cout) matrices and IO 1x1
        w1_taps=jnp.transpose(w1_oihw, (2, 3, 1, 0)).reshape(9, IN_CH, OUT_CH),
        w2_taps=jnp.transpose(w2_oihw, (2, 3, 1, 0)).reshape(9, OUT_CH, OUT_CH),
        wr_io=jnp.transpose(wr_oihw[:, :, 0, 0], (1, 0)),
    )

    x = jax.random.normal(ks[7], (B, IN_CH, H, W), jnp.float32)

    out = jax.jit(conv_block_gf_forward)(x, params)
    out = jax.block_until_ready(out)
    assert out.shape == (B, OUT_CH, H, W)

    ref = _ref_forward(x, params)
    max_err = float(jnp.max(jnp.abs(out - ref)))
    assert max_err < 1e-2, f"mismatch vs reference: {max_err}"

    print("KERNEL_OK")
</pallas_src>

<mosaic_0001>
module attributes {stable_mosaic.version = 11 : i64} {
  func.func @_gf_mul_kernel(%arg0: i32, %arg1: memref<1x16x36xf32, #tpu.memory_space<vmem>>, %arg2: memref<1x16x36xf32, #tpu.memory_space<vmem>>, %arg3: memref<1x16x36xf32, #tpu.memory_space<vmem>>, %arg4: memref<1x16x36xf32, #tpu.memory_space<vmem>>, %arg5: memref<1x16x36xf32, #tpu.memory_space<vmem>>, %arg6: memref<1x16x36xf32, #tpu.memory_space<vmem>>) attributes {dimension_semantics = [#tpu.dimension_semantics<parallel>], iteration_bounds = array<i64: 2>, scalar_prefetch = 0 : i64, scratch_operands = 0 : i64, tpu.core_type = #tpu.core_type<tc>, window_params = [{transform_indices = @transform_0, window_bounds = array<i64: 1, 16, 36>}, {transform_indices = @transform_1, window_bounds = array<i64: 1, 16, 36>}, {pipeline_mode = #tpu.pipeline_mode<synchronous>, transform_indices = @transform_2, window_bounds = array<i64: 1, 16, 36>}, {pipeline_mode = #tpu.pipeline_mode<synchronous>, transform_indices = @transform_3, window_bounds = array<i64: 1, 16, 36>}, {transform_indices = @transform_4, window_bounds = array<i64: 1, 16, 36>}, {transform_indices = @transform_5, window_bounds = array<i64: 1, 16, 36>}]} {
    %c0 = arith.constant 0 : index
    %c0_0 = arith.constant 0 : index
    %c0_1 = arith.constant 0 : index
    %0 = vector.load %arg1[%c0, %c0_0, %c0_1] : memref<1x16x36xf32, #tpu.memory_space<vmem>>, vector<1x16x36xf32>
    %c0_2 = arith.constant 0 : index
    %c0_3 = arith.constant 0 : index
    %c0_4 = arith.constant 0 : index
    %1 = vector.load %arg2[%c0_2, %c0_3, %c0_4] : memref<1x16x36xf32, #tpu.memory_space<vmem>>, vector<1x16x36xf32>
    %c0_5 = arith.constant 0 : index
    %c0_6 = arith.constant 0 : index
    %c0_7 = arith.constant 0 : index
    %2 = vector.load %arg3[%c0_5, %c0_6, %c0_7] : memref<1x16x36xf32, #tpu.memory_space<vmem>>, vector<1x16x36xf32>
    %c0_8 = arith.constant 0 : index
    %c0_9 = arith.constant 0 : index
    %c0_10 = arith.constant 0 : index
    %3 = vector.load %arg4[%c0_8, %c0_9, %c0_10] : memref<1x16x36xf32, #tpu.memory_space<vmem>>, vector<1x16x36xf32>
    %4 = arith.mulf %0, %2 : vector<1x16x36xf32>
    %5 = arith.mulf %1, %3 : vector<1x16x36xf32>
    %6 = arith.subf %4, %5 : vector<1x16x36xf32>
    %c0_11 = arith.constant 0 : index
    %c0_12 = arith.constant 0 : index
    %c0_13 = arith.constant 0 : index
    %7 = vector.load %arg5[%c0_11, %c0_12, %c0_13] : memref<1x16x36xf32, #tpu.memory_space<vmem>>, vector<1x16x36xf32>
    tpu.vector_store %arg5[%c0_11, %c0_12, %c0_13], %6 {strides = array<i32>} : memref<1x16x36xf32, #tpu.memory_space<vmem>>, vector<1x16x36xf32>,
    %8 = arith.mulf %0, %3 : vector<1x16x36xf32>
    %9 = arith.mulf %1, %2 : vector<1x16x36xf32>
    %10 = arith.addf %8, %9 : vector<1x16x36xf32>
    %c0_14 = arith.constant 0 : index
    %c0_15 = arith.constant 0 : index
    %c0_16 = arith.constant 0 : index
    %11 = vector.load %arg6[%c0_14, %c0_15, %c0_16] : memref<1x16x36xf32, #tpu.memory_space<vmem>>, vector<1x16x36xf32>
    tpu.vector_store %arg6[%c0_14, %c0_15, %c0_16], %10 {strides = array<i32>} : memref<1x16x36xf32, #tpu.memory_space<vmem>>, vector<1x16x36xf32>,
    return
  }
  func.func @transform_0(%arg0: i32) -> (i32, i32, i32) {
    %c0_i32 = arith.constant 0 : i32
    %c0_i32_0 = arith.constant 0 : i32
    %c0_i32_1 = arith.constant 0 : i32
    return %arg0, %c0_i32, %c0_i32_0 : i32, i32, i32
  }
  func.func @transform_1(%arg0: i32) -> (i32, i32, i32) {
    %c0_i32 = arith.constant 0 : i32
    %c0_i32_0 = arith.constant 0 : i32
    %c0_i32_1 = arith.constant 0 : i32
    return %arg0, %c0_i32, %c0_i32_0 : i32, i32, i32
  }
  func.func @transform_2(%arg0: i32) -> (i32, i32, i32) {
    %c0_i32 = arith.constant 0 : i32
    %c0_i32_0 = arith.constant 0 : i32
    %c0_i32_1 = arith.constant 0 : i32
    %c0_i32_2 = arith.constant 0 : i32
    return %c0_i32, %c0_i32_0, %c0_i32_1 : i32, i32, i32
  }
  func.func @transform_3(%arg0: i32) -> (i32, i32, i32) {
    %c0_i32 = arith.constant 0 : i32
    %c0_i32_0 = arith.constant 0 : i32
    %c0_i32_1 = arith.constant 0 : i32
    %c0_i32_2 = arith.constant 0 : i32
    return %c0_i32, %c0_i32_0, %c0_i32_1 : i32, i32, i32
  }
  func.func @transform_4(%arg0: i32) -> (i32, i32, i32) {
    %c0_i32 = arith.constant 0 : i32
    %c0_i32_0 = arith.constant 0 : i32
    %c0_i32_1 = arith.constant 0 : i32
    return %arg0, %c0_i32, %c0_i32_0 : i32, i32, i32
  }
  func.func @transform_5(%arg0: i32) -> (i32, i32, i32) {
    %c0_i32 = arith.constant 0 : i32
    %c0_i32_0 = arith.constant 0 : i32
    %c0_i32_1 = arith.constant 0 : i32
    return %arg0, %c0_i32, %c0_i32_0 : i32, i32, i32
  }
}

module attributes {stable_mosaic.version = 11 : i64} {
  func.func @_fused_conv_kernel(%arg0: i32, %arg1: memref<1x20x26x4xf32, #tpu.memory_space<vmem>>, %arg2: memref<1x16x16x4xf32, #tpu.memory_space<vmem>>, %arg3: memref<9x4x8xf32, #tpu.memory_space<vmem>>, %arg4: memref<1x8xf32, #tpu.memory_space<vmem>>, %arg5: memref<9x8x8xf32, #tpu.memory_space<vmem>>, %arg6: memref<1x8xf32, #tpu.memory_space<vmem>>, %arg7: memref<4x8xf32, #tpu.memory_space<vmem>>, %arg8: memref<1x8xf32, #tpu.memory_space<vmem>>, %arg9: memref<1x16x16x8xf32, #tpu.memory_space<vmem>>) attributes {dimension_semantics = [#tpu.dimension_semantics<parallel>], iteration_bounds = array<i64: 2>, scalar_prefetch = 0 : i64, scratch_operands = 0 : i64, tpu.core_type = #tpu.core_type<tc>, window_params = [{transform_indices = @transform_0, window_bounds = array<i64: 1, 20, 26, 4>}, {transform_indices = @transform_1, window_bounds = array<i64: 1, 16, 16, 4>}, {pipeline_mode = #tpu.pipeline_mode<synchronous>, transform_indices = @transform_2, window_bounds = array<i64: 9, 4, 8>}, {pipeline_mode = #tpu.pipeline_mode<synchronous>, transform_indices = @transform_3, window_bounds = array<i64: 1, 8>}, {pipeline_mode = #tpu.pipeline_mode<synchronous>, transform_indices = @transform_4, window_bounds = array<i64: 9, 8, 8>}, {pipeline_mode = #tpu.pipeline_mode<synchronous>, transform_indices = @transform_5, window_bounds = array<i64: 1, 8>}, {pipeline_mode = #tpu.pipeline_mode<synchronous>, transform_indices = @transform_6, window_bounds = array<i64: 4, 8>}, {pipeline_mode = #tpu.pipeline_mode<synchronous>, transform_indices = @transform_7, window_bounds = array<i64: 1, 8>}, {transform_indices = @transform_8, window_bounds = array<i64: 1, 16, 16, 8>}]} {
    %c0 = arith.constant 0 : index
    %c0_0 = arith.constant 0 : index
    %c0_1 = arith.constant 0 : index
    %c0_2 = arith.constant 0 : index
    %0 = vector.load %arg1[%c0, %c0_0, %c0_1, %c0_2] : memref<1x20x26x4xf32, #tpu.memory_space<vmem>>, vector<1x20x26x4xf32>
    %1 = vector.shape_cast %0 : vector<1x20x26x4xf32> to vector<20x26x4xf32>
    %c0_3 = arith.constant 0 : index
    %c0_4 = arith.constant 0 : index
    %c0_5 = arith.constant 0 : index
    %2 = vector.load %arg3[%c0_3, %c0_4, %c0_5] : memref<9x4x8xf32, #tpu.memory_space<vmem>>, vector<9x4x8xf32>
    %cst = arith.constant 0.000000e+00 : f32
    %3 = vector.broadcast %cst : f32 to vector<432x8xf32>
    %4 = vector.extract_strided_slice %1 {offsets = [0, 0, 0], sizes = [18, 24, 4], strides = [1, 1, 1]} : vector<20x26x4xf32> to vector<18x24x4xf32>
    %5 = vector.shape_cast %4 : vector<18x24x4xf32> to vector<432x4xf32>
    %6 = vector.extract_strided_slice %2 {offsets = [0, 0, 0], sizes = [1, 4, 8], strides = [1, 1, 1]} : vector<9x4x8xf32> to vector<1x4x8xf32>
    %7 = vector.shape_cast %6 : vector<1x4x8xf32> to vector<4x8xf32>
    %cst_6 = arith.constant dense<0.000000e+00> : vector<432x8xf32>
    %8 = tpu.matmul %5, %7, %cst_6 {dimension_numbers = #tpu.dot_dimension_numbers<[1], [0], [0], [1], [0, 0, 1, 1], [], []>} : vector<432x4xf32>, vector<4x8xf32>, vector<432x8xf32> -> vector<432x8xf32>
    %9 = arith.addf %3, %8 : vector<432x8xf32>
    %10 = vector.extract_strided_slice %1 {offsets = [0, 1, 0], sizes = [18, 24, 4], strides = [1, 1, 1]} : vector<20x26x4xf32> to vector<18x24x4xf32>
    %11 = vector.shape_cast %10 : vector<18x24x4xf32> to vector<432x4xf32>
    %12 = vector.extract_strided_slice %2 {offsets = [1, 0, 0], sizes = [1, 4, 8], strides = [1, 1, 1]} : vector<9x4x8xf32> to vector<1x4x8xf32>
    %13 = vector.shape_cast %12 : vector<1x4x8xf32> to vector<4x8xf32>
    %cst_7 = arith.constant dense<0.000000e+00> : vector<432x8xf32>
    %14 = tpu.matmul %11, %13, %cst_7 {dimension_numbers = #tpu.dot_dimension_numbers<[1], [0], [0], [1], [0, 0, 1, 1], [], []>} : vector<432x4xf32>, vector<4x8xf32>, vector<432x8xf32> -> vector<432x8xf32>
    %15 = arith.addf %9, %14 : vector<432x8xf32>
    %16 = vector.extract_strided_slice %1 {offsets = [0, 2, 0], sizes = [18, 24, 4], strides = [1, 1, 1]} : vector<20x26x4xf32> to vector<18x24x4xf32>
    %17 = vector.shape_cast %16 : vector<18x24x4xf32> to vector<432x4xf32>
    %18 = vector.extract_strided_slice %2 {offsets = [2, 0, 0], sizes = [1, 4, 8], strides = [1, 1, 1]} : vector<9x4x8xf32> to vector<1x4x8xf32>
    %19 = vector.shape_cast %18 : vector<1x4x8xf32> to vector<4x8xf32>
    %cst_8 = arith.constant dense<0.000000e+00> : vector<432x8xf32>
    %20 = tpu.matmul %17, %19, %cst_8 {dimension_numbers = #tpu.dot_dimension_numbers<[1], [0], [0], [1], [0, 0, 1, 1], [], []>} : vector<432x4xf32>, vector<4x8xf32>, vector<432x8xf32> -> vector<432x8xf32>
    %21 = arith.addf %15, %20 : vector<432x8xf32>
    %22 = vector.extract_strided_slice %1 {offsets = [1, 0, 0], sizes = [18, 24, 4], strides = [1, 1, 1]} : vector<20x26x4xf32> to vector<18x24x4xf32>
    %23 = vector.shape_cast %22 : vector<18x24x4xf32> to vector<432x4xf32>
    %24 = vector.extract_strided_slice %2 {offsets = [3, 0, 0], sizes = [1, 4, 8], strides = [1, 1, 1]} : vector<9x4x8xf32> to vector<1x4x8xf32>
    %25 = vector.shape_cast %24 : vector<1x4x8xf32> to vector<4x8xf32>
    %cst_9 = arith.constant dense<0.000000e+00> : vector<432x8xf32>
    %26 = tpu.matmul %23, %25, %cst_9 {dimension_numbers = #tpu.dot_dimension_numbers<[1], [0], [0], [1], [0, 0, 1, 1], [], []>} : vector<432x4xf32>, vector<4x8xf32>, vector<432x8xf32> -> vector<432x8xf32>
    %27 = arith.addf %21, %26 : vector<432x8xf32>
    %28 = vector.extract_strided_slice %1 {offsets = [1, 1, 0], sizes = [18, 24, 4], strides = [1, 1, 1]} : vector<20x26x4xf32> to vector<18x24x4xf32>
    %29 = vector.shape_cast %28 : vector<18x24x4xf32> to vector<432x4xf32>
    %30 = vector.extract_strided_slice %2 {offsets = [4, 0, 0], sizes = [1, 4, 8], strides = [1, 1, 1]} : vector<9x4x8xf32> to vector<1x4x8xf32>
    %31 = vector.shape_cast %30 : vector<1x4x8xf32> to vector<4x8xf32>
    %cst_10 = arith.constant dense<0.000000e+00> : vector<432x8xf32>
    %32 = tpu.matmul %29, %31, %cst_10 {dimension_numbers = #tpu.dot_dimension_numbers<[1], [0], [0], [1], [0, 0, 1, 1], [], []>} : vector<432x4xf32>, vector<4x8xf32>, vector<432x8xf32> -> vector<432x8xf32>
    %33 = arith.addf %27, %32 : vector<432x8xf32>
    %34 = vector.extract_strided_slice %1 {offsets = [1, 2, 0], sizes = [18, 24, 4], strides = [1, 1, 1]} : vector<20x26x4xf32> to vector<18x24x4xf32>
    %35 = vector.shape_cast %34 : vector<18x24x4xf32> to vector<432x4xf32>
    %36 = vector.extract_strided_slice %2 {offsets = [5, 0, 0], sizes = [1, 4, 8], strides = [1, 1, 1]} : vector<9x4x8xf32> to vector<1x4x8xf32>
    %37 = vector.shape_cast %36 : vector<1x4x8xf32> to vector<4x8xf32>
    %cst_11 = arith.constant dense<0.000000e+00> : vector<432x8xf32>
    %38 = tpu.matmul %35, %37, %cst_11 {dimension_numbers = #tpu.dot_dimension_numbers<[1], [0], [0], [1], [0, 0, 1, 1], [], []>} : vector<432x4xf32>, vector<4x8xf32>, vector<432x8xf32> -> vector<432x8xf32>
    %39 = arith.addf %33, %38 : vector<432x8xf32>
    %40 = vector.extract_strided_slice %1 {offsets = [2, 0, 0], sizes = [18, 24, 4], strides = [1, 1, 1]} : vector<20x26x4xf32> to vector<18x24x4xf32>
    %41 = vector.shape_cast %40 : vector<18x24x4xf32> to vector<432x4xf32>
    %42 = vector.extract_strided_slice %2 {offsets = [6, 0, 0], sizes = [1, 4, 8], strides = [1, 1, 1]} : vector<9x4x8xf32> to vector<1x4x8xf32>
    %43 = vector.shape_cast %42 : vector<1x4x8xf32> to vector<4x8xf32>
    %cst_12 = arith.constant dense<0.000000e+00> : vector<432x8xf32>
    %44 = tpu.matmul %41, %43, %cst_12 {dimension_numbers = #tpu.dot_dimension_numbers<[1], [0], [0], [1], [0, 0, 1, 1], [], []>} : vector<432x4xf32>, vector<4x8xf32>, vector<432x8xf32> -> vector<432x8xf32>
    %45 = arith.addf %39, %44 : vector<432x8xf32>
    %46 = vector.extract_strided_slice %1 {offsets = [2, 1, 0], sizes = [18, 24, 4], strides = [1, 1, 1]} : vector<20x26x4xf32> to vector<18x24x4xf32>
    %47 = vector.shape_cast %46 : vector<18x24x4xf32> to vector<432x4xf32>
    %48 = vector.extract_strided_slice %2 {offsets = [7, 0, 0], sizes = [1, 4, 8], strides = [1, 1, 1]} : vector<9x4x8xf32> to vector<1x4x8xf32>
    %49 = vector.shape_cast %48 : vector<1x4x8xf32> to vector<4x8xf32>
    %cst_13 = arith.constant dense<0.000000e+00> : vector<432x8xf32>
    %50 = tpu.matmul %47, %49, %cst_13 {dimension_numbers = #tpu.dot_dimension_numbers<[1], [0], [0], [1], [0, 0, 1, 1], [], []>} : vector<432x4xf32>, vector<4x8xf32>, vector<432x8xf32> -> vector<432x8xf32>
    %51 = arith.addf %45, %50 : vector<432x8xf32>
    %52 = vector.extract_strided_slice %1 {offsets = [2, 2, 0], sizes = [18, 24, 4], strides = [1, 1, 1]} : vector<20x26x4xf32> to vector<18x24x4xf32>
    %53 = vector.shape_cast %52 : vector<18x24x4xf32> to vector<432x4xf32>
    %54 = vector.extract_strided_slice %2 {offsets = [8, 0, 0], sizes = [1, 4, 8], strides = [1, 1, 1]} : vector<9x4x8xf32> to vector<1x4x8xf32>
    %55 = vector.shape_cast %54 : vector<1x4x8xf32> to vector<4x8xf32>
    %cst_14 = arith.constant dense<0.000000e+00> : vector<432x8xf32>
    %56 = tpu.matmul %53, %55, %cst_14 {dimension_numbers = #tpu.dot_dimension_numbers<[1], [0], [0], [1], [0, 0, 1, 1], [], []>} : vector<432x4xf32>, vector<4x8xf32>, vector<432x8xf32> -> vector<432x8xf32>
    %57 = arith.addf %51, %56 : vector<432x8xf32>
    %c0_15 = arith.constant 0 : index
    %c0_16 = arith.constant 0 : index
    %58 = vector.load %arg4[%c0_15, %c0_16] : memref<1x8xf32, #tpu.memory_space<vmem>>, vector<1x8xf32>
    %59 = vector.broadcast %58 : vector<1x8xf32> to vector<432x8xf32>
    %60 = arith.addf %57, %59 : vector<432x8xf32>
    %cst_17 = arith.constant 0.000000e+00 : f32
    %61 = vector.broadcast %cst_17 : f32 to vector<432x8xf32>
    %62 = arith.cmpf oge, %60, %61 : vector<432x8xf32>
    %cst_18 = arith.constant 0.00999999977 : f32
    %63 = vector.broadcast %cst_18 : f32 to vector<432x8xf32>
    %64 = arith.mulf %63, %60 : vector<432x8xf32>
    %65 = arith.select %62, %60, %64 : vector<432x8xi1>, vector<432x8xf32>
    %66 = vector.shape_cast %65 : vector<432x8xf32> to vector<18x24x8xf32>
    %67 = tpu.iota {dimensions = array<i32: 0>} : vector<18x24x1xi32>
    %68 = tpu.iota {dimensions = array<i32: 1>} : vector<18x24x1xi32>
    %c1_i32 = arith.constant 1 : i32
    %69 = vector.broadcast %c1_i32 : i32 to vector<18x24x1xi32>
    %70 = arith.cmpi sge, %67, %69 : vector<18x24x1xi32>
    %c16_i32 = arith.constant 16 : i32
    %71 = vector.broadcast %c16_i32 : i32 to vector<18x24x1xi32>
    %72 = arith.cmpi sle, %67, %71 : vector<18x24x1xi32>
    %73 = arith.andi %70, %72 : vector<18x24x1xi1>
    %c1_i32_19 = arith.constant 1 : i32
    %74 = vector.broadcast %c1_i32_19 : i32 to vector<18x24x1xi32>
    %75 = arith.cmpi sge, %68, %74 : vector<18x24x1xi32>
    %76 = arith.andi %73, %75 : vector<18x24x1xi1>
    %c16_i32_20 = arith.constant 16 : i32
    %77 = vector.broadcast %c16_i32_20 : i32 to vector<18x24x1xi32>
    %78 = arith.cmpi sle, %68, %77 : vector<18x24x1xi32>
    %79 = arith.andi %76, %78 : vector<18x24x1xi1>
    %cst_21 = arith.constant 0.000000e+00 : f32
    %80 = vector.shape_cast %79 : vector<18x24x1xi1> to vector<18x24x1xi1>
    %81 = vector.broadcast %80 : vector<18x24x1xi1> to vector<18x24x8xi1>
    %82 = vector.broadcast %cst_21 : f32 to vector<18x24x8xf32>
    %83 = arith.select %81, %66, %82 : vector<18x24x8xi1>, vector<18x24x8xf32>
    %c0_22 = arith.constant 0 : index
    %c0_23 = arith.constant 0 : index
    %c0_24 = arith.constant 0 : index
    %84 = vector.load %arg5[%c0_22, %c0_23, %c0_24] : memref<9x8x8xf32, #tpu.memory_space<vmem>>, vector<9x8x8xf32>
    %cst_25 = arith.constant 0.000000e+00 : f32
    %85 = vector.broadcast %cst_25 : f32 to vector<256x8xf32>
    %86 = vector.extract_strided_slice %83 {offsets = [0, 0, 0], sizes = [16, 16, 8], strides = [1, 1, 1]} : vector<18x24x8xf32> to vector<16x16x8xf32>
    %87 = vector.shape_cast %86 : vector<16x16x8xf32> to vector<256x8xf32>
    %88 = vector.extract_strided_slice %84 {offsets = [0, 0, 0], sizes = [1, 8, 8], strides = [1, 1, 1]} : vector<9x8x8xf32> to vector<1x8x8xf32>
    %89 = vector.shape_cast %88 : vector<1x8x8xf32> to vector<8x8xf32>
    %cst_26 = arith.constant dense<0.000000e+00> : vector<256x8xf32>
    %90 = tpu.matmul %87, %89, %cst_26 {dimension_numbers = #tpu.dot_dimension_numbers<[1], [0], [0], [1], [0, 0, 1, 1], [], []>} : vector<256x8xf32>, vector<8x8xf32>, vector<256x8xf32> -> vector<256x8xf32>
    %91 = arith.addf %85, %90 : vector<256x8xf32>
    %92 = vector.extract_strided_slice %83 {offsets = [0, 1, 0], sizes = [16, 16, 8], strides = [1, 1, 1]} : vector<18x24x8xf32> to vector<16x16x8xf32>
    %93 = vector.shape_cast %92 : vector<16x16x8xf32> to vector<256x8xf32>
    %94 = vector.extract_strided_slice %84 {offsets = [1, 0, 0], sizes = [1, 8, 8], strides = [1, 1, 1]} : vector<9x8x8xf32> to vector<1x8x8xf32>
    %95 = vector.shape_cast %94 : vector<1x8x8xf32> to vector<8x8xf32>
    %cst_27 = arith.constant dense<0.000000e+00> : vector<256x8xf32>
    %96 = tpu.matmul %93, %95, %cst_27 {dimension_numbers = #tpu.dot_dimension_numbers<[1], [0], [0], [1], [0, 0, 1, 1], [], []>} : vector<256x8xf32>, vector<8x8xf32>, vector<256x8xf32> -> vector<256x8xf32>
    %97 = arith.addf %91, %96 : vector<256x8xf32>
    %98 = vector.extract_strided_slice %83 {offsets = [0, 2, 0], sizes = [16, 16, 8], strides = [1, 1, 1]} : vector<18x24x8xf32> to vector<16x16x8xf32>
    %99 = vector.shape_cast %98 : vector<16x16x8xf32> to vector<256x8xf32>
    %100 = vector.extract_strided_slice %84 {offsets = [2, 0, 0], sizes = [1, 8, 8], strides = [1, 1, 1]} : vector<9x8x8xf32> to vector<1x8x8xf32>
    %101 = vector.shape_cast %100 : vector<1x8x8xf32> to vector<8x8xf32>
    %cst_28 = arith.constant dense<0.000000e+00> : vector<256x8xf32>
    %102 = tpu.matmul %99, %101, %cst_28 {dimension_numbers = #tpu.dot_dimension_numbers<[1], [0], [0], [1], [0, 0, 1, 1], [], []>} : vector<256x8xf32>, vector<8x8xf32>, vector<256x8xf32> -> vector<256x8xf32>
    %103 = arith.addf %97, %102 : vector<256x8xf32>
    %104 = vector.extract_strided_slice %83 {offsets = [1, 0, 0], sizes = [16, 16, 8], strides = [1, 1, 1]} : vector<18x24x8xf32> to vector<16x16x8xf32>
    %105 = vector.shape_cast %104 : vector<16x16x8xf32> to vector<256x8xf32>
    %106 = vector.extract_strided_slice %84 {offsets = [3, 0, 0], sizes = [1, 8, 8], strides = [1, 1, 1]} : vector<9x8x8xf32> to vector<1x8x8xf32>
    %107 = vector.shape_cast %106 : vector<1x8x8xf32> to vector<8x8xf32>
    %cst_29 = arith.constant dense<0.000000e+00> : vector<256x8xf32>
    %108 = tpu.matmul %105, %107, %cst_29 {dimension_numbers = #tpu.dot_dimension_numbers<[1], [0], [0], [1], [0, 0, 1, 1], [], []>} : vector<256x8xf32>, vector<8x8xf32>, vector<256x8xf32> -> vector<256x8xf32>
    %109 = arith.addf %103, %108 : vector<256x8xf32>
    %110 = vector.extract_strided_slice %83 {offsets = [1, 1, 0], sizes = [16, 16, 8], strides = [1, 1, 1]} : vector<18x24x8xf32> to vector<16x16x8xf32>
    %111 = vector.shape_cast %110 : vector<16x16x8xf32> to vector<256x8xf32>
    %112 = vector.extract_strided_slice %84 {offsets = [4, 0, 0], sizes = [1, 8, 8], strides = [1, 1, 1]} : vector<9x8x8xf32> to vector<1x8x8xf32>
    %113 = vector.shape_cast %112 : vector<1x8x8xf32> to vector<8x8xf32>
    %cst_30 = arith.constant dense<0.000000e+00> : vector<256x8xf32>
    %114 = tpu.matmul %111, %113, %cst_30 {dimension_numbers = #tpu.dot_dimension_numbers<[1], [0], [0], [1], [0, 0, 1, 1], [], []>} : vector<256x8xf32>, vector<8x8xf32>, vector<256x8xf32> -> vector<256x8xf32>
    %115 = arith.addf %109, %114 : vector<256x8xf32>
    %116 = vector.extract_strided_slice %83 {offsets = [1, 2, 0], sizes = [16, 16, 8], strides = [1, 1, 1]} : vector<18x24x8xf32> to vector<16x16x8xf32>
    %117 = vector.shape_cast %116 : vector<16x16x8xf32> to vector<256x8xf32>
    %118 = vector.extract_strided_slice %84 {offsets = [5, 0, 0], sizes = [1, 8, 8], strides = [1, 1, 1]} : vector<9x8x8xf32> to vector<1x8x8xf32>
    %119 = vector.shape_cast %118 : vector<1x8x8xf32> to vector<8x8xf32>
    %cst_31 = arith.constant dense<0.000000e+00> : vector<256x8xf32>
    %120 = tpu.matmul %117, %119, %cst_31 {dimension_numbers = #tpu.dot_dimension_numbers<[1], [0], [0], [1], [0, 0, 1, 1], [], []>} : vector<256x8xf32>, vector<8x8xf32>, vector<256x8xf32> -> vector<256x8xf32>
    %121 = arith.addf %115, %120 : vector<256x8xf32>
    %122 = vector.extract_strided_slice %83 {offsets = [2, 0, 0], sizes = [16, 16, 8], strides = [1, 1, 1]} : vector<18x24x8xf32> to vector<16x16x8xf32>
    %123 = vector.shape_cast %122 : vector<16x16x8xf32> to vector<256x8xf32>
    %124 = vector.extract_strided_slice %84 {offsets = [6, 0, 0], sizes = [1, 8, 8], strides = [1, 1, 1]} : vector<9x8x8xf32> to vector<1x8x8xf32>
    %125 = vector.shape_cast %124 : vector<1x8x8xf32> to vector<8x8xf32>
    %cst_32 = arith.constant dense<0.000000e+00> : vector<256x8xf32>
    %126 = tpu.matmul %123, %125, %cst_32 {dimension_numbers = #tpu.dot_dimension_numbers<[1], [0], [0], [1], [0, 0, 1, 1], [], []>} : vector<256x8xf32>, vector<8x8xf32>, vector<256x8xf32> -> vector<256x8xf32>
    %127 = arith.addf %121, %126 : vector<256x8xf32>
    %128 = vector.extract_strided_slice %83 {offsets = [2, 1, 0], sizes = [16, 16, 8], strides = [1, 1, 1]} : vector<18x24x8xf32> to vector<16x16x8xf32>
    %129 = vector.shape_cast %128 : vector<16x16x8xf32> to vector<256x8xf32>
    %130 = vector.extract_strided_slice %84 {offsets = [7, 0, 0], sizes = [1, 8, 8], strides = [1, 1, 1]} : vector<9x8x8xf32> to vector<1x8x8xf32>
    %131 = vector.shape_cast %130 : vector<1x8x8xf32> to vector<8x8xf32>
    %cst_33 = arith.constant dense<0.000000e+00> : vector<256x8xf32>
    %132 = tpu.matmul %129, %131, %cst_33 {dimension_numbers = #tpu.dot_dimension_numbers<[1], [0], [0], [1], [0, 0, 1, 1], [], []>} : vector<256x8xf32>, vector<8x8xf32>, vector<256x8xf32> -> vector<256x8xf32>
    %133 = arith.addf %127, %132 : vector<256x8xf32>
    %134 = vector.extract_strided_slice %83 {offsets = [2, 2, 0], sizes = [16, 16, 8], strides = [1, 1, 1]} : vector<18x24x8xf32> to vector<16x16x8xf32>
    %135 = vector.shape_cast %134 : vector<16x16x8xf32> to vector<256x8xf32>
    %136 = vector.extract_strided_slice %84 {offsets = [8, 0, 0], sizes = [1, 8, 8], strides = [1, 1, 1]} : vector<9x8x8xf32> to vector<1x8x8xf32>
    %137 = vector.shape_cast %136 : vector<1x8x8xf32> to vector<8x8xf32>
    %cst_34 = arith.constant dense<0.000000e+00> : vector<256x8xf32>
    %138 = tpu.matmul %135, %137, %cst_34 {dimension_numbers = #tpu.dot_dimension_numbers<[1], [0], [0], [1], [0, 0, 1, 1], [], []>} : vector<256x8xf32>, vector<8x8xf32>, vector<256x8xf32> -> vector<256x8xf32>
    %139 = arith.addf %133, %138 : vector<256x8xf32>
    %c0_35 = arith.constant 0 : index
    %c0_36 = arith.constant 0 : index
    %140 = vector.load %arg6[%c0_35, %c0_36] : memref<1x8xf32, #tpu.memory_space<vmem>>, vector<1x8xf32>
    %141 = vector.broadcast %140 : vector<1x8xf32> to vector<256x8xf32>
    %142 = arith.addf %139, %141 : vector<256x8xf32>
    %cst_37 = arith.constant 0.000000e+00 : f32
    %143 = vector.broadcast %cst_37 : f32 to vector<256x8xf32>
    %144 = arith.cmpf oge, %142, %143 : vector<256x8xf32>
    %cst_38 = arith.constant 0.00999999977 : f32
    %145 = vector.broadcast %cst_38 : f32 to vector<256x8xf32>
    %146 = arith.mulf %145, %142 : vector<256x8xf32>
    %147 = arith.select %144, %142, %146 : vector<256x8xi1>, vector<256x8xf32>
    %c0_39 = arith.constant 0 : index
    %c0_40 = arith.constant 0 : index
    %c0_41 = arith.constant 0 : index
    %c0_42 = arith.constant 0 : index
    %148 = vector.load %arg2[%c0_39, %c0_40, %c0_41, %c0_42] : memref<1x16x16x4xf32, #tpu.memory_space<vmem>>, vector<1x16x16x4xf32>
    %149 = vector.shape_cast %148 : vector<1x16x16x4xf32> to vector<16x16x4xf32>
    %150 = vector.shape_cast %149 : vector<16x16x4xf32> to vector<256x4xf32>
    %c0_43 = arith.constant 0 : index
    %c0_44 = arith.constant 0 : index
    %151 = vector.load %arg7[%c0_43, %c0_44] : memref<4x8xf32, #tpu.memory_space<vmem>>, vector<4x8xf32>
    %cst_45 = arith.constant dense<0.000000e+00> : vector<256x8xf32>
    %152 = tpu.matmul %150, %151, %cst_45 {dimension_numbers = #tpu.dot_dimension_numbers<[1], [0], [0], [1], [0, 0, 1, 1], [], []>} : vector<256x4xf32>, vector<4x8xf32>, vector<256x8xf32> -> vector<256x8xf32>
    %c0_46 = arith.constant 0 : index
    %c0_47 = arith.constant 0 : index
    %153 = vector.load %arg8[%c0_46, %c0_47] : memref<1x8xf32, #tpu.memory_space<vmem>>, vector<1x8xf32>
    %154 = vector.broadcast %153 : vector<1x8xf32> to vector<256x8xf32>
    %155 = arith.addf %152, %154 : vector<256x8xf32>
    %156 = arith.addf %147, %155 : vector<256x8xf32>
    %157 = vector.shape_cast %156 : vector<256x8xf32> to vector<16x16x8xf32>
    %c0_48 = arith.constant 0 : index
    %c0_49 = arith.constant 0 : index
    %c0_50 = arith.constant 0 : index
    %c0_51 = arith.constant 0 : index
    %158 = vector.load %arg9[%c0_48, %c0_49, %c0_50, %c0_51] : memref<1x16x16x8xf32, #tpu.memory_space<vmem>>, vector<1x16x16x8xf32>
    %159 = vector.shape_cast %158 : vector<1x16x16x8xf32> to vector<16x16x8xf32>
    %160 = vector.shape_cast %157 : vector<16x16x8xf32> to vector<1x16x16x8xf32>
    tpu.vector_store %arg9[%c0_48, %c0_49, %c0_50, %c0_51], %160 {strides = array<i32>} : memref<1x16x16x8xf32, #tpu.memory_space<vmem>>, vector<1x16x16x8xf32>,
    return
  }
  func.func @transform_0(%arg0: i32) -> (i32, i32, i32, i32) {
    %c0_i32 = arith.constant 0 : i32
    %c0_i32_0 = arith.constant 0 : i32
    %c0_i32_1 = arith.constant 0 : i32
    %c0_i32_2 = arith.constant 0 : i32
    return %arg0, %c0_i32, %c0_i32_0, %c0_i32_1 : i32, i32, i32, i32
  }
  func.func @transform_1(%arg0: i32) -> (i32, i32, i32, i32) {
    %c0_i32 = arith.constant 0 : i32
    %c0_i32_0 = arith.constant 0 : i32
    %c0_i32_1 = arith.constant 0 : i32
    %c0_i32_2 = arith.constant 0 : i32
    return %arg0, %c0_i32, %c0_i32_0, %c0_i32_1 : i32, i32, i32, i32
  }
  func.func @transform_2(%arg0: i32) -> (i32, i32, i32) {
    %c0_i32 = arith.constant 0 : i32
    %c0_i32_0 = arith.constant 0 : i32
    %c0_i32_1 = arith.constant 0 : i32
    %c0_i32_2 = arith.constant 0 : i32
    return %c0_i32, %c0_i32_0, %c0_i32_1 : i32, i32, i32
  }
  func.func @transform_3(%arg0: i32) -> (i32, i32) {
    %c0_i32 = arith.constant 0 : i32
    %c0_i32_0 = arith.constant 0 : i32
    %c0_i32_1 = arith.constant 0 : i32
    return %c0_i32, %c0_i32_0 : i32, i32
  }
  func.func @transform_4(%arg0: i32) -> (i32, i32, i32) {
    %c0_i32 = arith.constant 0 : i32
    %c0_i32_0 = arith.constant 0 : i32
    %c0_i32_1 = arith.constant 0 : i32
    %c0_i32_2 = arith.constant 0 : i32
    return %c0_i32, %c0_i32_0, %c0_i32_1 : i32, i32, i32
  }
  func.func @transform_5(%arg0: i32) -> (i32, i32) {
    %c0_i32 = arith.constant 0 : i32
    %c0_i32_0 = arith.constant 0 : i32
    %c0_i32_1 = arith.constant 0 : i32
    return %c0_i32, %c0_i32_0 : i32, i32
  }
  func.func @transform_6(%arg0: i32) -> (i32, i32) {
    %c0_i32 = arith.constant 0 : i32
    %c0_i32_0 = arith.constant 0 : i32
    %c0_i32_1 = arith.constant 0 : i32
    return %c0_i32, %c0_i32_0 : i32, i32
  }
  func.func @transform_7(%arg0: i32) -> (i32, i32) {
    %c0_i32 = arith.constant 0 : i32
    %c0_i32_0 = arith.constant 0 : i32
    %c0_i32_1 = arith.constant 0 : i32
    return %c0_i32, %c0_i32_0 : i32, i32
  }
  func.func @transform_8(%arg0: i32) -> (i32, i32, i32, i32) {
    %c0_i32 = arith.constant 0 : i32
    %c0_i32_0 = arith.constant 0 : i32
    %c0_i32_1 = arith.constant 0 : i32
    %c0_i32_2 = arith.constant 0 : i32
    return %arg0, %c0_i32, %c0_i32_0, %c0_i32_1 : i32, i32, i32, i32
  }
}

</mosaic_0001>

<bundles_post_ra>
// kernel: conv_block_gf_forward.2
= control target key start
LH: loop header
LB: loop body
LE: loop exit
PB: predicated region body
PF: predicated region fallthrough
CT: control target
= control target key end

     0   :  { %s448_s18 = smov 0   ;;  %s487_s0 = inlined_call_operand.vmem [shape: f32[2,16,36], index: 0, kind: input, shape index: {}]   ;;  %s488_s1 = inlined_call_operand.vmem [shape: f32[2,16,36], index: 1, kind: input, shape index: {}]   ;;  %s489_s2 = inlined_call_operand.vmem [shape: f32[1,16,36], index: 2, kind: input, shape index: {}]   ;;  %s490_s3 = inlined_call_operand.vmem [shape: f32[1,16,36], index: 3, kind: input, shape index: {}]   ;;  %s491_s4 = inlined_call_operand.vmem [shape: f32[2,16,36], index: 4, kind: output, shape index: {0}]   ;;  %s492_s5 = inlined_call_operand.vmem [shape: f32[2,16,36], index: 5, kind: output, shape index: {1}]  }
   0x1 LB: > { %s383_s19 = sadd.s32 4294967295, %s416_s18   ;;  %p387_p0 = scmp.ge.s32.totalorder %s416_s18, 1  ;;  %s416_s18 = sphi %s448_s18, %s16_s18  }
   0x2   : > { %p200_p1 = scmp.lt.s32.totalorder %s416_s18, 3 }
   0x4   : > { %p201_p2 = pnand %p387_p0, %p200_p1 }
   0x5   : > { %p238_p3 = scmp.lt.s32.totalorder (!%p201_p2), %s383_s19, 1  ;;  %v262_v0 = vld [vmem:[%s489_s2] sm:$0xff] (!%p201_p2)  ;;  %v263_v2 = vld [vmem:[%s489_s2 + $0x8] sm:$0xff] (!%p201_p2)  ;;  %vm272_vm0 = vcmask (!%p201_p2), 293888  }
   0x6   : > { %204 = sbr.rel (%p201_p2) target bundleno = 24 (0x18), region = 36  ;;  %v264_v1 = vld [vmem:[%s490_s3] sm:$0xff] (!%p201_p2)  ;;  %v265_v3 = vld [vmem:[%s490_s3 + $0x8] sm:$0xff] (!%p201_p2) }
   0xd   : > { %s494_s19 = smov (!%p238_p3, %s383_s19), 1 }
   0xe   : > { %s398_s20 = sshll.u32 %s494_s19, 4 }
   0xf   : > { %s242_s29 = scalar_lea.vmem %s487_s0, %s398_s20  ;;  %s247_s7 = scalar_lea.vmem %s488_s1, %s398_s20 }
  0x10   : > { %v258_v4 = vld [vmem:[%s242_s29] sm:$0xff]  ;;  %v259_v6 = vld [vmem:[%s242_s29 + $0x8] sm:$0xff]  ;;  %s252_s12 = scalar_lea.vmem %s491_s4, %s398_s20  ;;  %s257_s15 = scalar_lea.vmem %s492_s5, %s398_s20 }
  0x11   : > { %v260_v5 = vld [vmem:[%s247_s7] sm:$0xff]  ;;  %v266_v7 = vmul.f32 %v262_v0, %v258_v4  ;;  %v261_v9 = vld [vmem:[%s247_s7 + $0x8] sm:$0xff]  ;;  %v267_v10 = vmul.f32 %v263_v2, %v259_v6  ;;  %v275_v11 = vmul.f32 %v264_v1, %v258_v4  ;;  %v276_v14 = vmul.f32 %v265_v3, %v259_v6 }
  0x12   : > { %v268_v8 = vmul.f32 %v264_v1, %v260_v5  ;;  %v269_v12 = vmul.f32 %v265_v3, %v261_v9  ;;  %v277_v13 = vmul.f32 %v262_v0, %v260_v5  ;;  %v278_v15 = vmul.f32 %v263_v2, %v261_v9 }
  0x14   : > { %v270_v16 = vsub.f32 %v266_v7, %v268_v8  ;;  %v271_v17 = vsub.f32 %v267_v10, %v269_v12  ;;  %v279_v18 = vadd.f32 %v277_v13, %v275_v11  ;;  %v280_v19 = vadd.f32 %v278_v15, %v276_v14 }
  0x16   : > { %273 = vst.msk [vmem:[%s252_s12] sm:$0xff] %vm272_vm0, %v270_v16  ;;  %274 = vst.msk [vmem:[%s252_s12 + $0x8] sm:$0xff] %vm272_vm0, %v271_v17 }
  0x17   : > { %281 = vst.msk [vmem:[%s257_s15] sm:$0xff] %vm272_vm0, %v279_v18  ;;  %282 = vst.msk [vmem:[%s257_s15 + $0x8] sm:$0xff] %vm272_vm0, %v280_v19 }
  0x18 PF: > { %s16_s18 = sadd.s32 1, %s416_s18  }
  0x19   : > { %p13_p4 = scmp.ge.s32.totalorder %s16_s18, 4  }
  0x1b   :  { %15 = sbr.rel (!%p13_p4) target bundleno = 1 (0x1), region = 81 }

// kernel: reverse.1
= control target key start
LH: loop header
LB: loop body
LE: loop exit
PB: predicated region body
PF: predicated region fallthrough
CT: control target
= control target key end

     0   :  { %v71_v3 = vlaneseq  ;;  %v64_v9 = vld [vmem:[#allocation0 + $0x7] ss:$-1 sm:$0xff]  ;;  %v78_v12 = vld [vmem:[#allocation0 + $0x17] ss:$-1 sm:$0xff]  ;;  %s329_s0 = inlined_call_operand.vmem [shape: f32[2,4,16,7], index: 0, kind: input, shape index: {}]   ;;  %s330_s1 = inlined_call_operand.vmem [shape: f32[2,4,16,7], index: 1, kind: output, shape index: {}]  }
   0x1   :  { %v44_v0 = vld [vmem:[%s329_s0] sm:$0xff]  ;;  %v46_v1 = vld [vmem:[%s329_s0 + $0x8] sm:$0xff]  ;;  %v48_v2 = vld [vmem:[%s329_s0 + $0x10] sm:$0xff]  ;;  %v65_v10 = vrot.slane %v64_v9, 1  ;;  %v79_v14 = vrot.slane %v78_v12, 1 }
   0x2   :  { %45 = vst [vmem:[#allocation0 + $0x8] sm:$0xff] %v44_v0  ;;  %47 = vst [vmem:[#allocation0 + $0x18] sm:$0xff] %v46_v1  ;;  %v50_v4 = vld [vmem:[%s329_s0 + $0x18] sm:$0xff]  ;;  %v52_v5 = vld [vmem:[%s329_s0 + $0x20] sm:$0xff]  ;;  %v72_v11 = vshrl.u32 %v71_v3, 7 }
   0x3   :  { %49 = vst [vmem:[#allocation0 + $0x28] sm:$0xff] %v48_v2  ;;  %v54_v6 = vld [vmem:[%s329_s0 + $0x28] sm:$0xff]  ;;  %51 = vst [vmem:[#allocation0 + $0x38] sm:$0xff] %v50_v4  ;;  %v56_v7 = vld [vmem:[%s329_s0 + $0x30] sm:$0xff] }
   0x4   :  { %53 = vst [vmem:[#allocation0 + $0x48] sm:$0xff] %v52_v5  ;;  %55 = vst [vmem:[#allocation0 + $0x58] sm:$0xff] %v54_v6  ;;  %v58_v8 = vld [vmem:[%s329_s0 + $0x38] sm:$0xff]  ;;  %v92_v13 = vld [vmem:[#allocation0 + $0x27] ss:$-1 sm:$0xff]  ;;  %vm73_vm0 = vcmp.lt.s32.totalorder %v72_v11, 7 }
   0x5   :  { %57 = vst [vmem:[#allocation0 + $0x68] sm:$0xff] %v56_v7  ;;  %59 = vst [vmem:[#allocation0 + $0x78] sm:$0xff] %v58_v8  ;;  %v93_v15 = vrot.slane %v92_v13, 1  ;;  %v106_v16 = vld [vmem:[#allocation0 + $0x37] ss:$-1 sm:$0xff] }
   0x6   :  { %66 = vst [vmem:[#allocation1] sm:$0xff] %v65_v10  ;;  %v107_v17 = vrot.slane %v106_v16, 1  ;;  %v120_v18 = vld [vmem:[#allocation0 + $0x47] ss:$-1 sm:$0xff]  ;;  %v134_v19 = vld [vmem:[#allocation0 + $0x57] ss:$-1 sm:$0xff] }
   0x7   :  { %80 = vst [vmem:[#allocation1 + $0x8] sm:$0xff] %v79_v14  ;;  %94 = vst [vmem:[#allocation1 + $0x10] sm:$0xff] %v93_v15  ;;  %v121_v20 = vrot.slane %v120_v18, 1  ;;  %v135_v21 = vrot.slane %v134_v19, 1  ;;  %v148_v22 = vld [vmem:[#allocation0 + $0x67] ss:$-1 sm:$0xff] }
   0x8   :  { %v162_v23 = vld [vmem:[#allocation0 + $0x77] ss:$-1 sm:$0xff]  ;;  %108 = vst [vmem:[#allocation1 + $0x18] sm:$0xff] %v107_v17  ;;  %v149_v24 = vrot.slane %v148_v22, 1 }
   0x9   :  { %v163_v25 = vrot.slane %v162_v23, 1  ;;  %v69_v26 = vld [vmem:[#allocation0 + $0xf] ss:$-1 sm:$0xff]  ;;  %v83_v27 = vld [vmem:[#allocation0 + $0x1f] ss:$-1 sm:$0xff]  ;;  %122 = vst [vmem:[#allocation1 + $0x20] sm:$0xff] %v121_v20 }
   0xa   :  { %v97_v28 = vld [vmem:[#allocation0 + $0x2f] ss:$-1 sm:$0xff]  ;;  %136 = vst [vmem:[#allocation1 + $0x28] sm:$0xff] %v135_v21  ;;  %v70_v29 = vrot.slane %v69_v26, 1  ;;  %v84_v30 = vrot.slane %v83_v27, 1  ;;  %150 = vst [vmem:[#allocation1 + $0x30] sm:$0xff] %v149_v24 }
   0xb   :  { %v98_v31 = vrot.slane %v97_v28, 1  ;;  %v111_v32 = vld [vmem:[#allocation0 + $0x3f] ss:$-1 sm:$0xff]  ;;  %164 = vst [vmem:[#allocation1 + $0x38] sm:$0xff] %v163_v25  ;;  %v125_v34 = vld [vmem:[#allocation0 + $0x4f] ss:$-1 sm:$0xff] }
   0xc   :  { %v112_v33 = vrot.slane %v111_v32, 1  ;;  %v139_v35 = vld [vmem:[#allocation0 + $0x5f] ss:$-1 sm:$0xff]  ;;  %74 = vst.msk [vmem:[#allocation1] sm:$0xff] %vm73_vm0, %v70_v29  ;;  %88 = vst.msk [vmem:[#allocation1 + $0x8] sm:$0xff] %vm73_vm0, %v84_v30  ;;  %v126_v36 = vrot.slane %v125_v34, 1 }
   0xd   :  { %102 = vst.msk [vmem:[#allocation1 + $0x10] sm:$0xff] %vm73_vm0, %v98_v31  ;;  %v140_v37 = vrot.slane %v139_v35, 1  ;;  %v153_v38 = vld [vmem:[#allocation0 + $0x6f] ss:$-1 sm:$0xff]  ;;  %v167_v39 = vld [vmem:[#allocation0 + $0x7f] ss:$-1 sm:$0xff] }
   0xe   :  { %116 = vst.msk [vmem:[#allocation1 + $0x18] sm:$0xff] %vm73_vm0, %v112_v33  ;;  %v154_v40 = vrot.slane %v153_v38, 1  ;;  %v168_v41 = vrot.slane %v167_v39, 1  ;;  %130 = vst.msk [vmem:[#allocation1 + $0x20] sm:$0xff] %vm73_vm0, %v126_v36 }
   0xf   :  { %144 = vst.msk [vmem:[#allocation1 + $0x28] sm:$0xff] %vm73_vm0, %v140_v37 }
  0x10   :  { %158 = vst.msk [vmem:[#allocation1 + $0x30] sm:$0xff] %vm73_vm0, %v154_v40  ;;  %172 = vst.msk [vmem:[#allocation1 + $0x38] sm:$0xff] %vm73_vm0, %v168_v41 }
  0x13   :  { %v214_v42 = vld [vmem:[#allocation1] sm:$0xff]  ;;  %v216_v43 = vld [vmem:[#allocation1 + $0x8] sm:$0xff] }
  0x14   :  { %v218_v44 = vld [vmem:[#allocation1 + $0x10] sm:$0xff]  ;;  %215 = vst [vmem:[%s330_s1] sm:$0xff] %v214_v42  ;;  %217 = vst [vmem:[%s330_s1 + $0x8] sm:$0xff] %v216_v43 }
  0x15   :  { %219 = vst [vmem:[%s330_s1 + $0x10] sm:$0xff] %v218_v44  ;;  %v220_v45 = vld [vmem:[#allocation1 + $0x18] sm:$0xff]  ;;  %v222_v46 = vld [vmem:[#allocation1 + $0x20] sm:$0xff] }
  0x16   :  { %221 = vst [vmem:[%s330_s1 + $0x18] sm:$0xff] %v220_v45  ;;  %v224_v47 = vld [vmem:[#allocation1 + $0x28] sm:$0xff]  ;;  %223 = vst [vmem:[%s330_s1 + $0x20] sm:$0xff] %v222_v46 }
  0x17   :  { %225 = vst [vmem:[%s330_s1 + $0x28] sm:$0xff] %v224_v47  ;;  %v226_v48 = vld [vmem:[#allocation1 + $0x30] sm:$0xff]  ;;  %v228_v49 = vld [vmem:[#allocation1 + $0x38] sm:$0xff] }
  0x18   :  { %227 = vst [vmem:[%s330_s1 + $0x30] sm:$0xff] %v226_v48  ;;  %229 = vst [vmem:[%s330_s1 + $0x38] sm:$0xff] %v228_v49 }

// kernel: conv_block_gf_forward.3
= control target key start
LH: loop header
LB: loop body
LE: loop exit
PB: predicated region body
PF: predicated region fallthrough
CT: control target
= control target key end

     0   :  { %s11845_s27 = smov 0   ;;  %s15231_s0 = inlined_call_operand.vmem [shape: f32[2,20,26,4], index: 0, kind: input, shape index: {}]   ;;  %s15232_s1 = inlined_call_operand.vmem [shape: f32[2,16,16,4], index: 1, kind: input, shape index: {}]   ;;  %s15233_s2 = inlined_call_operand.vmem [shape: f32[9,4,8], index: 2, kind: input, shape index: {}]   ;;  %s15234_s3 = inlined_call_operand.vmem [shape: f32[1,8], index: 3, kind: input, shape index: {}]   ;;  %s15235_s4 = inlined_call_operand.vmem [shape: f32[9,8,8], index: 4, kind: input, shape index: {}]   ;;  %s15236_s5 = inlined_call_operand.vmem [shape: f32[1,8], index: 5, kind: input, shape index: {}]   ;;  %s15237_s6 = inlined_call_operand.vmem [shape: f32[4,8], index: 6, kind: input, shape index: {}]   ;;  %s15238_s7 = inlined_call_operand.vmem [shape: f32[1,8], index: 7, kind: input, shape index: {}]   ;;  %s15239_s8 = inlined_call_operand.vmem [shape: f32[2,16,16,8], index: 8, kind: output, shape index: {}]  }
   0x1 LB: > { %s8209_s28 = sadd.s32 4294967295, %s11797_s27   ;;  %p8213_p0 = scmp.ge.s32.totalorder %s11797_s27, 1  ;;  %s11797_s27 = sphi %s11845_s27, %s18_s27  }
   0x2   : > { %p272_p1 = scmp.lt.s32.totalorder %s11797_s27, 3 }
   0x4   : > { %p273_p2 = pnand %p8213_p0, %p272_p1 }
   0x6   : > { %276 = sbr.rel (%p273_p2) target bundleno = 1831 (0x727), region = 52 }
   0xd   : > { %v406_v0 = vld [vmem:[%s15233_s2] sm:$0xf]  ;;  %vm723_vm0 = vcmask 1043456   ;;  %p311_p3 = scmp.lt.s32.totalorder %s8209_s28, 1  ;;  %v408_v1 = vld [vmem:[%s15233_s2 + $0x8] sm:$0xf] }
   0xe   : > { %9946 = vmatprep.subr.msk.mxu0 %vm723_vm0, %v406_v0  ;;  %v407_v2 = vld [vmem:[%s15233_s2 + $0x4] sm:$0xf]  ;;  %vm614_vm1 = vcmask 31744   ;;  %vm487_vm2 = vcmask 1046528   ;;  %v11898_v10 = vld [vmem:[%s15233_s2 + $0xc] sm:$0xf] }
   0xf   : > { %9947 = vmatpush3.msk.msra.mxu0 %vm723_vm0, %v406_v0  ;;  %s15985_s28 = smov (!%p311_p3, %s8209_s28), 1  ;;  %9863 = vmatprep.subr.msk.mxu1 %vm723_vm0, %v407_v2  ;;  %vm1508_vm3 = vcmask 1045504   ;;  %vm5007_vm4 = vcmask 64512  }
  0x10   : > { %10029 = vmatprep.subr.msk.mxu0 %vm723_vm0, %v408_v1  ;;  %9864 = vmatpush3.msk.msra.mxu1 %vm723_vm0, %v407_v2  ;;  %s11736_s13 = smul.u32 640, %s15985_s28 }
  0x11   : > { %11110 = vmatprep.subr.msk.mxu1 %vm723_vm0, %v406_v0 }
  0x12   : > { %s11874_s16 = scalar_lea.vmem %s15231_s0, %s11736_s13 }
  0x13   : > { %v11877_v3 = vld [vmem:[%s11874_s16] sm:$0xff]  ;;  %v11880_v4 = vld [vmem:[%s11874_s16 + $0x8] sm:$0xff]  ;;  %v11883_v5 = vld [vmem:[%s11874_s16 + $0x10] sm:$0xff] }
  0x14   : > { %v488_v6 = vrot.slane %v11877_v3, 1  ;;  %9948 = vmatprep.mubr.msk.f32.mxu0 %vm614_vm1, %v11877_v3  ;;  %v489_v7 = vrot.slane %v11880_v4, 1  ;;  %v11890_v8 = vld [vmem:[%s11874_s16 + $0x20] sm:$0xff]  ;;  %v11893_v9 = vld [vmem:[%s11874_s16 + $0x28] sm:$0xff]  ;;  %v491_v11 = vrot.slane %v11883_v5, 1  ;;  %v11914_v17 = vld [vmem:[%s11874_s16 + $0x30] sm:$0xff] }
  0x15   : > { %9949 = vmatmul.mubr.msk.f32.vlgmr.msra.gmra.mrb[0].mxu0 %vm614_vm1, %v11880_v4  ;;  %v495_v12 = vrot.slane %v11890_v8, 1  ;;  %v11905_v13 = vld [vmem:[%s11874_s16 + $0x18] sm:$0x3]  ;;  %v496_v16 = vrot.slane %v11893_v9, 1  ;;  %v498_v20 = vrot.slane %v11914_v17, 1  ;;  %v11923_v21 = vld [vmem:[%s11874_s16 + $0x40] sm:$0xff] }
  0x16   : > { %10030 = vmatpush3.msk.msra.mxu0 %vm723_vm0, %v408_v1  ;;  %v490_v14 = vsel %vm487_vm2, %v488_v6, %v489_v7  ;;  %9951 = vmatprep.mubr.msk.f32.mxu0 %vm614_vm1, %v11883_v5  ;;  %v493_v15 = vrot.slane %v11905_v13, 1  ;;  %v11917_v18 = vld [vmem:[%s11874_s16 + $0x38] sm:$0x3]  ;;  %v492_v19 = vsel %vm487_vm2, %v489_v7, %v491_v11  ;;  %v11926_v22 = vld [vmem:[%s11874_s16 + $0x48] sm:$0xff]  ;;  %v502_v27 = vrot.slane %v11923_v21, 1  ;;  %v11947_v29 = vld [vmem:[%s11874_s16 + $0x50] sm:$0xff] }
  0x17   : > { %9865 = vmatprep.mubr.msk.f32.mxu1 %vm614_vm1, %v490_v14  ;;  %10112 = vmatprep.subr.msk.mxu0 %vm723_vm0, %v11898_v10  ;;  %v11936_v24 = vsel %vm487_vm2, %v495_v12, %v496_v16  ;;  %v500_v25 = vrot.slane %v11917_v18, 1  ;;  %v11942_v26 = vsel %vm487_vm2, %v496_v16, %v498_v20  ;;  %v503_v28 = vrot.slane %v11926_v22, 1  ;;  %v11951_v30 = vld [vmem:[%s11874_s16 + $0x58] sm:$0x3]  ;;  %v11969_v34 = vld [vmem:[%s11874_s16 + $0x60] sm:$0xff]  ;;  %v11973_v36 = vld [vmem:[%s11874_s16 + $0x68] sm:$0xff] }
  0x18   : > { %9866 = vmatmul.mubr.msk.f32.vlgmr.msra.gmra.mrb[0].mxu1 %vm614_vm1, %v492_v19  ;;  %v494_v23 = vsel %vm487_vm2, %v491_v11, %v493_v15  ;;  %15511 = vst [vmem:[#allocation2_spill] sm:$0xff] %v11936_v24  ;;  %15512 = vst [vmem:[#allocation3_spill] sm:$0xff] %v11942_v26  ;;  %v505_v32 = vrot.slane %v11947_v29, 1  ;;  %v507_v35 = vrot.slane %v11951_v30, 1  ;;  %v11976_v37 = vld [vmem:[%s11874_s16 + $0x70] sm:$0xff]  ;;  %v509_v39 = vrot.slane %v11969_v34, 1 }
  0x19   : > { %9952 = vmatmul.mubr.msk.f32.gmra.mrb[2].mxu0 %vm614_vm1, %v11890_v8  ;;  %9868 = vmatprep.mubr.msk.f32.mxu1 %vm614_vm1, %v494_v23  ;;  %v11960_v31 = vsel %vm487_vm2, %v498_v20, %v500_v25  ;;  %v11966_v33 = vsel %vm487_vm2, %v502_v27, %v503_v28  ;;  %v510_v40 = vrot.slane %v11973_v36, 1  ;;  %v512_v42 = vrot.slane %v11976_v37, 1  ;;  %v11996_v43 = vld [vmem:[%s11874_s16 + $0x78] sm:$0x3]  ;;  %v11999_v44 = vld [vmem:[%s11874_s16 + $0x80] sm:$0xff]  ;;  %v12002_v45 = vld [vmem:[%s11874_s16 + $0x88] sm:$0xff] }
  0x1a   : > { %9954 = vmatprep.mubr.msk.f32.mxu0 %vm614_vm1, %v11893_v9  ;;  %11111 = vmatpush3.msk.msra.mxu1 %vm723_vm0, %v406_v0  ;;  %15513 = vst [vmem:[#allocation4_spill] sm:$0xff] %v11960_v31  ;;  %15514 = vst [vmem:[#allocation5_spill] sm:$0xff] %v11966_v33  ;;  %v11985_v38 = vsel %vm487_vm2, %v503_v28, %v505_v32  ;;  %v11992_v41 = vsel %vm487_vm2, %v505_v32, %v507_v35  ;;  %v514_v47 = vrot.slane %v11996_v43, 1  ;;  %v12022_v51 = vld [vmem:[%s11874_s16 + $0x90] sm:$0xff]  ;;  %v12025_v52 = vld [vmem:[%s11874_s16 + $0x98] sm:$0x3] }
  0x1b   : > { %15515 = vst [vmem:[#allocation6_spill] sm:$0xff] %v11985_v38  ;;  %15516 = vst [vmem:[#allocation7_spill] sm:$0xff] %v11992_v41  ;;  %v12011_v46 = vsel %vm487_vm2, %v509_v39, %v510_v40  ;;  %v12017_v48 = vsel %vm487_vm2, %v510_v40, %v512_v42  ;;  %v516_v49 = vrot.slane %v11999_v44, 1  ;;  %v517_v50 = vrot.slane %v12002_v45, 1  ;;  %v12043_v56 = vld [vmem:[%s11874_s16 + $0xa0] sm:$0xff]  ;;  %v12047_v58 = vld [vmem:[%s11874_s16 + $0xa8] sm:$0xff] }
  0x1c   : > { %9869 = vmatmul.mubr.msk.f32.gmra.mrb[2].mxu1 %vm614_vm1, %v11936_v24  ;;  %15517 = vst [vmem:[#allocation8_spill] sm:$0xff] %v12011_v46  ;;  %15518 = vst [vmem:[#allocation9_spill] sm:$0xff] %v12017_v48  ;;  %v12034_v53 = vsel %vm487_vm2, %v512_v42, %v514_v47  ;;  %v519_v54 = vrot.slane %v12022_v51, 1  ;;  %v521_v57 = vrot.slane %v12025_v52, 1  ;;  %v12050_v59 = vld [vmem:[%s11874_s16 + $0xb0] sm:$0xff]  ;;  %v523_v61 = vrot.slane %v12043_v56, 1 }
  0x1d   : > { %9955 = vmatmul.mubr.msk.f32.gmra.mrb[4].mxu0 %vm614_vm1, %v11914_v17  ;;  %9871 = vmatprep.mubr.msk.f32.mxu1 %vm614_vm1, %v11942_v26  ;;  %15519 = vst [vmem:[#allocation10_spill] sm:$0xff] %v12022_v51  ;;  %15520 = vst [vmem:[#allocation11_spill] sm:$0xff] %v12034_v53  ;;  %v12040_v55 = vsel %vm487_vm2, %v516_v49, %v517_v50  ;;  %v524_v62 = vrot.slane %v12047_v58, 1  ;;  %v526_v0 = vrot.slane %v12050_v59, 1  ;;  %v12070_v1 = vld [vmem:[%s11874_s16 + $0xb8] sm:$0x3] }
  0x1e   : > { %9957 = vmatprep.mubr.msk.f32.mxu0 %vm614_vm1, %v11923_v21  ;;  %15521 = vst [vmem:[#allocation12_spill] sm:$0xff] %v12040_v55  ;;  %15522 = vst [vmem:[#allocation13_spill] sm:$0xff] %v12043_v56  ;;  %v12059_v60 = vsel %vm487_vm2, %v517_v50, %v519_v54  ;;  %v12066_v63 = vsel %vm487_vm2, %v519_v54, %v521_v57  ;;  %v12073_v2 = vld [vmem:[%s11874_s16 + $0xc0] sm:$0xff]  ;;  %v12076_v6 = vld [vmem:[%s11874_s16 + $0xc8] sm:$0xff]  ;;  %v528_v11 = vrot.slane %v12070_v1, 1 }
  0x1f   : > { %15523 = vst [vmem:[#allocation14_spill] sm:$0xff] %v12047_v58  ;;  %15524 = vst [vmem:[#allocation15_spill] sm:$0xff] %v12050_v59  ;;  %v12085_v7 = vsel %vm487_vm2, %v523_v61, %v524_v62  ;;  %v12091_v12 = vsel %vm487_vm2, %v524_v62, %v526_v0  ;;  %v530_v14 = vrot.slane %v12073_v2, 1  ;;  %v531_v15 = vrot.slane %v12076_v6, 1  ;;  %v12096_v16 = vld [vmem:[%s11874_s16 + $0xd0] sm:$0xff]  ;;  %v12117_v27 = vld [vmem:[%s11874_s16 + $0xe0] sm:$0xff] }
  0x20   : > { %9872 = vmatmul.mubr.msk.f32.gmra.mrb[4].mxu1 %vm614_vm1, %v11960_v31  ;;  %15525 = vst [vmem:[#allocation16_spill] sm:$0xff] %v12059_v60  ;;  %15526 = vst [vmem:[#allocation17_spill] sm:$0xff] %v12066_v63  ;;  %v12099_v19 = vld [vmem:[%s11874_s16 + $0xd8] sm:$0x3]  ;;  %v12108_v20 = vsel %vm487_vm2, %v526_v0, %v528_v11  ;;  %v533_v23 = vrot.slane %v12096_v16, 1  ;;  %v12121_v32 = vld [vmem:[%s11874_s16 + $0xe8] sm:$0xff] }
  0x21   : > { %9958 = vmatmul.mubr.msk.f32.gmra.mrb[6].mxu0 %vm614_vm1, %v11926_v22  ;;  %9874 = vmatprep.mubr.msk.f32.mxu1 %vm614_vm1, %v11966_v33  ;;  %15527 = vst [vmem:[#allocation18_spill] sm:$0xff] %v12073_v2  ;;  %15528 = vst [vmem:[#allocation19_spill] sm:$0xff] %v12076_v6  ;;  %v12114_v25 = vsel %vm487_vm2, %v530_v14, %v531_v15  ;;  %v535_v28 = vrot.slane %v12099_v19, 1  ;;  %v12124_v35 = vld [vmem:[%s11874_s16 + $0xf0] sm:$0xff]  ;;  %v537_v40 = vrot.slane %v12117_v27, 1  ;;  %v538_v42 = vrot.slane %v12121_v32, 1 }
  0x22   : > { %9960 = vmatprep.mubr.msk.f32.mxu0 %vm614_vm1, %v11947_v29  ;;  %15529 = vst [vmem:[#allocation20_spill] sm:$0xff] %v12085_v7  ;;  %15530 = vst [vmem:[#allocation21_spill] sm:$0xff] %v12091_v12  ;;  %v12133_v39 = vsel %vm487_vm2, %v531_v15, %v533_v23  ;;  %v540_v49 = vrot.slane %v12124_v35, 1  ;;  %v12144_v50 = vld [vmem:[%s11874_s16 + $0xf8] sm:$0x3]  ;;  %v12147_v54 = vld [vmem:[%s11874_s16 + $0x100] sm:$0xff] }
  0x23   : > { %15531 = vst [vmem:[#allocation22_spill] sm:$0xff] %v12096_v16  ;;  %15532 = vst [vmem:[#allocation23_spill] sm:$0xff] %v12108_v20  ;;  %v12140_v47 = vsel %vm487_vm2, %v533_v23, %v535_v28  ;;  %v12150_v57 = vld [vmem:[%s11874_s16 + $0x108] sm:$0xff]  ;;  %v12159_v61 = vsel %vm487_vm2, %v537_v40, %v538_v42  ;;  %v542_v62 = vrot.slane %v12144_v50, 1  ;;  %v544_v11 = vrot.slane %v12147_v54, 1  ;;  %v12170_v15 = vld [vmem:[%s11874_s16 + $0x110] sm:$0xff] }
  0x24   : > { %9875 = vmatmul.mubr.msk.f32.gmra.mrb[6].mxu1 %vm614_vm1, %v11985_v38  ;;  %15533 = vst [vmem:[#allocation24_spill] sm:$0xff] %v12114_v25  ;;  %15534 = vst [vmem:[#allocation25_spill] sm:$0xff] %v12117_v27  ;;  %v12165_v0 = vsel %vm487_vm2, %v538_v42, %v540_v49  ;;  %v545_v14 = vrot.slane %v12150_v57, 1  ;;  %v1509_v23 = vrot.slane %v11877_v3, 2  ;;  %v1510_v28 = vrot.slane %v11880_v4, 2  ;;  %v12398_v24 = vld [vmem:[%s11874_s16 + $0x1a8] sm:$0xff] }
  0x25   : > { %9961 = vmatmul.mubr.msk.f32.gmra.mrb[8].mxu0 %vm614_vm1, %v11969_v34  ;;  %9877 = vmatprep.mubr.msk.f32.mxu1 %vm614_vm1, %v11992_v41  ;;  %15535 = vst [vmem:[#allocation26_spill] sm:$0xff] %v12121_v32  ;;  %15536 = vst [vmem:[#allocation27_spill] sm:$0xff] %v12124_v35  ;;  %v12175_v40 = vld [vmem:[%s11874_s16 + $0x118] sm:$0x3]  ;;  %v12184_v42 = vsel %vm487_vm2, %v540_v49, %v542_v62  ;;  %v547_v3 = vrot.slane %v12170_v15, 1  ;;  %v1512_v4 = vrot.slane %v11883_v5, 2 }
  0x26   : > { %9963 = vmatprep.mubr.msk.f32.mxu0 %vm614_vm1, %v11973_v36  ;;  %15537 = vst [vmem:[#allocation28_spill] sm:$0xff] %v12133_v39  ;;  %15538 = vst [vmem:[#allocation29_spill] sm:$0xff] %v12140_v47  ;;  %v1511_v49 = vsel %vm1508_vm3, %v1509_v23, %v1510_v28  ;;  %v1514_v62 = vrot.slane %v11905_v13, 2  ;;  %v1516_v5 = vrot.slane %v11890_v8, 2  ;;  %v12337_v41 = vld [vmem:[%s11874_s16 + $0x180] sm:$0xff]  ;;  %v1538_v33 = vrot.slane %v12002_v45, 2 }
  0x27   : > { %15539 = vst [vmem:[#allocation30_spill] sm:$0xff] %v12147_v54  ;;  %15540 = vst [vmem:[#allocation31_spill] sm:$0xff] %v12150_v57 }
  0x28   : > { %9878 = vmatmul.mubr.msk.f32.gmra.mrb[8].mxu1 %vm614_vm1, %v12011_v46  ;;  %15541 = vst [vmem:[#allocation32_spill] sm:$0xff] %v12159_v61  ;;  %15542 = vst [vmem:[#allocation33_spill] sm:$0xff] %v12165_v0  ;;  %v12305_v46 = vld [vmem:[%s11874_s16 + $0x170] sm:$0xff] }
  0x29   : > { %9964 = vmatmul.mubr.msk.f32.gmra.mrb[10].mxu0 %vm614_vm1, %v11976_v37  ;;  %9880 = vmatprep.mubr.msk.f32.mxu1 %vm614_vm1, %v12017_v48  ;;  %15543 = vst [vmem:[#allocation34_spill] sm:$0xff] %v12184_v42  ;;  %v12295_v48 = vld [vmem:[%s11874_s16 + $0x160] sm:$0xff] }
  0x2a   : > { %9966 = vmatprep.mubr.msk.f32.mxu0 %vm614_vm1, %v11999_v44 }
  0x2c   : > { %9881 = vmatmul.mubr.msk.f32.gmra.mrb[10].mxu1 %vm614_vm1, %v12034_v53 }
  0x2d   : > { %9967 = vmatmul.mubr.msk.f32.gmra.mrb[12].mxu0 %vm614_vm1, %v12002_v45  ;;  %9883 = vmatprep.mubr.msk.f32.mxu1 %vm614_vm1, %v12040_v55  ;;  %v12233_v55 = vld [vmem:[%s11874_s16 + $0x148] sm:$0xff] }
  0x2e   : > { %9969 = vmatprep.mubr.msk.f32.mxu0 %vm614_vm1, %v12022_v51 }
  0x30   : > { %9884 = vmatmul.mubr.msk.f32.gmra.mrb[12].mxu1 %vm614_vm1, %v12059_v60  ;;  %v12230_v60 = vld [vmem:[%s11874_s16 + $0x140] sm:$0xff] }
  0x31   : > { %9970 = vmatmul.mubr.msk.f32.gmra.mrb[14].mxu0 %vm614_vm1, %v12043_v56  ;;  %9886 = vmatprep.mubr.msk.f32.mxu1 %vm614_vm1, %v12066_v63  ;;  %v12225_v63 = vld [vmem:[%s11874_s16 + $0x138] sm:$0x3] }
  0x32   : > { %9972 = vmatprep.mubr.msk.f32.mxu0 %vm614_vm1, %v12047_v58 }
  0x34   : > { %9887 = vmatmul.mubr.msk.f32.gmra.mrb[14].mxu1 %vm614_vm1, %v12085_v7 }
  0x35   : > { %9973 = vmatmul.mubr.msk.f32.gmra.mrb[16].mxu0 %vm614_vm1, %v12050_v59  ;;  %9889 = vmatprep.mubr.msk.f32.mxu1 %vm614_vm1, %v12091_v12  ;;  %v1517_v12 = vrot.slane %v11893_v9, 2 }
  0x36   : > { %9975 = vmatprep.mubr.msk.f32.mxu0 %vm614_vm1, %v12073_v2 }
  0x38   : > { %9890 = vmatmul.mubr.msk.f32.gmra.mrb[16].mxu1 %vm614_vm1, %v12108_v20 }
  0x39   : > { %9976 = vmatmul.mubr.msk.f32.gmra.mrb[18].mxu0 %vm614_vm1, %v12076_v6  ;;  %9892 = vmatprep.mubr.msk.f32.mxu1 %vm614_vm1, %v12114_v25  ;;  %v12198_v25 = vld [vmem:[%s11874_s16 + $0x128] sm:$0xff] }
  0x3a   : > { %9978 = vmatprep.mubr.msk.f32.mxu0 %vm614_vm1, %v12096_v16  ;;  %v552_v23 = vrot.slane %v12198_v25, 1 }
  0x3c   : > { %9893 = vmatmul.mubr.msk.f32.gmra.mrb[18].mxu1 %vm614_vm1, %v12133_v39  ;;  %v12195_v39 = vld [vmem:[%s11874_s16 + $0x120] sm:$0xff] }
  0x3d   : > { %9979 = vmatmul.mubr.msk.f32.gmra.mrb[20].mxu0 %vm614_vm1, %v12117_v27  ;;  %9895 = vmatprep.mubr.msk.f32.mxu1 %vm614_vm1, %v12140_v47  ;;  %v12191_v47 = vsel %vm487_vm2, %v544_v11, %v545_v14  ;;  %v12213_v11 = vsel %vm487_vm2, %v545_v14, %v547_v3  ;;  %v551_v13 = vrot.slane %v12195_v39, 1  ;;  %v1519_v14 = vrot.slane %v11914_v17, 2 }
  0x3e   : > { %9981 = vmatprep.mubr.msk.f32.mxu0 %vm614_vm1, %v12121_v32  ;;  %15544 = vst [vmem:[#allocation35_spill] sm:$0xff] %v12191_v47  ;;  %15545 = vst [vmem:[#allocation36_spill] sm:$0xff] %v12213_v11 }
  0x40   : > { %9896 = vmatmul.mubr.msk.f32.gmra.mrb[20].mxu1 %vm614_vm1, %v12159_v61  ;;  %v549_v61 = vrot.slane %v12175_v40, 1 }
  0x41   : > { %9982 = vmatmul.mubr.msk.f32.gmra.mrb[22].mxu0 %vm614_vm1, %v12124_v35  ;;  %9898 = vmatprep.mubr.msk.f32.mxu1 %vm614_vm1, %v12165_v0  ;;  %v12203_v0 = vld [vmem:[%s11874_s16 + $0x130] sm:$0xff] }
  0x42   : > { %9984 = vmatprep.mubr.msk.f32.mxu0 %vm614_vm1, %v12147_v54  ;;  %v12220_v20 = vsel %vm487_vm2, %v547_v3, %v549_v61  ;;  %v554_v7 = vrot.slane %v12203_v0, 1  ;;  %v12240_v61 = vld [vmem:[%s15233_s2 + $0x10] sm:$0xf]  ;;  %v556_v3 = vrot.slane %v12225_v63, 1 }
  0x43   : > { %15546 = vst [vmem:[#allocation37_spill] sm:$0xff] %v12220_v20 }
  0x44   : > { %9899 = vmatmul.mubr.msk.f32.gmra.mrb[22].mxu1 %vm614_vm1, %v12184_v42  ;;  %v1513_v42 = vsel %vm1508_vm3, %v1510_v28, %v1512_v4  ;;  %v12246_v28 = vsel %vm487_vm2, %v551_v13, %v552_v23  ;;  %v559_v13 = vrot.slane %v12233_v55, 1 }
  0x45   : > { %9985 = vmatmul.mubr.msk.f32.gmra.mrb[24].mxu0 %vm614_vm1, %v12150_v57  ;;  %9901 = vmatprep.mubr.msk.f32.mxu1 %vm614_vm1, %v12191_v47  ;;  %v1515_v47 = vsel %vm1508_vm3, %v1512_v4, %v1514_v62  ;;  %15547 = vst [vmem:[#allocation38_spill] sm:$0xff] %v12246_v28  ;;  %v1521_v4 = vrot.slane %v11917_v18, 2  ;;  %v558_v62 = vrot.slane %v12230_v60, 1  ;;  %v12265_v18 = vsel %vm1508_vm3, %v1517_v12, %v1519_v14 }
  0x46   : > { %10031 = vmatprep.mubr.msk.f32.mxu0 %vm614_vm1, %v1511_v49  ;;  %v12254_v49 = vsel %vm1508_vm3, %v1516_v5, %v1517_v12  ;;  %15550 = vst [vmem:[#allocation41_spill] sm:$0xff] %v12265_v18  ;;  %v12270_v5 = vld [vmem:[%s11874_s16 + $0x158] sm:$0x3]  ;;  %v12281_v12 = vsel %vm487_vm2, %v554_v7, %v556_v3  ;;  %v1528_v3 = vrot.slane %v11951_v30, 2  ;;  %v565_v30 = vrot.slane %v12295_v48, 1 }
  0x47   : > { %15548 = vst [vmem:[#allocation39_spill] sm:$0xff] %v12254_v49  ;;  %15551 = vst [vmem:[#allocation42_spill] sm:$0xff] %v12281_v12  ;;  %v12288_v53 = vsel %vm1508_vm3, %v1519_v14, %v1521_v4 }
  0x48   : > { %9902 = vmatmul.mubr.msk.f32.gmra.mrb[24].mxu1 %vm614_vm1, %v12213_v11  ;;  %v1526_v11 = vrot.slane %v11947_v29, 2  ;;  %15552 = vst [vmem:[#allocation43_spill] sm:$0xff] %v12288_v53 }
  0x49   : > { %10032 = vmatmul.mubr.msk.f32.vlgmr.msra.gmra.mrb[26].mxu0 %vm614_vm1, %v1513_v42  ;;  %9904 = vmatprep.mubr.msk.f32.mxu1 %vm614_vm1, %v12220_v20  ;;  %v12257_v42 = vsel %vm487_vm2, %v552_v23, %v554_v7  ;;  %v12262_v20 = vld [vmem:[%s11874_s16 + $0x150] sm:$0xff] }
  0x4a   : > { %10113 = vmatpush3.msk.msra.mxu0 %vm723_vm0, %v11898_v10  ;;  %10034 = vmatprep.mubr.msk.f32.mxu0 %vm614_vm1, %v1515_v47  ;;  %15549 = vst [vmem:[#allocation40_spill] sm:$0xff] %v12257_v42  ;;  %v1523_v10 = vrot.slane %v11923_v21, 2  ;;  %v1524_v47 = vrot.slane %v11926_v22, 2  ;;  %v561_v23 = vrot.slane %v12262_v20, 1 }
  0x4b   : > { %10195 = vmatprep.subr.msk.mxu0 %vm723_vm0, %v12240_v61 }
  0x4c   : > { %9905 = vmatmul.mubr.msk.f32.gmra.mrb[26].mxu1 %vm614_vm1, %v12246_v28  ;;  %v12291_v28 = vsel %vm487_vm2, %v558_v62, %v559_v13  ;;  %v12301_v7 = vsel %vm1508_vm3, %v1523_v10, %v1524_v47  ;;  %v12314_v14 = vsel %vm487_vm2, %v559_v13, %v561_v23  ;;  %v12317_v4 = vsel %vm1508_vm3, %v1524_v47, %v1526_v11 }
  0x4d   : > { %10035 = vmatmul.mubr.msk.f32.gmra.mrb[28].mxu0 %vm614_vm1, %v12254_v49  ;;  %9907 = vmatprep.mubr.msk.f32.mxu1 %vm614_vm1, %v12257_v42  ;;  %15553 = vst [vmem:[#allocation44_spill] sm:$0xff] %v12291_v28  ;;  %v563_v49 = vrot.slane %v12270_v5, 1  ;;  %v12298_v42 = vld [vmem:[%s11874_s16 + $0x168] sm:$0xff]  ;;  %15554 = vst [vmem:[#allocation45_spill] sm:$0xff] %v12301_v7  ;;  %v568_v13 = vrot.slane %v12305_v46, 1  ;;  %v12333_v47 = vsel %vm1508_vm3, %v1526_v11, %v1528_v3  ;;  %v12354_v3 = vld [vmem:[%s11874_s16 + $0x190] sm:$0xff] }
  0x4e   : > { %10037 = vmatprep.mubr.msk.f32.mxu0 %vm614_vm1, %v12265_v18  ;;  %15555 = vst [vmem:[#allocation46_spill] sm:$0xff] %v12314_v14  ;;  %15556 = vst [vmem:[#allocation47_spill] sm:$0xff] %v12317_v4  ;;  %v566_v62 = vrot.slane %v12298_v42, 1  ;;  %v1531_v18 = vrot.slane %v11973_v36, 2 }
  0x4f   : > { %v12324_v10 = vsel %vm487_vm2, %v561_v23, %v563_v49  ;;  %15558 = vst [vmem:[#allocation49_spill] sm:$0xff] %v12333_v47  ;;  %v1535_v23 = vrot.slane %v11996_v43, 2  ;;  %v1537_v43 = vrot.slane %v11999_v44, 2 }
  0x50   : > { %9908 = vmatmul.mubr.msk.f32.gmra.mrb[28].mxu1 %vm614_vm1, %v12281_v12  ;;  %15557 = vst [vmem:[#allocation48_spill] sm:$0xff] %v12324_v10  ;;  %v1533_v12 = vrot.slane %v11976_v37, 2  ;;  %v12349_v49 = vsel %vm487_vm2, %v565_v30, %v566_v62 }
  0x51   : > { %10038 = vmatmul.mubr.msk.f32.gmra.mrb[4].mxu0 %vm614_vm1, %v12288_v53  ;;  %9910 = vmatprep.mubr.msk.f32.mxu1 %vm614_vm1, %v12291_v28  ;;  %v1530_v53 = vrot.slane %v11969_v34, 2  ;;  %v12330_v28 = vld [vmem:[%s11874_s16 + $0x178] sm:$0x3]  ;;  %15559 = vst [vmem:[#allocation50_spill] sm:$0xff] %v12349_v49 }
  0x52   : > { %10040 = vmatprep.mubr.msk.f32.mxu0 %vm614_vm1, %v12301_v7  ;;  %v12340_v7 = vld [vmem:[%s11874_s16 + $0x188] sm:$0xff]  ;;  %v570_v11 = vrot.slane %v12330_v28, 1  ;;  %v12367_v38 = vsel %vm1508_vm3, %v1531_v18, %v1533_v12 }
  0x53   : > { %v573_v30 = vrot.slane %v12340_v7, 1  ;;  %15562 = vst [vmem:[#allocation53_spill] sm:$0xff] %v12367_v38 }
  0x54   : > { %9911 = vmatmul.mubr.msk.f32.gmra.mrb[30].mxu1 %vm614_vm1, %v12314_v14  ;;  %v12359_v14 = vsel %vm1508_vm3, %v1530_v53, %v1531_v18  ;;  %v575_v53 = vrot.slane %v12354_v3, 1  ;;  %v12382_v18 = vsel %vm487_vm2, %v568_v13, %v570_v11  ;;  %v1542_v11 = vrot.slane %v12025_v52, 2 }
  0x55   : > { %10041 = vmatmul.mubr.msk.f32.gmra.mrb[6].mxu0 %vm614_vm1, %v12317_v4  ;;  %9913 = vmatprep.mubr.msk.f32.mxu1 %vm614_vm1, %v12324_v10  ;;  %15560 = vst [vmem:[#allocation51_spill] sm:$0xff] %v12359_v14  ;;  %v12362_v4 = vsel %vm487_vm2, %v566_v62, %v568_v13  ;;  %v572_v10 = vrot.slane %v12337_v41, 1  ;;  %15563 = vst [vmem:[#allocation54_spill] sm:$0xff] %v12382_v18  ;;  %v12387_v62 = vsel %vm1508_vm3, %v1533_v12, %v1535_v23 }
  0x56   : > { %10043 = vmatprep.mubr.msk.f32.mxu0 %vm614_vm1, %v12333_v47  ;;  %15561 = vst [vmem:[#allocation52_spill] sm:$0xff] %v12362_v4  ;;  %v12372_v47 = vld [vmem:[%s11874_s16 + $0x198] sm:$0x3]  ;;  %15564 = vst [vmem:[#allocation55_spill] sm:$0xff] %v12387_v62  ;;  %v12401_v13 = vsel %vm1508_vm3, %v1537_v43, %v1538_v33  ;;  %v12410_v12 = vsel %vm487_vm2, %v573_v30, %v575_v53  ;;  %v580_v52 = vrot.slane %v12398_v24, 1  ;;  %v1544_v23 = vrot.slane %v12043_v56, 2 }
  0x57   : > { %v12390_v31 = vsel %vm487_vm2, %v572_v10, %v573_v30  ;;  %v577_v26 = vrot.slane %v12372_v47, 1  ;;  %15566 = vst [vmem:[#allocation57_spill] sm:$0xff] %v12401_v13  ;;  %15567 = vst [vmem:[#allocation58_spill] sm:$0xff] %v12410_v12  ;;  %v1545_v43 = vrot.slane %v12047_v58, 2  ;;  %v1547_v56 = vrot.slane %v12050_v59, 2  ;;  %v12437_v58 = vld [vmem:[%s11874_s16 + $0x1c0] sm:$0xff] }
  0x58   : > { %9914 = vmatmul.mubr.msk.f32.gmra.mrb[32].mxu1 %vm614_vm1, %v12349_v49  ;;  %15565 = vst [vmem:[#allocation56_spill] sm:$0xff] %v12390_v31  ;;  %v1540_v49 = vrot.slane %v12022_v51, 2  ;;  %v12440_v51 = vld [vmem:[%s11874_s16 + $0x1c8] sm:$0xff] }
  0x59   : > { %10044 = vmatmul.mubr.msk.f32.gmra.mrb[8].mxu0 %vm614_vm1, %v12359_v14  ;;  %9916 = vmatprep.mubr.msk.f32.mxu1 %vm614_vm1, %v12362_v4  ;;  %v12395_v14 = vld [vmem:[%s11874_s16 + $0x1a0] sm:$0xff]  ;;  %v12498_v59 = vld [vmem:[%s11874_s16 + $0x1e8] sm:$0xff] }
  0x5a   : > { %10046 = vmatprep.mubr.msk.f32.mxu0 %vm614_vm1, %v12367_v38  ;;  %v12405_v38 = vld [vmem:[%s11874_s16 + $0x1b0] sm:$0xff]  ;;  %v579_v10 = vrot.slane %v12395_v14, 1  ;;  %v12423_v30 = vsel %vm1508_vm3, %v1538_v33, %v1540_v49  ;;  %v12433_v4 = vsel %vm1508_vm3, %v1540_v49, %v1542_v11  ;;  %v12452_v33 = vsel %vm1508_vm3, %v1544_v23, %v1545_v43 }
  0x5b   : > { %15568 = vst [vmem:[#allocation59_spill] sm:$0xff] %v12423_v30  ;;  %15570 = vst [vmem:[#allocation61_spill] sm:$0xff] %v12433_v4  ;;  %v12467_v23 = vsel %vm1508_vm3, %v1545_v43, %v1547_v56 }
  0x5c   : > { %9917 = vmatmul.mubr.msk.f32.gmra.mrb[34].mxu1 %vm614_vm1, %v12382_v18  ;;  %v12430_v18 = vld [vmem:[%s11874_s16 + $0x1b8] sm:$0x3]  ;;  %15572 = vst [vmem:[#allocation63_spill] sm:$0xff] %v12452_v33  ;;  %15574 = vst [vmem:[#allocation65_spill] sm:$0xff] %v12467_v23 }
  0x5d   : > { %10047 = vmatmul.mubr.msk.f32.gmra.mrb[10].mxu0 %vm614_vm1, %v12387_v62  ;;  %9919 = vmatprep.mubr.msk.f32.mxu1 %vm614_vm1, %v12390_v31  ;;  %v12426_v62 = vsel %vm487_vm2, %v575_v53, %v577_v26  ;;  %v582_v31 = vrot.slane %v12405_v38, 1  ;;  %v12449_v26 = vsel %vm487_vm2, %v579_v10, %v580_v52  ;;  %v584_v49 = vrot.slane %v12430_v18, 1  ;;  %v12456_v53 = vld [vmem:[%s11874_s16 + $0x1d0] sm:$0xff] }
  0x5e   : > { %10049 = vmatprep.mubr.msk.f32.mxu0 %vm614_vm1, %v12401_v13  ;;  %15569 = vst [vmem:[#allocation60_spill] sm:$0xff] %v12426_v62  ;;  %15571 = vst [vmem:[#allocation62_spill] sm:$0xff] %v12449_v26  ;;  %v586_v13 = vrot.slane %v12437_v58, 1  ;;  %v587_v10 = vrot.slane %v12440_v51, 1 }
  0x5f   : > { %v12461_v11 = vsel %vm487_vm2, %v580_v52, %v582_v31  ;;  %v12482_v52 = vsel %vm487_vm2, %v582_v31, %v584_v49  ;;  %v1556_v49 = vrot.slane %v12099_v19, 2  ;;  %v594_v19 = vrot.slane %v12498_v59, 1 }
  0x60   : > { %9920 = vmatmul.mubr.msk.f32.gmra.mrb[36].mxu1 %vm614_vm1, %v12410_v12  ;;  %15573 = vst [vmem:[#allocation64_spill] sm:$0xff] %v12461_v11  ;;  %v1552_v12 = vrot.slane %v12076_v6, 2  ;;  %15575 = vst [vmem:[#allocation66_spill] sm:$0xff] %v12482_v52  ;;  %v12490_v6 = vsel %vm487_vm2, %v586_v13, %v587_v10  ;;  %v1558_v13 = vrot.slane %v12117_v27, 2  ;;  %v1561_v27 = vrot.slane %v12124_v35, 2  ;;  %v12605_v35 = vld [vmem:[%s11874_s16 + $0x230] sm:$0xff] }
  0x61   : > { %10050 = vmatmul.mubr.msk.f32.gmra.mrb[12].mxu0 %vm614_vm1, %v12423_v30  ;;  %9922 = vmatprep.mubr.msk.f32.mxu1 %vm614_vm1, %v12426_v62  ;;  %v1549_v30 = vrot.slane %v12070_v1, 2  ;;  %v1551_v62 = vrot.slane %v12073_v2, 2  ;;  %v589_v1 = vrot.slane %v12456_v53, 1  ;;  %15577 = vst [vmem:[#allocation68_spill] sm:$0xff] %v12490_v6 }
  0x62   : > { %10052 = vmatprep.mubr.msk.f32.mxu0 %vm614_vm1, %v12433_v4  ;;  %v12472_v4 = vld [vmem:[%s11874_s16 + $0x1d8] sm:$0x3] }
  0x63   : > { %v12487_v43 = vsel %vm1508_vm3, %v1547_v56, %v1549_v30  ;;  %v591_v2 = vrot.slane %v12472_v4, 1  ;;  %v12501_v31 = vsel %vm1508_vm3, %v1551_v62, %v1552_v12  ;;  %v12510_v56 = vsel %vm487_vm2, %v587_v10, %v589_v1 }
  0x64   : > { %9923 = vmatmul.mubr.msk.f32.gmra.mrb[38].mxu1 %vm614_vm1, %v12449_v26  ;;  %15576 = vst [vmem:[#allocation67_spill] sm:$0xff] %v12487_v43  ;;  %v1554_v26 = vrot.slane %v12096_v16, 2  ;;  %15578 = vst [vmem:[#allocation69_spill] sm:$0xff] %v12501_v31  ;;  %v1559_v30 = vrot.slane %v12121_v32, 2  ;;  %v12537_v32 = vld [vmem:[%s11874_s16 + $0x200] sm:$0xff]  ;;  %v12540_v16 = vld [vmem:[%s11874_s16 + $0x208] sm:$0xff] }
  0x65   : > { %10053 = vmatmul.mubr.msk.f32.gmra.mrb[14].mxu0 %vm614_vm1, %v12452_v33  ;;  %9925 = vmatprep.mubr.msk.f32.mxu1 %vm614_vm1, %v12461_v11  ;;  %v12495_v33 = vld [vmem:[%s11874_s16 + $0x1e0] sm:$0xff]  ;;  %15579 = vst [vmem:[#allocation70_spill] sm:$0xff] %v12510_v56 }
  0x66   : > { %10055 = vmatprep.mubr.msk.f32.mxu0 %vm614_vm1, %v12467_v23  ;;  %v12505_v23 = vld [vmem:[%s11874_s16 + $0x1f0] sm:$0xff]  ;;  %v593_v62 = vrot.slane %v12495_v33, 1  ;;  %v12523_v10 = vsel %vm1508_vm3, %v1552_v12, %v1554_v26  ;;  %v12533_v11 = vsel %vm1508_vm3, %v1554_v26, %v1556_v49  ;;  %v12552_v12 = vsel %vm1508_vm3, %v1558_v13, %v1559_v30 }
  0x67   : > { %15580 = vst [vmem:[#allocation71_spill] sm:$0xff] %v12523_v10  ;;  %15582 = vst [vmem:[#allocation73_spill] sm:$0xff] %v12533_v11  ;;  %v1563_v49 = vrot.slane %v12144_v50, 2  ;;  %v12567_v13 = vsel %vm1508_vm3, %v1559_v30, %v1561_v27 }
  0x68   : > { %9926 = vmatmul.mubr.msk.f32.gmra.mrb[40].mxu1 %vm614_vm1, %v12482_v52  ;;  %v12526_v52 = vsel %vm487_vm2, %v589_v1, %v591_v2  ;;  %v12549_v2 = vsel %vm487_vm2, %v593_v62, %v594_v19  ;;  %15584 = vst [vmem:[#allocation75_spill] sm:$0xff] %v12552_v12  ;;  %v12564_v62 = vld [vmem:[%s11874_s16 + $0x210] sm:$0xff]  ;;  %15586 = vst [vmem:[#allocation77_spill] sm:$0xff] %v12567_v13 }
  0x69   : > { %10056 = vmatmul.mubr.msk.f32.gmra.mrb[16].mxu0 %vm614_vm1, %v12487_v43  ;;  %9928 = vmatprep.mubr.msk.f32.mxu1 %vm614_vm1, %v12490_v6  ;;  %15581 = vst [vmem:[#allocation72_spill] sm:$0xff] %v12526_v52  ;;  %v596_v43 = vrot.slane %v12505_v23, 1  ;;  %v12530_v6 = vld [vmem:[%s11874_s16 + $0x1f8] sm:$0x3]  ;;  %15583 = vst [vmem:[#allocation74_spill] sm:$0xff] %v12549_v2  ;;  %v603_v30 = vrot.slane %v12564_v62, 1 }
  0x6a   : > { %10058 = vmatprep.mubr.msk.f32.mxu0 %vm614_vm1, %v12501_v31  ;;  %v598_v26 = vrot.slane %v12530_v6, 1  ;;  %v601_v31 = vrot.slane %v12540_v16, 1 }
  0x6b   : > { %v12558_v1 = vsel %vm487_vm2, %v594_v19, %v596_v43  ;;  %v12572_v19 = vld [vmem:[%s11874_s16 + $0x218] sm:$0x3] }
  0x6c   : > { %9929 = vmatmul.mubr.msk.f32.gmra.mrb[42].mxu1 %vm614_vm1, %v12510_v56  ;;  %15585 = vst [vmem:[#allocation76_spill] sm:$0xff] %v12558_v1  ;;  %v12581_v50 = vsel %vm487_vm2, %v596_v43, %v598_v26  ;;  %v1568_v56 = vrot.slane %v12170_v15, 2  ;;  %v1570_v26 = vrot.slane %v12175_v40, 2 }
  0x6d   : > { %10059 = vmatmul.mubr.msk.f32.gmra.mrb[18].mxu0 %vm614_vm1, %v12523_v10  ;;  %9931 = vmatprep.mubr.msk.f32.mxu1 %vm614_vm1, %v12526_v52  ;;  %v600_v10 = vrot.slane %v12537_v32, 1  ;;  %v1565_v52 = vrot.slane %v12147_v54, 2  ;;  %15587 = vst [vmem:[#allocation78_spill] sm:$0xff] %v12581_v50  ;;  %v12595_v54 = vld [vmem:[%s11874_s16 + $0x220] sm:$0xff] }
  0x6e   : > { %10061 = vmatprep.mubr.msk.f32.mxu0 %vm614_vm1, %v12533_v11  ;;  %v1566_v11 = vrot.slane %v12150_v57, 2  ;;  %v12588_v57 = vsel %vm1508_vm3, %v1561_v27, %v1563_v49  ;;  %v12614_v27 = vsel %vm487_vm2, %v601_v31, %v603_v30 }
  0x6f   : > { %15588 = vst [vmem:[#allocation79_spill] sm:$0xff] %v12588_v57  ;;  %15591 = vst [vmem:[#allocation82_spill] sm:$0xff] %v12614_v27 }
  0x70   : > { %9932 = vmatmul.mubr.msk.f32.gmra.mrb[44].mxu1 %vm614_vm1, %v12549_v2  ;;  %v12591_v2 = vsel %vm487_vm2, %v600_v10, %v601_v31  ;;  %v12601_v43 = vsel %vm1508_vm3, %v1565_v52, %v1566_v11  ;;  %v12617_v10 = vsel %vm1508_vm3, %v1566_v11, %v1568_v56  ;;  %v607_v52 = vrot.slane %v12595_v54, 1 }
  0x71   : > { %10062 = vmatmul.mubr.msk.f32.gmra.mrb[20].mxu0 %vm614_vm1, %v12552_v12  ;;  %9934 = vmatprep.mubr.msk.f32.mxu1 %vm614_vm1, %v12558_v1  ;;  %15589 = vst [vmem:[#allocation80_spill] sm:$0xff] %v12591_v2  ;;  %v605_v12 = vrot.slane %v12572_v19, 1  ;;  %v12598_v1 = vld [vmem:[%s11874_s16 + $0x228] sm:$0xff]  ;;  %15590 = vst [vmem:[#allocation81_spill] sm:$0xff] %v12601_v43  ;;  %v610_v31 = vrot.slane %v12605_v35, 1  ;;  %v12633_v11 = vsel %vm1508_vm3, %v1568_v56, %v1570_v26 }
  0x72   : > { %10064 = vmatprep.mubr.msk.f32.mxu0 %vm614_vm1, %v12567_v13  ;;  %15592 = vst [vmem:[#allocation83_spill] sm:$0xff] %v12617_v10  ;;  %v608_v40 = vrot.slane %v12598_v1, 1  ;;  %v1573_v13 = vrot.slane %v12198_v25, 2  ;;  %15594 = vst [vmem:[#allocation85_spill] sm:$0xff] %v12633_v11 }
  0x73   : > { %v12624_v49 = vsel %vm487_vm2, %v603_v30, %v605_v12 }
  0x74   : > { %9935 = vmatmul.mubr.msk.f32.gmra.mrb[46].mxu1 %vm614_vm1, %v12581_v50  ;;  %15593 = vst [vmem:[#allocation84_spill] sm:$0xff] %v12624_v49  ;;  %v1575_v50 = vrot.slane %v12203_v0, 2  ;;  %v12643_v12 = vsel %vm487_vm2, %v607_v52, %v608_v40  ;;  %v12652_v26 = vsel %vm487_vm2, %v608_v40, %v610_v31  ;;  %v1580_v52 = vrot.slane %v12233_v55, 2 }
  0x75   : > { %10065 = vmatmul.mubr.msk.f32.gmra.mrb[22].mxu0 %vm614_vm1, %v12588_v57  ;;  %9937 = vmatprep.mubr.msk.f32.mxu1 %vm614_vm1, %v12591_v2  ;;  %v1572_v57 = vrot.slane %v12195_v39, 2  ;;  %v12630_v2 = vld [vmem:[%s11874_s16 + $0x238] sm:$0x3]  ;;  %15595 = vst [vmem:[#allocation86_spill] sm:$0xff] %v12643_v12  ;;  %15597 = vst [vmem:[#allocation88_spill] sm:$0xff] %v12652_v26 }
  0x76   : > { %10067 = vmatprep.mubr.msk.f32.mxu0 %vm614_vm1, %v12601_v43  ;;  %v612_v30 = vrot.slane %v12630_v2, 1  ;;  %v1577_v43 = vrot.slane %v12225_v63, 2 }
  0x77   : > { %v12649_v56 = vsel %vm1508_vm3, %v1572_v57, %v1573_v13 }
  0x78   : > { %9938 = vmatmul.mubr.msk.f32.gmra.mrb[48].mxu1 %vm614_vm1, %v12614_v27  ;;  %15596 = vst [vmem:[#allocation87_spill] sm:$0xff] %v12649_v56  ;;  %v12667_v57 = vsel %vm487_vm2, %v610_v31, %v612_v30  ;;  %v12672_v63 = vsel %vm1508_vm3, %v1575_v50, %v1577_v43  ;;  %v1586_v43 = vrot.slane %v12295_v48, 2  ;;  %v1589_v31 = vrot.slane %v12305_v46, 2 }
  0x79   : > { %10068 = vmatmul.mubr.msk.f32.gmra.mrb[24].mxu0 %vm614_vm1, %v12617_v10  ;;  %9940 = vmatprep.mubr.msk.f32.mxu1 %vm614_vm1, %v12624_v49  ;;  %v12656_v10 = vsel %vm1508_vm3, %v1573_v13, %v1575_v50  ;;  %v1579_v49 = vrot.slane %v12230_v60, 2  ;;  %15599 = vst [vmem:[#allocation90_spill] sm:$0xff] %v12667_v57  ;;  %v1582_v13 = vrot.slane %v12262_v20, 2 }
  0x7a   : > { %10070 = vmatprep.mubr.msk.f32.mxu0 %vm614_vm1, %v12633_v11  ;;  %15598 = vst [vmem:[#allocation89_spill] sm:$0xff] %v12656_v10  ;;  %v1584_v11 = vrot.slane %v12270_v5, 2 }
  0x7b   : > { %v12676_v40 = vsel %vm1508_vm3, %v1579_v49, %v1580_v52  ;;  %v12688_v50 = vsel %vm1508_vm3, %v1580_v52, %v1582_v13  ;;  %v1587_v49 = vrot.slane %v12298_v42, 2 }
  0x7c   : > { %9941 = vmatmul.mubr.msk.f32.gmra.mrb[50].mxu1 %vm614_vm1, %v12643_v12  ;;  %15600 = vst [vmem:[#allocation91_spill] sm:$0xff] %v12676_v40  ;;  %v12693_v5 = vsel %vm1508_vm3, %v1582_v13, %v1584_v11  ;;  %v1591_v11 = vrot.slane %v12330_v28, 2  ;;  %v1593_v13 = vrot.slane %v12337_v41, 2 }
  0x7d   : > { %10071 = vmatmul.mubr.msk.f32.gmra.mrb[30].mxu0 %vm614_vm1, %v12649_v56  ;;  %9943 = vmatprep.mubr.msk.f32.mxu1 %vm614_vm1, %v12652_v26  ;;  %15601 = vst [vmem:[#allocation92_spill] sm:$0xff] %v12693_v5  ;;  %v12705_v30 = vsel %vm1508_vm3, %v1586_v43, %v1587_v49  ;;  %v12709_v52 = vsel %vm1508_vm3, %v1587_v49, %v1589_v31  ;;  %v1596_v43 = vrot.slane %v12354_v3, 2 }
  0x7e   : > { %10073 = vmatprep.mubr.msk.f32.mxu0 %vm614_vm1, %v12656_v10  ;;  %15602 = vst [vmem:[#allocation93_spill] sm:$0xff] %v12705_v30  ;;  %15603 = vst [vmem:[#allocation94_spill] sm:$0xff] %v12709_v52  ;;  %v12722_v28 = vsel %vm1508_vm3, %v1589_v31, %v1591_v11  ;;  %v1600_v11 = vrot.slane %v12395_v14, 2 }
  0x7f   : > { %15604 = vst [vmem:[#allocation95_spill] sm:$0xff] %v12722_v28 }
  0x80   : > { %9944 = vmatmul.mubr.msk.f32.gmra.mrb[52].mxu1 %vm614_vm1, %v12667_v57 }
  0x81   : > { %10074 = vmatmul.mubr.msk.f32.gmra.mrb[32].mxu0 %vm614_vm1, %v12672_v63  ;;  %9987 = vmatprep.mubr.msk.f32.mxu1 %vm614_vm1, %v12170_v15 }
  0x82   : > { %10076 = vmatprep.mubr.msk.f32.mxu0 %vm614_vm1, %v12676_v40  ;;  %v1594_v40 = vrot.slane %v12340_v7, 2 }
  0x84   : > { %9988 = vmatmul.mubr.msk.f32.vlgmr.msra.gmra.mrb[26].mxu1 %vm614_vm1, %v12195_v39  ;;  %v12726_v49 = vsel %vm1508_vm3, %v1593_v13, %v1594_v40  ;;  %v12738_v31 = vsel %vm1508_vm3, %v1594_v40, %v1596_v43  ;;  %v1601_v13 = vrot.slane %v12398_v24, 2 }
  0x85   : > { %10077 = vmatmul.mubr.msk.f32.gmra.mrb[34].mxu0 %vm614_vm1, %v12688_v50  ;;  %9990 = vmatprep.mubr.msk.f32.mxu1 %vm614_vm1, %v12198_v25  ;;  %15605 = vst [vmem:[#allocation96_spill] sm:$0xff] %v12726_v49 }
  0x86   : > { %10079 = vmatprep.mubr.msk.f32.mxu0 %vm614_vm1, %v12693_v5  ;;  %v1598_v5 = vrot.slane %v12372_v47, 2  ;;  %v12755_v40 = vsel %vm1508_vm3, %v1600_v11, %v1601_v13  ;;  %v1610_v11 = vrot.slane %v12456_v53, 2 }
  0x88   : > { %9991 = vmatmul.mubr.msk.f32.gmra.mrb[28].mxu1 %vm614_vm1, %v12203_v0  ;;  %v12743_v47 = vsel %vm1508_vm3, %v1596_v43, %v1598_v5  ;;  %v1605_v5 = vrot.slane %v12430_v18, 2 }
  0x89   : > { %10080 = vmatmul.mubr.msk.f32.gmra.mrb[36].mxu0 %vm614_vm1, %v12705_v30  ;;  %9993 = vmatprep.mubr.msk.f32.mxu1 %vm614_vm1, %v12230_v60  ;;  %15606 = vst [vmem:[#allocation97_spill] sm:$0xff] %v12743_v47 }
  0x8a   : > { %10082 = vmatprep.mubr.msk.f32.mxu0 %vm614_vm1, %v12709_v52  ;;  %v1603_v52 = vrot.slane %v12405_v38, 2 }
  0x8c   : > { %9994 = vmatmul.mubr.msk.f32.gmra.mrb[30].mxu1 %vm614_vm1, %v12233_v55  ;;  %v12759_v43 = vsel %vm1508_vm3, %v1601_v13, %v1603_v52  ;;  %v12772_v18 = vsel %vm1508_vm3, %v1603_v52, %v1605_v5  ;;  %v1615_v5 = vrot.slane %v12498_v59, 2 }
  0x8d   : > { %10083 = vmatmul.mubr.msk.f32.gmra.mrb[38].mxu0 %vm614_vm1, %v12722_v28  ;;  %9996 = vmatprep.mubr.msk.f32.mxu1 %vm614_vm1, %v12262_v20  ;;  %15607 = vst [vmem:[#allocation98_spill] sm:$0xff] %v12759_v43  ;;  %v1608_v28 = vrot.slane %v12440_v51, 2  ;;  %15608 = vst [vmem:[#allocation99_spill] sm:$0xff] %v12772_v18 }
  0x8e   : > { %10085 = vmatprep.mubr.msk.f32.mxu0 %vm614_vm1, %v12726_v49  ;;  %v1607_v49 = vrot.slane %v12437_v58, 2 }
  0x8f   : > { %v12788_v52 = vsel %vm1508_vm3, %v1608_v28, %v1610_v11 }
  0x90   : > { %9997 = vmatmul.mubr.msk.f32.gmra.mrb[32].mxu1 %vm614_vm1, %v12295_v48  ;;  %v12776_v13 = vsel %vm1508_vm3, %v1607_v49, %v1608_v28  ;;  %15610 = vst [vmem:[#allocation101_spill] sm:$0xff] %v12788_v52  ;;  %v1614_v49 = vrot.slane %v12495_v33, 2 }
  0x91   : > { %10086 = vmatmul.mubr.msk.f32.gmra.mrb[40].mxu0 %vm614_vm1, %v12738_v31  ;;  %9999 = vmatprep.mubr.msk.f32.mxu1 %vm614_vm1, %v12298_v42  ;;  %15609 = vst [vmem:[#allocation100_spill] sm:$0xff] %v12776_v13 }
  0x92   : > { %10088 = vmatprep.mubr.msk.f32.mxu0 %vm614_vm1, %v12743_v47  ;;  %v1612_v47 = vrot.slane %v12472_v4, 2  ;;  %v12805_v28 = vsel %vm1508_vm3, %v1614_v49, %v1615_v5  ;;  %v1624_v49 = vrot.slane %v12564_v62, 2 }
  0x93   : > { %15612 = vst [vmem:[#allocation103_spill] sm:$0xff] %v12805_v28 }
  0x94   : > { %10000 = vmatmul.mubr.msk.f32.gmra.mrb[34].mxu1 %vm614_vm1, %v12305_v46  ;;  %v12793_v4 = vsel %vm1508_vm3, %v1610_v11, %v1612_v47  ;;  %v1619_v47 = vrot.slane %v12530_v6, 2 }
  0x95   : > { %10089 = vmatmul.mubr.msk.f32.gmra.mrb[42].mxu0 %vm614_vm1, %v12755_v40  ;;  %10002 = vmatprep.mubr.msk.f32.mxu1 %vm614_vm1, %v12337_v41  ;;  %15611 = vst [vmem:[#allocation102_spill] sm:$0xff] %v12793_v4 }
  0x96   : > { %10091 = vmatprep.mubr.msk.f32.mxu0 %vm614_vm1, %v12759_v43  ;;  %v1617_v43 = vrot.slane %v12505_v23, 2 }
  0x98   : > { %10003 = vmatmul.mubr.msk.f32.gmra.mrb[36].mxu1 %vm614_vm1, %v12340_v7  ;;  %v12809_v11 = vsel %vm1508_vm3, %v1615_v5, %v1617_v43  ;;  %v12822_v6 = vsel %vm1508_vm3, %v1617_v43, %v1619_v47  ;;  %v1629_v47 = vrot.slane %v12598_v1, 2 }
  0x99   : > { %10092 = vmatmul.mubr.msk.f32.gmra.mrb[44].mxu0 %vm614_vm1, %v12772_v18  ;;  %10005 = vmatprep.mubr.msk.f32.mxu1 %vm614_vm1, %v12354_v3  ;;  %15613 = vst [vmem:[#allocation104_spill] sm:$0xff] %v12809_v11  ;;  %v1622_v18 = vrot.slane %v12540_v16, 2  ;;  %15614 = vst [vmem:[#allocation105_spill] sm:$0xff] %v12822_v6 }
  0x9a   : > { %10094 = vmatprep.mubr.msk.f32.mxu0 %vm614_vm1, %v12776_v13  ;;  %v1621_v13 = vrot.slane %v12537_v32, 2 }
  0x9b   : > { %v12838_v43 = vsel %vm1508_vm3, %v1622_v18, %v1624_v49 }
  0x9c   : > { %10006 = vmatmul.mubr.msk.f32.gmra.mrb[38].mxu1 %vm614_vm1, %v12395_v14  ;;  %v12826_v5 = vsel %vm1508_vm3, %v1621_v13, %v1622_v18  ;;  %15616 = vst [vmem:[#allocation107_spill] sm:$0xff] %v12838_v43  ;;  %v1628_v13 = vrot.slane %v12595_v54, 2 }
  0x9d   : > { %10095 = vmatmul.mubr.msk.f32.gmra.mrb[46].mxu0 %vm614_vm1, %v12788_v52  ;;  %10008 = vmatprep.mubr.msk.f32.mxu1 %vm614_vm1, %v12398_v24  ;;  %15615 = vst [vmem:[#allocation106_spill] sm:$0xff] %v12826_v5 }
  0x9e   : > { %10097 = vmatprep.mubr.msk.f32.mxu0 %vm614_vm1, %v12793_v4  ;;  %v1626_v4 = vrot.slane %v12572_v19, 2  ;;  %v12855_v18 = vsel %vm1508_vm3, %v1628_v13, %v1629_v47 }
  0x9f   : > { %15618 = vst [vmem:[#allocation109_spill] sm:$0xff] %v12855_v18 }
  0xa0   : > { %10009 = vmatmul.mubr.msk.f32.gmra.mrb[40].mxu1 %vm614_vm1, %v12405_v38  ;;  %v12843_v19 = vsel %vm1508_vm3, %v1624_v49, %v1626_v4  ;;  %v1633_v4 = vrot.slane %v12630_v2, 2  ;;  %v12885_v2 = vld [vmem:[%s15233_s2 + $0x14] sm:$0xf] }
  0xa1   : > { %10098 = vmatmul.mubr.msk.f32.gmra.mrb[48].mxu0 %vm614_vm1, %v12805_v28  ;;  %10011 = vmatprep.mubr.msk.f32.mxu1 %vm614_vm1, %v12437_v58  ;;  %15617 = vst [vmem:[#allocation108_spill] sm:$0xff] %v12843_v19 }
  0xa2   : > { %10100 = vmatprep.mubr.msk.f32.mxu0 %vm614_vm1, %v12809_v11  ;;  %v1631_v11 = vrot.slane %v12605_v35, 2 }
  0xa4   : > { %10012 = vmatmul.mubr.msk.f32.gmra.mrb[42].mxu1 %vm614_vm1, %v12440_v51  ;;  %v12859_v49 = vsel %vm1508_vm3, %v1629_v47, %v1631_v11  ;;  %v12870_v13 = vsel %vm1508_vm3, %v1631_v11, %v1633_v4 }
  0xa5   : > { %10101 = vmatmul.mubr.msk.f32.gmra.mrb[50].mxu0 %vm614_vm1, %v12822_v6  ;;  %10014 = vmatprep.mubr.msk.f32.mxu1 %vm614_vm1, %v12456_v53 }
  0xa6   : > { %10103 = vmatprep.mubr.msk.f32.mxu0 %vm614_vm1, %v12826_v5 }
  0xa8   : > { %10015 = vmatmul.mubr.msk.f32.gmra.mrb[44].mxu1 %vm614_vm1, %v12495_v33 }
  0xa9   : > { %10104 = vmatmul.mubr.msk.f32.gmra.mrb[52].mxu0 %vm614_vm1, %v12838_v43  ;;  %10017 = vmatprep.mubr.msk.f32.mxu1 %vm614_vm1, %v12498_v59 }
  0xaa   : > { %10106 = vmatprep.mubr.msk.f32.mxu0 %vm614_vm1, %v12843_v19 }
  0xac   : > { %10018 = vmatmul.mubr.msk.f32.gmra.mrb[46].mxu1 %vm614_vm1, %v12505_v23 }
  0xad   : > { %10107 = vmatmul.mubr.msk.f32.gmra.mrb[54].mxu0 %vm614_vm1, %v12855_v18  ;;  %10020 = vmatprep.mubr.msk.f32.mxu1 %vm614_vm1, %v12537_v32 }
  0xae   : > { %10109 = vmatprep.mubr.msk.f32.mxu0 %vm614_vm1, %v12859_v49 }
  0xb0   : > { %10021 = vmatmul.mubr.msk.f32.gmra.mrb[48].mxu1 %vm614_vm1, %v12540_v16 }
  0xb1   : > { %10110 = vmatmul.mubr.msk.f32.gmra.mrb[56].mxu0 %vm614_vm1, %v12870_v13  ;;  %10023 = vmatprep.mubr.msk.f32.mxu1 %vm614_vm1, %v12564_v62 }
  0xb2   : > { %10114 = vmatprep.mubr.msk.f32.mxu0 %vm614_vm1, %v11890_v8  ;;  %v15619_v8 = vld [vmem:[#allocation10_spill] sm:$0xff] }
  0xb4   : > { %10024 = vmatmul.mubr.msk.f32.gmra.mrb[54].mxu1 %vm614_vm1, %v12595_v54 }
  0xb5   : > { %10115 = vmatmul.mubr.msk.f32.vlgmr.msra.gmra.mrb[58].mxu0 %vm614_vm1, %v11893_v9  ;;  %10026 = vmatprep.mubr.msk.f32.mxu1 %vm614_vm1, %v12598_v1  ;;  %v15620_v9 = vld [vmem:[#allocation13_spill] sm:$0xff] }
  0xb6   : > { %10196 = vmatpush3.msk.msra.mxu0 %vm723_vm0, %v12240_v61  ;;  %10117 = vmatprep.mubr.msk.f32.mxu0 %vm614_vm1, %v11914_v17  ;;  %v15621_v17 = vld [vmem:[#allocation14_spill] sm:$0xff]  ;;  %v15630_v61 = vld [vmem:[#allocation31_spill] sm:$0xff] }
  0xb7   : > { %10278 = vmatprep.subr.msk.mxu0 %vm723_vm0, %v12885_v2 }
  0xb8   : > { %10027 = vmatmul.mubr.msk.f32.gmra.mrb[56].mxu1 %vm614_vm1, %v12605_v35 }
  0xb9   : > { %10118 = vmatmul.mubr.msk.f32.gmra.mrb[60].mxu0 %vm614_vm1, %v11923_v21  ;;  %v15622_v21 = vld [vmem:[#allocation15_spill] sm:$0xff] }
  0xba   : > { %10120 = vmatprep.mubr.msk.f32.mxu0 %vm614_vm1, %v11926_v22  ;;  %v15623_v22 = vld [vmem:[#allocation18_spill] sm:$0xff] }
  0xbd   : > { %10121 = vmatmul.mubr.msk.f32.gmra.mrb[4].mxu0 %vm614_vm1, %v11947_v29  ;;  %v15624_v29 = vld [vmem:[#allocation19_spill] sm:$0xff] }
  0xbe   : > { %10123 = vmatprep.mubr.msk.f32.mxu0 %vm614_vm1, %v11969_v34  ;;  %v15625_v34 = vld [vmem:[#allocation22_spill] sm:$0xff] }
  0xc1   : > { %10124 = vmatmul.mubr.msk.f32.gmra.mrb[6].mxu0 %vm614_vm1, %v11973_v36  ;;  %v15626_v36 = vld [vmem:[#allocation25_spill] sm:$0xff] }
  0xc2   : > { %10126 = vmatprep.mubr.msk.f32.mxu0 %vm614_vm1, %v11976_v37  ;;  %v15627_v37 = vld [vmem:[#allocation26_spill] sm:$0xff] }
  0xc5   : > { %10127 = vmatmul.mubr.msk.f32.gmra.mrb[8].mxu0 %vm614_vm1, %v11999_v44  ;;  %v15628_v44 = vld [vmem:[#allocation27_spill] sm:$0xff] }
  0xc6   : > { %10129 = vmatprep.mubr.msk.f32.mxu0 %vm614_vm1, %v12002_v45  ;;  %v15629_v45 = vld [vmem:[#allocation30_spill] sm:$0xff] }
  0xc9   : > { %10130 = vmatmul.mubr.msk.f32.gmra.mrb[10].mxu0 %vm614_vm1, %v15619_v8 }
  0xca   : > { %10132 = vmatprep.mubr.msk.f32.mxu0 %vm614_vm1, %v15620_v9 }
  0xcd   : > { %10133 = vmatmul.mubr.msk.f32.gmra.mrb[12].mxu0 %vm614_vm1, %v15621_v17  ;;  %v13032_v17 = vld [vmem:[%s11874_s16 + $0x240] sm:$0xff] }
  0xce   : > { %10135 = vmatprep.mubr.msk.f32.mxu0 %vm614_vm1, %v15622_v21  ;;  %v13035_v21 = vld [vmem:[%s11874_s16 + $0x248] sm:$0xff] }
  0xd1   : > { %10136 = vmatmul.mubr.msk.f32.gmra.mrb[14].mxu0 %vm614_vm1, %v15623_v22 }
  0xd2   : > { %10138 = vmatprep.mubr.msk.f32.mxu0 %vm614_vm1, %v15624_v29 }
  0xd5   : > { %10139 = vmatmul.mubr.msk.f32.gmra.mrb[16].mxu0 %vm614_vm1, %v15625_v34  ;;  %v13046_v34 = vld [vmem:[%s11874_s16 + $0x250] sm:$0xff] }
  0xd6   : > { %10141 = vmatprep.mubr.msk.f32.mxu0 %vm614_vm1, %v15626_v36 }
  0xd9   : > { %10142 = vmatmul.mubr.msk.f32.gmra.mrb[18].mxu0 %vm614_vm1, %v15627_v37 }
  0xda   : > { %10144 = vmatprep.mubr.msk.f32.mxu0 %vm614_vm1, %v15628_v44 }
  0xdd   : > { %10145 = vmatmul.mubr.msk.f32.gmra.mrb[20].mxu0 %vm614_vm1, %v15629_v45 }
  0xde   : > { %10147 = vmatprep.mubr.msk.f32.mxu0 %vm614_vm1, %v15630_v61  ;;  %v15653_v61 = vld [vmem:[#allocation2_spill] sm:$0xff] }
  0xe1   : > { %10148 = vmatmul.mubr.msk.f32.gmra.mrb[22].mxu0 %vm614_vm1, %v12170_v15 }
  0xe2   : > { %10150 = vmatprep.mubr.msk.f32.mxu0 %vm614_vm1, %v12195_v39 }
  0xe5   : > { %10151 = vmatmul.mubr.msk.f32.gmra.mrb[24].mxu0 %vm614_vm1, %v12198_v25 }
  0xe6   : > { %10153 = vmatprep.mubr.msk.f32.mxu0 %vm614_vm1, %v12203_v0 }
  0xe8   : > { %v9950_v11 = vpop.f32.mrb[0].mxu0 }
  0xe9   : > { %v1239_v47 = vpop.f32.mrb[1].mxu0  ;;  %10154 = vmatmul.mubr.msk.f32.gmra.mrb[30].mxu0 %vm614_vm1, %v12230_v60 }
  0xea   : > { %10156 = vmatprep.mubr.msk.f32.mxu0 %vm614_vm1, %v12233_v55  ;;  %v13059_v47 = vld [vmem:[%s15233_s2 + $0x18] sm:$0xf] }
  0xeb   : > { %v9867_v4 = vpop.f32.mrb[0].mxu1 }
  0xec   : > { %v9953_v8 = vpop.f32.mrb[2].mxu0  ;;  %v793_v15 = vpop.f32.mrb[1].mxu1 }
  0xed   : > { %v1249_v9 = vpop.f32.mrb[3].mxu0  ;;  %10157 = vmatmul.mubr.msk.f32.gmra.mrb[32].mxu0 %vm614_vm1, %v12262_v20  ;;  %v15654_v15 = vld [vmem:[#allocation3_spill] sm:$0xff] }
  0xee   : > { %10159 = vmatprep.mubr.msk.f32.mxu0 %vm614_vm1, %v12295_v48  ;;  %v15655_v9 = vld [vmem:[#allocation4_spill] sm:$0xff] }
  0xef   : > { %v9870_v25 = vpop.f32.mrb[2].mxu1 }
  0xf0   : > { %v1255_v39 = vadd.f32 %v9953_v8, %v9870_v25  ;;  %v803_v0 = vpop.f32.mrb[3].mxu1  ;;  %v15656_v25 = vld [vmem:[#allocation5_spill] sm:$0xff] }
  0xf1   : > { %10160 = vmatmul.mubr.msk.f32.gmra.mrb[34].mxu0 %vm614_vm1, %v12298_v42  ;;  %v15657_v0 = vld [vmem:[#allocation6_spill] sm:$0xff] }
  0xf2   : > { %10162 = vmatprep.mubr.msk.f32.mxu0 %vm614_vm1, %v12305_v46 }
  0xf3   : > { %v12959_v55 = vpop.f32.mrb[4].mxu1 }
  0xf4   : > { %15631 = vst [vmem:[#allocation10_spill] sm:$0xff] %v12959_v55  ;;  %v12961_v60 = vpop.f32.mrb[5].mxu1  ;;  %v15685_v55 = vld [vmem:[#allocation50_spill] sm:$0xff] }
  0xf5   : > { %15632 = vst [vmem:[#allocation13_spill] sm:$0xff] %v12961_v60  ;;  %10163 = vmatmul.mubr.msk.f32.gmra.mrb[36].mxu0 %vm614_vm1, %v12337_v41 }
  0xf6   : > { %10165 = vmatprep.mubr.msk.f32.mxu0 %vm614_vm1, %v12340_v7 }
  0xf7   : > { %v12967_v48 = vpop.f32.mrb[6].mxu1 }
  0xf8   : > { %15633 = vst [vmem:[#allocation14_spill] sm:$0xff] %v12967_v48  ;;  %v12969_v20 = vpop.f32.mrb[7].mxu1 }
  0xf9   : > { %15634 = vst [vmem:[#allocation15_spill] sm:$0xff] %v12969_v20  ;;  %10166 = vmatmul.mubr.msk.f32.gmra.mrb[38].mxu0 %vm614_vm1, %v12354_v3  ;;  %v15681_v20 = vld [vmem:[#allocation46_spill] sm:$0xff] }
  0xfa   : > { %10168 = vmatprep.mubr.msk.f32.mxu0 %vm614_vm1, %v12395_v14 }
  0xfb   : > { %v12975_v46 = vpop.f32.mrb[8].mxu1 }
  0xfc   : > { %15635 = vst [vmem:[#allocation18_spill] sm:$0xff] %v12975_v46  ;;  %v12977_v42 = vpop.f32.mrb[9].mxu1  ;;  %v15680_v46 = vld [vmem:[#allocation44_spill] sm:$0xff] }
  0xfd   : > { %15636 = vst [vmem:[#allocation19_spill] sm:$0xff] %v12977_v42  ;;  %10169 = vmatmul.mubr.msk.f32.gmra.mrb[40].mxu0 %vm614_vm1, %v12398_v24 }
  0xfe   : > { %10171 = vmatprep.mubr.msk.f32.mxu0 %vm614_vm1, %v12405_v38 }
  0xff   : > { %v12983_v41 = vpop.f32.mrb[10].mxu1 }
 0x100   : > { %15637 = vst [vmem:[#allocation22_spill] sm:$0xff] %v12983_v41  ;;  %v12985_v7 = vpop.f32.mrb[11].mxu1 }
 0x101   : > { %15638 = vst [vmem:[#allocation25_spill] sm:$0xff] %v12985_v7  ;;  %10172 = vmatmul.mubr.msk.f32.gmra.mrb[42].mxu0 %vm614_vm1, %v12437_v58  ;;  %v15679_v7 = vld [vmem:[#allocation42_spill] sm:$0xff] }
 0x102   : > { %10174 = vmatprep.mubr.msk.f32.mxu0 %vm614_vm1, %v12440_v51 }
 0x103   : > { %v12991_v14 = vpop.f32.mrb[12].mxu1 }
 0x104   : > { %15639 = vst [vmem:[#allocation26_spill] sm:$0xff] %v12991_v14  ;;  %v12993_v3 = vpop.f32.mrb[13].mxu1  ;;  %v15678_v14 = vld [vmem:[#allocation40_spill] sm:$0xff] }
 0x105   : > { %15640 = vst [vmem:[#allocation27_spill] sm:$0xff] %v12993_v3  ;;  %10175 = vmatmul.mubr.msk.f32.gmra.mrb[44].mxu0 %vm614_vm1, %v12456_v53 }
 0x106   : > { %10177 = vmatprep.mubr.msk.f32.mxu0 %vm614_vm1, %v12495_v33 }
 0x107   : > { %v12999_v24 = vpop.f32.mrb[14].mxu1 }
 0x108   : > { %15641 = vst [vmem:[#allocation30_spill] sm:$0xff] %v12999_v24  ;;  %v13001_v38 = vpop.f32.mrb[15].mxu1 }
 0x109   : > { %15642 = vst [vmem:[#allocation31_spill] sm:$0xff] %v13001_v38  ;;  %10178 = vmatmul.mubr.msk.f32.gmra.mrb[46].mxu0 %vm614_vm1, %v12498_v59  ;;  %v15677_v38 = vld [vmem:[#allocation38_spill] sm:$0xff] }
 0x10a   : > { %10180 = vmatprep.mubr.msk.f32.mxu0 %vm614_vm1, %v12505_v23 }
 0x10b   : > { %v13007_v51 = vpop.f32.mrb[16].mxu1 }
 0x10c   : > { %15643 = vst [vmem:[#allocation110_spill] sm:$0xff] %v13007_v51  ;;  %v13009_v58 = vpop.f32.mrb[17].mxu1  ;;  %v15676_v51 = vld [vmem:[#allocation37_spill] sm:$0xff] }
 0x10d   : > { %15644 = vst [vmem:[#allocation111_spill] sm:$0xff] %v13009_v58  ;;  %10181 = vmatmul.mubr.msk.f32.gmra.mrb[48].mxu0 %vm614_vm1, %v12537_v32  ;;  %v15675_v58 = vld [vmem:[#allocation36_spill] sm:$0xff] }
 0x10e   : > { %10183 = vmatprep.mubr.msk.f32.mxu0 %vm614_vm1, %v12540_v16 }
 0x10f   : > { %v13015_v33 = vpop.f32.mrb[18].mxu1 }
 0x110   : > { %15645 = vst [vmem:[#allocation112_spill] sm:$0xff] %v13015_v33  ;;  %v13017_v53 = vpop.f32.mrb[19].mxu1  ;;  %v15674_v33 = vld [vmem:[#allocation35_spill] sm:$0xff] }
 0x111   : > { %15646 = vst [vmem:[#allocation113_spill] sm:$0xff] %v13017_v53  ;;  %10184 = vmatmul.mubr.msk.f32.gmra.mrb[50].mxu0 %vm614_vm1, %v12564_v62  ;;  %v15673_v53 = vld [vmem:[#allocation34_spill] sm:$0xff] }
 0x112   : > { %10186 = vmatprep.mubr.msk.f32.mxu0 %vm614_vm1, %v12595_v54 }
 0x113   : > { %v13023_v59 = vpop.f32.mrb[20].mxu1 }
 0x114   : > { %15647 = vst [vmem:[#allocation114_spill] sm:$0xff] %v13023_v59  ;;  %v13025_v23 = vpop.f32.mrb[21].mxu1  ;;  %v15672_v59 = vld [vmem:[#allocation33_spill] sm:$0xff] }
 0x115   : > { %15648 = vst [vmem:[#allocation115_spill] sm:$0xff] %v13025_v23  ;;  %10187 = vmatmul.mubr.msk.f32.gmra.mrb[52].mxu0 %vm614_vm1, %v12598_v1  ;;  %v15671_v23 = vld [vmem:[#allocation32_spill] sm:$0xff] }
 0x116   : > { %10189 = vmatprep.mubr.msk.f32.mxu0 %vm614_vm1, %v12605_v35 }
 0x117   : > { %v13037_v22 = vpop.f32.mrb[22].mxu1 }
 0x118   : > { %15649 = vst [vmem:[#allocation116_spill] sm:$0xff] %v13037_v22  ;;  %v13039_v29 = vpop.f32.mrb[23].mxu1  ;;  %v15670_v22 = vld [vmem:[#allocation29_spill] sm:$0xff] }
 0x119   : > { %15650 = vst [vmem:[#allocation117_spill] sm:$0xff] %v13039_v29  ;;  %10190 = vmatmul.mubr.msk.f32.gmra.mrb[62].mxu0 %vm614_vm1, %v13032_v17  ;;  %v15669_v29 = vld [vmem:[#allocation28_spill] sm:$0xff] }
 0x11a   : > { %10192 = vmatprep.mubr.msk.f32.mxu0 %vm614_vm1, %v13035_v21 }
 0x11b   : > { %v13048_v36 = vpop.f32.mrb[24].mxu1 }
 0x11c   : > { %15651 = vst [vmem:[#allocation118_spill] sm:$0xff] %v13048_v36  ;;  %v10033_v37 = vpop.f32.mrb[26].mxu0  ;;  %v13050_v44 = vpop.f32.mrb[25].mxu1  ;;  %v15668_v36 = vld [vmem:[#allocation24_spill] sm:$0xff] }
 0x11d   : > { %15652 = vst [vmem:[#allocation119_spill] sm:$0xff] %v13050_v44  ;;  %v1812_v45 = vpop.f32.mrb[27].mxu0  ;;  %10193 = vmatmul.mubr.msk.f32.gmra.mrb[64].mxu0 %vm614_vm1, %v13046_v34  ;;  %v15659_v37 = vld [vmem:[#allocation8_spill] sm:$0xff]  ;;  %v15667_v44 = vld [vmem:[#allocation23_spill] sm:$0xff] }
 0x11e   : > { %10197 = vmatprep.mubr.msk.f32.mxu0 %vm614_vm1, %v15653_v61  ;;  %v15660_v45 = vld [vmem:[#allocation9_spill] sm:$0xff]  ;;  %v15662_v61 = vld [vmem:[#allocation12_spill] sm:$0xff] }
 0x120   : > { %v10036_v11 = vpop.f32.mrb[28].mxu0 }
 0x121   : > { %v13061_v4 = vadd.f32 %v10036_v11, %v1255_v39  ;;  %v1822_v8 = vpop.f32.mrb[29].mxu0  ;;  %10198 = vmatmul.mubr.msk.f32.vlgmr.msra.gmra.mrb[66].mxu0 %vm614_vm1, %v15654_v15  ;;  %v15658_v39 = vld [vmem:[#allocation7_spill] sm:$0xff]  ;;  %v15663_v11 = vld [vmem:[#allocation16_spill] sm:$0xff] }
 0x122   : > { %10279 = vmatpush3.msk.msra.mxu0 %vm723_vm0, %v12885_v2  ;;  %10200 = vmatprep.mubr.msk.f32.mxu0 %vm614_vm1, %v15655_v9  ;;  %v15661_v2 = vld [vmem:[#allocation11_spill] sm:$0xff]  ;;  %v15664_v8 = vld [vmem:[#allocation17_spill] sm:$0xff]  ;;  %v15665_v15 = vld [vmem:[#allocation20_spill] sm:$0xff] }
 0x123   : > { %10361 = vmatprep.subr.msk.mxu0 %vm723_vm0, %v13059_v47  ;;  %v15666_v9 = vld [vmem:[#allocation21_spill] sm:$0xff] }
 0x125   : > { %10201 = vmatmul.mubr.msk.f32.gmra.mrb[68].mxu0 %vm614_vm1, %v15656_v25 }
 0x126   : > { %10203 = vmatprep.mubr.msk.f32.mxu0 %vm614_vm1, %v15657_v0 }
 0x129   : > { %10204 = vmatmul.mubr.msk.f32.gmra.mrb[4].mxu0 %vm614_vm1, %v15658_v39 }
 0x12a   : > { %10206 = vmatprep.mubr.msk.f32.mxu0 %vm614_vm1, %v15659_v37 }
 0x12d   : > { %10207 = vmatmul.mubr.msk.f32.gmra.mrb[6].mxu0 %vm614_vm1, %v15660_v45 }
 0x12e   : > { %10209 = vmatprep.mubr.msk.f32.mxu0 %vm614_vm1, %v15661_v2 }
 0x131   : > { %10210 = vmatmul.mubr.msk.f32.gmra.mrb[8].mxu0 %vm614_vm1, %v15662_v61 }
 0x132   : > { %10212 = vmatprep.mubr.msk.f32.mxu0 %vm614_vm1, %v15663_v11 }
 0x135   : > { %10213 = vmatmul.mubr.msk.f32.gmra.mrb[10].mxu0 %vm614_vm1, %v15664_v8 }
 0x136   : > { %10215 = vmatprep.mubr.msk.f32.mxu0 %vm614_vm1, %v15665_v15 }
 0x139   : > { %10216 = vmatmul.mubr.msk.f32.gmra.mrb[12].mxu0 %vm614_vm1, %v15666_v9 }
 0x13a   : > { %10218 = vmatprep.mubr.msk.f32.mxu0 %vm614_vm1, %v15667_v44 }
 0x13d   : > { %10219 = vmatmul.mubr.msk.f32.gmra.mrb[14].mxu0 %vm614_vm1, %v15668_v36 }
 0x13e   : > { %10221 = vmatprep.mubr.msk.f32.mxu0 %vm614_vm1, %v15669_v29 }
 0x141   : > { %10222 = vmatmul.mubr.msk.f32.gmra.mrb[16].mxu0 %vm614_vm1, %v15670_v22 }
 0x142   : > { %10224 = vmatprep.mubr.msk.f32.mxu0 %vm614_vm1, %v15671_v23 }
 0x145   : > { %10225 = vmatmul.mubr.msk.f32.gmra.mrb[18].mxu0 %vm614_vm1, %v15672_v59 }
 0x146   : > { %10227 = vmatprep.mubr.msk.f32.mxu0 %vm614_vm1, %v15673_v53 }
 0x149   : > { %10228 = vmatmul.mubr.msk.f32.gmra.mrb[20].mxu0 %vm614_vm1, %v15674_v33 }
 0x14a   : > { %10230 = vmatprep.mubr.msk.f32.mxu0 %vm614_vm1, %v15675_v58 }
 0x14d   : > { %10231 = vmatmul.mubr.msk.f32.gmra.mrb[22].mxu0 %vm614_vm1, %v15676_v51 }
 0x14e   : > { %10233 = vmatprep.mubr.msk.f32.mxu0 %vm614_vm1, %v15677_v38 }
 0x14f   : > { %v9942_v24 = vpop.f32.mrb[50].mxu1 }
 0x150   : > { %v13115_v3 = vpop.f32.mrb[51].mxu1  ;;  %v15684_v24 = vld [vmem:[#allocation48_spill] sm:$0xff] }
 0x151   : > { %10234 = vmatmul.mubr.msk.f32.gmra.mrb[24].mxu0 %vm614_vm1, %v15678_v14 }
 0x152   : > { %10236 = vmatprep.mubr.msk.f32.mxu0 %vm614_vm1, %v15679_v7 }
 0x153   : > { %v9945_v41 = vpop.f32.mrb[52].mxu1 }
 0x154   : > { %v1053_v42 = vpop.f32.mrb[53].mxu1 }
 0x155   : > { %10237 = vmatmul.mubr.msk.f32.gmra.mrb[30].mxu0 %vm614_vm1, %v15680_v46  ;;  %v15688_v42 = vld [vmem:[#allocation52_spill] sm:$0xff]  ;;  %v15689_v46 = vld [vmem:[#allocation54_spill] sm:$0xff] }
 0x156   : > { %10239 = vmatprep.mubr.msk.f32.mxu0 %vm614_vm1, %v15681_v20 }
 0x157   : > { %v13125_v48 = vpop.f32.mrb[26].mxu1 }
 0x158   : > { %15682 = vst [vmem:[#allocation2_spill] sm:$0xff] %v13125_v48  ;;  %v13127_v60 = vpop.f32.mrb[27].mxu1 }
 0x159   : > { %15683 = vst [vmem:[#allocation3_spill] sm:$0xff] %v13127_v60  ;;  %10240 = vmatmul.mubr.msk.f32.gmra.mrb[32].mxu0 %vm614_vm1, %v15684_v24  ;;  %v15692_v60 = vld [vmem:[#allocation56_spill] sm:$0xff]  ;;  %v15693_v24 = vld [vmem:[#allocation58_spill] sm:$0xff] }
 0x15a   : > { %10242 = vmatprep.mubr.msk.f32.mxu0 %vm614_vm1, %v15685_v55 }
 0x15b   : > { %v13133_v14 = vpop.f32.mrb[28].mxu1 }
 0x15c   : > { %15686 = vst [vmem:[#allocation4_spill] sm:$0xff] %v13133_v14  ;;  %v13135_v41 = vpop.f32.mrb[29].mxu1 }
 0x15d   : > { %15687 = vst [vmem:[#allocation5_spill] sm:$0xff] %v13135_v41  ;;  %10243 = vmatmul.mubr.msk.f32.gmra.mrb[34].mxu0 %vm614_vm1, %v15688_v42  ;;  %v15696_v41 = vld [vmem:[#allocation60_spill] sm:$0xff]  ;;  %v15697_v42 = vld [vmem:[#allocation62_spill] sm:$0xff] }
 0x15e   : > { %10245 = vmatprep.mubr.msk.f32.mxu0 %vm614_vm1, %v15689_v46 }
 0x15f   : > { %v13141_v20 = vpop.f32.mrb[30].mxu1 }
 0x160   : > { %15690 = vst [vmem:[#allocation6_spill] sm:$0xff] %v13141_v20  ;;  %v13143_v48 = vpop.f32.mrb[31].mxu1 }
 0x161   : > { %15691 = vst [vmem:[#allocation7_spill] sm:$0xff] %v13143_v48  ;;  %10246 = vmatmul.mubr.msk.f32.gmra.mrb[36].mxu0 %vm614_vm1, %v15692_v60  ;;  %v15700_v48 = vld [vmem:[#allocation64_spill] sm:$0xff]  ;;  %v15701_v60 = vld [vmem:[#allocation66_spill] sm:$0xff] }
 0x162   : > { %10248 = vmatprep.mubr.msk.f32.mxu0 %vm614_vm1, %v15693_v24 }
 0x163   : > { %v13149_v55 = vpop.f32.mrb[32].mxu1 }
 0x164   : > { %15694 = vst [vmem:[#allocation8_spill] sm:$0xff] %v13149_v55  ;;  %v13151_v14 = vpop.f32.mrb[33].mxu1 }
 0x165   : > { %15695 = vst [vmem:[#allocation9_spill] sm:$0xff] %v13151_v14  ;;  %10249 = vmatmul.mubr.msk.f32.gmra.mrb[38].mxu0 %vm614_vm1, %v15696_v41  ;;  %v15704_v14 = vld [vmem:[#allocation68_spill] sm:$0xff]  ;;  %v15705_v41 = vld [vmem:[#allocation70_spill] sm:$0xff] }
 0x166   : > { %10251 = vmatprep.mubr.msk.f32.mxu0 %vm614_vm1, %v15697_v42 }
 0x167   : > { %v13157_v46 = vpop.f32.mrb[34].mxu1 }
 0x168   : > { %15698 = vst [vmem:[#allocation11_spill] sm:$0xff] %v13157_v46  ;;  %v13159_v20 = vpop.f32.mrb[35].mxu1 }
 0x169   : > { %15699 = vst [vmem:[#allocation12_spill] sm:$0xff] %v13159_v20  ;;  %10252 = vmatmul.mubr.msk.f32.gmra.mrb[40].mxu0 %vm614_vm1, %v15700_v48  ;;  %v15708_v20 = vld [vmem:[#allocation72_spill] sm:$0xff]  ;;  %v15709_v48 = vld [vmem:[#allocation74_spill] sm:$0xff] }
 0x16a   : > { %10254 = vmatprep.mubr.msk.f32.mxu0 %vm614_vm1, %v15701_v60 }
 0x16b   : > { %v13165_v24 = vpop.f32.mrb[36].mxu1 }
 0x16c   : > { %15702 = vst [vmem:[#allocation16_spill] sm:$0xff] %v13165_v24  ;;  %v13167_v55 = vpop.f32.mrb[37].mxu1  ;;  %v15712_v24 = vld [vmem:[#allocation76_spill] sm:$0xff] }
 0x16d   : > { %15703 = vst [vmem:[#allocation17_spill] sm:$0xff] %v13167_v55  ;;  %10255 = vmatmul.mubr.msk.f32.gmra.mrb[42].mxu0 %vm614_vm1, %v15704_v14  ;;  %v15713_v14 = vld [vmem:[#allocation78_spill] sm:$0xff] }
 0x16e   : > { %10257 = vmatprep.mubr.msk.f32.mxu0 %vm614_vm1, %v15705_v41  ;;  %v15716_v41 = vld [vmem:[#allocation80_spill] sm:$0xff] }
 0x16f   : > { %v13173_v42 = vpop.f32.mrb[38].mxu1 }
 0x170   : > { %15706 = vst [vmem:[#allocation20_spill] sm:$0xff] %v13173_v42  ;;  %v13175_v46 = vpop.f32.mrb[39].mxu1 }
 0x171   : > { %15707 = vst [vmem:[#allocation21_spill] sm:$0xff] %v13175_v46  ;;  %10258 = vmatmul.mubr.msk.f32.gmra.mrb[44].mxu0 %vm614_vm1, %v15708_v20 }
 0x172   : > { %10260 = vmatprep.mubr.msk.f32.mxu0 %vm614_vm1, %v15709_v48 }
 0x173   : > { %v13181_v60 = vpop.f32.mrb[40].mxu1 }
 0x174   : > { %15710 = vst [vmem:[#allocation23_spill] sm:$0xff] %v13181_v60  ;;  %v13183_v55 = vpop.f32.mrb[41].mxu1 }
 0x175   : > { %15711 = vst [vmem:[#allocation24_spill] sm:$0xff] %v13183_v55  ;;  %10261 = vmatmul.mubr.msk.f32.gmra.mrb[46].mxu0 %vm614_vm1, %v15712_v24  ;;  %v15719_v55 = vld [vmem:[#allocation84_spill] sm:$0xff]  ;;  %v2537_v24 = vrot.slane %v13032_v17, 1 }
 0x176   : > { %10263 = vmatprep.mubr.msk.f32.mxu0 %vm614_vm1, %v15713_v14  ;;  %v2538_v14 = vrot.slane %v13035_v21, 1 }
 0x177   : > { %v13189_v42 = vpop.f32.mrb[42].mxu1 }
 0x178   : > { %15714 = vst [vmem:[#allocation28_spill] sm:$0xff] %v13189_v42  ;;  %v13191_v46 = vpop.f32.mrb[43].mxu1 }
 0x179   : > { %15715 = vst [vmem:[#allocation29_spill] sm:$0xff] %v13191_v46  ;;  %10264 = vmatmul.mubr.msk.f32.gmra.mrb[48].mxu0 %vm614_vm1, %v15716_v41  ;;  %v2540_v46 = vrot.slane %v13046_v34, 1  ;;  %v13211_v41 = vld [vmem:[%s11874_s16 + $0x258] sm:$0x3] }
 0x17a   : > { %10266 = vmatprep.mubr.msk.f32.mxu0 %vm614_vm1, %v12614_v27 }
 0x17b   : > { %v13197_v60 = vpop.f32.mrb[44].mxu1 }
 0x17c   : > { %15717 = vst [vmem:[#allocation32_spill] sm:$0xff] %v13197_v60  ;;  %v13199_v48 = vpop.f32.mrb[45].mxu1 }
 0x17d   : > { %15718 = vst [vmem:[#allocation33_spill] sm:$0xff] %v13199_v48  ;;  %10267 = vmatmul.mubr.msk.f32.gmra.mrb[50].mxu0 %vm614_vm1, %v15719_v55  ;;  %v13220_v55 = vsel %vm487_vm2, %v2537_v24, %v2538_v14 }
 0x17e   : > { %10269 = vmatprep.mubr.msk.f32.mxu0 %vm614_vm1, %v12643_v12  ;;  %15722 = vst [vmem:[#allocation36_spill] sm:$0xff] %v13220_v55  ;;  %v2542_v12 = vrot.slane %v13211_v41, 1 }
 0x17f   : > { %v13208_v42 = vpop.f32.mrb[46].mxu1 }
 0x180   : > { %15720 = vst [vmem:[#allocation34_spill] sm:$0xff] %v13208_v42  ;;  %v10108_v27 = vpop.f32.mrb[54].mxu0  ;;  %v13213_v60 = vpop.f32.mrb[47].mxu1  ;;  %v13226_v42 = vsel %vm487_vm2, %v2538_v14, %v2540_v46  ;;  %v13235_v24 = vsel %vm487_vm2, %v2540_v46, %v2542_v12  ;;  %v13247_v12 = vld [vmem:[%s15233_s2 + $0x1c] sm:$0xf] }
 0x181   : > { %15721 = vst [vmem:[#allocation35_spill] sm:$0xff] %v13213_v60  ;;  %v2062_v48 = vpop.f32.mrb[55].mxu0  ;;  %10270 = vmatmul.mubr.msk.f32.gmra.mrb[52].mxu0 %vm614_vm1, %v12652_v26 }
 0x182   : > { %10272 = vmatprep.mubr.msk.f32.mxu0 %vm614_vm1, %v12667_v57 }
 0x183   : > { %v13223_v20 = vpop.f32.mrb[48].mxu1 }
 0x184   : > { %15723 = vst [vmem:[#allocation37_spill] sm:$0xff] %v13223_v20  ;;  %v10111_v27 = vpop.f32.mrb[56].mxu0  ;;  %v13228_v7 = vpop.f32.mrb[49].mxu1 }
 0x185   : > { %15724 = vst [vmem:[#allocation120_spill] sm:$0xff] %v13228_v7  ;;  %v2072_v60 = vpop.f32.mrb[57].mxu0  ;;  %10273 = vmatmul.mubr.msk.f32.gmra.mrb[70].mxu0 %vm614_vm1, %v13220_v55  ;;  %v15725_v27 = vld [vmem:[#allocation39_spill] sm:$0xff] }
 0x186   : > { %10275 = vmatprep.mubr.msk.f32.mxu0 %vm614_vm1, %v13226_v42 }
 0x187   : > { %v10025_v57 = vpop.f32.mrb[54].mxu1 }
 0x188   : > { %v1489_v26 = vpop.f32.mrb[55].mxu1  ;;  %v10116_v38 = vpop.f32.mrb[58].mxu0 }
 0x189   : > { %v1490_v20 = vadd.f32 %v1489_v26, %v13115_v3  ;;  %v2213_v14 = vpop.f32.mrb[59].mxu0  ;;  %10276 = vmatmul.mubr.msk.f32.gmra.mrb[72].mxu0 %vm614_vm1, %v13235_v24  ;;  %v15726_v3 = vld [vmem:[#allocation41_spill] sm:$0xff]  ;;  %v15731_v38 = vld [vmem:[#allocation51_spill] sm:$0xff] }
 0x18a   : > { %10280 = vmatprep.mubr.msk.f32.mxu0 %vm614_vm1, %v15725_v27  ;;  %v15734_v14 = vld [vmem:[#allocation57_spill] sm:$0xff]  ;;  %v15735_v27 = vld [vmem:[#allocation59_spill] sm:$0xff] }
 0x18b   : > { %v13242_v60 = vadd.f32 %v2062_v48, %v1490_v20  ;;  %v10028_v7 = vpop.f32.mrb[56].mxu1  ;;  %v15727_v48 = vld [vmem:[#allocation43_spill] sm:$0xff]  ;;  %v15728_v20 = vld [vmem:[#allocation45_spill] sm:$0xff] }
 0x18c   : > { %v10119_v55 = vpop.f32.mrb[60].mxu0  ;;  %v1499_v57 = vpop.f32.mrb[57].mxu1  ;;  %v15729_v7 = vld [vmem:[#allocation47_spill] sm:$0xff] }
 0x18d   : > { %v13250_v46 = vadd.f32 %v10119_v55, %v13061_v4  ;;  %v2223_v26 = vpop.f32.mrb[61].mxu0  ;;  %10281 = vmatmul.mubr.msk.f32.vlgmr.msra.gmra.mrb[74].mxu0 %vm614_vm1, %v15726_v3  ;;  %v15730_v55 = vld [vmem:[#allocation49_spill] sm:$0xff] }
 0x18e   : > { %10362 = vmatpush3.msk.msra.mxu0 %vm723_vm0, %v13059_v47  ;;  %10283 = vmatprep.mubr.msk.f32.mxu0 %vm614_vm1, %v15727_v48  ;;  %v15732_v4 = vld [vmem:[#allocation53_spill] sm:$0xff]  ;;  %v15733_v47 = vld [vmem:[#allocation55_spill] sm:$0xff] }
 0x18f   : > { %10444 = vmatprep.subr.msk.mxu0 %vm723_vm0, %v13247_v12  ;;  %v15736_v57 = vld [vmem:[#allocation61_spill] sm:$0xff]  ;;  %v15737_v26 = vld [vmem:[#allocation63_spill] sm:$0xff] }
 0x190   : > { %v15738_v3 = vld [vmem:[#allocation65_spill] sm:$0xff]  ;;  %v15739_v48 = vld [vmem:[#allocation67_spill] sm:$0xff] }
 0x191   : > { %10284 = vmatmul.mubr.msk.f32.gmra.mrb[76].mxu0 %vm614_vm1, %v15728_v20 }
 0x192   : > { %10286 = vmatprep.mubr.msk.f32.mxu0 %vm614_vm1, %v15729_v7 }
 0x195   : > { %10287 = vmatmul.mubr.msk.f32.gmra.mrb[4].mxu0 %vm614_vm1, %v15730_v55 }
 0x196   : > { %10289 = vmatprep.mubr.msk.f32.mxu0 %vm614_vm1, %v15731_v38 }
 0x199   : > { %10290 = vmatmul.mubr.msk.f32.gmra.mrb[6].mxu0 %vm614_vm1, %v15732_v4  ;;  %v15740_v4 = vld [vmem:[#allocation69_spill] sm:$0xff] }
 0x19a   : > { %10292 = vmatprep.mubr.msk.f32.mxu0 %vm614_vm1, %v15733_v47  ;;  %v15741_v47 = vld [vmem:[#allocation71_spill] sm:$0xff] }
 0x19d   : > { %10293 = vmatmul.mubr.msk.f32.gmra.mrb[8].mxu0 %vm614_vm1, %v15734_v14  ;;  %v15742_v14 = vld [vmem:[#allocation73_spill] sm:$0xff] }
 0x19e   : > { %10295 = vmatprep.mubr.msk.f32.mxu0 %vm614_vm1, %v15735_v27  ;;  %v15743_v27 = vld [vmem:[#allocation75_spill] sm:$0xff] }
 0x1a1   : > { %10296 = vmatmul.mubr.msk.f32.gmra.mrb[10].mxu0 %vm614_vm1, %v15736_v57  ;;  %v15744_v57 = vld [vmem:[#allocation77_spill] sm:$0xff] }
 0x1a2   : > { %10298 = vmatprep.mubr.msk.f32.mxu0 %vm614_vm1, %v15737_v26  ;;  %v15745_v26 = vld [vmem:[#allocation79_spill] sm:$0xff] }
 0x1a5   : > { %10299 = vmatmul.mubr.msk.f32.gmra.mrb[12].mxu0 %vm614_vm1, %v15738_v3  ;;  %v15746_v3 = vld [vmem:[#allocation81_spill] sm:$0xff] }
 0x1a6   : > { %10301 = vmatprep.mubr.msk.f32.mxu0 %vm614_vm1, %v15739_v48  ;;  %v15747_v48 = vld [vmem:[#allocation83_spill] sm:$0xff] }
 0x1a9   : > { %10302 = vmatmul.mubr.msk.f32.gmra.mrb[14].mxu0 %vm614_vm1, %v15740_v4  ;;  %v15748_v4 = vld [vmem:[#allocation85_spill] sm:$0xff] }
 0x1aa   : > { %10304 = vmatprep.mubr.msk.f32.mxu0 %vm614_vm1, %v15741_v47 }
 0x1ad   : > { %10305 = vmatmul.mubr.msk.f32.gmra.mrb[16].mxu0 %vm614_vm1, %v15742_v14 }
 0x1ae   : > { %10307 = vmatprep.mubr.msk.f32.mxu0 %vm614_vm1, %v15743_v27 }
 0x1b1   : > { %10308 = vmatmul.mubr.msk.f32.gmra.mrb[18].mxu0 %vm614_vm1, %v15744_v57  ;;  %v15749_v57 = vld [vmem:[#allocation91_spill] sm:$0xff] }
 0x1b2   : > { %10310 = vmatprep.mubr.msk.f32.mxu0 %vm614_vm1, %v15745_v26 }
 0x1b5   : > { %10311 = vmatmul.mubr.msk.f32.gmra.mrb[20].mxu0 %vm614_vm1, %v15746_v3  ;;  %v15750_v3 = vld [vmem:[#allocation92_spill] sm:$0xff] }
 0x1b6   : > { %10313 = vmatprep.mubr.msk.f32.mxu0 %vm614_vm1, %v15747_v48 }
 0x1b9   : > { %10314 = vmatmul.mubr.msk.f32.gmra.mrb[22].mxu0 %vm614_vm1, %v15748_v4  ;;  %v15751_v4 = vld [vmem:[#allocation94_spill] sm:$0xff] }
 0x1ba   : > { %10316 = vmatprep.mubr.msk.f32.mxu0 %vm614_vm1, %v12649_v56  ;;  %v15752_v56 = vld [vmem:[#allocation95_spill] sm:$0xff] }
 0x1bd   : > { %10317 = vmatmul.mubr.msk.f32.gmra.mrb[24].mxu0 %vm614_vm1, %v12656_v10  ;;  %v15753_v10 = vld [vmem:[#allocation96_spill] sm:$0xff] }
 0x1be   : > { %10319 = vmatprep.mubr.msk.f32.mxu0 %vm614_vm1, %v12672_v63 }
 0x1c1   : > { %10320 = vmatmul.mubr.msk.f32.gmra.mrb[30].mxu0 %vm614_vm1, %v15749_v57  ;;  %v15754_v57 = vld [vmem:[#allocation97_spill] sm:$0xff] }
 0x1c2   : > { %10322 = vmatprep.mubr.msk.f32.mxu0 %vm614_vm1, %v12688_v50 }
 0x1c5   : > { %10323 = vmatmul.mubr.msk.f32.gmra.mrb[32].mxu0 %vm614_vm1, %v15750_v3  ;;  %v15755_v3 = vld [vmem:[#allocation98_spill] sm:$0xff] }
 0x1c6   : > { %10325 = vmatprep.mubr.msk.f32.mxu0 %vm614_vm1, %v12705_v30  ;;  %v15756_v30 = vld [vmem:[#allocation99_spill] sm:$0xff] }
 0x1c9   : > { %10326 = vmatmul.mubr.msk.f32.gmra.mrb[34].mxu0 %vm614_vm1, %v15751_v4  ;;  %v15757_v4 = vld [vmem:[#allocation100_spill] sm:$0xff] }
 0x1ca   : > { %10328 = vmatprep.mubr.msk.f32.mxu0 %vm614_vm1, %v15752_v56 }
 0x1cd   : > { %10329 = vmatmul.mubr.msk.f32.gmra.mrb[36].mxu0 %vm614_vm1, %v15753_v10  ;;  %v15758_v10 = vld [vmem:[#allocation102_spill] sm:$0xff] }
 0x1ce   : > { %10331 = vmatprep.mubr.msk.f32.mxu0 %vm614_vm1, %v12738_v31 }
 0x1d1   : > { %10332 = vmatmul.mubr.msk.f32.gmra.mrb[38].mxu0 %vm614_vm1, %v15754_v57  ;;  %v15759_v57 = vld [vmem:[#allocation104_spill] sm:$0xff] }
 0x1d2   : > { %10334 = vmatprep.mubr.msk.f32.mxu0 %vm614_vm1, %v12755_v40 }
 0x1d5   : > { %10335 = vmatmul.mubr.msk.f32.gmra.mrb[40].mxu0 %vm614_vm1, %v15755_v3 }
 0x1d6   : > { %10337 = vmatprep.mubr.msk.f32.mxu0 %vm614_vm1, %v15756_v30 }
 0x1d9   : > { %10338 = vmatmul.mubr.msk.f32.gmra.mrb[42].mxu0 %vm614_vm1, %v15757_v4 }
 0x1da   : > { %10340 = vmatprep.mubr.msk.f32.mxu0 %vm614_vm1, %v12788_v52  ;;  %v2943_v52 = vrot.slane %v13035_v21, 2 }
 0x1dd   : > { %10341 = vmatmul.mubr.msk.f32.gmra.mrb[44].mxu0 %vm614_vm1, %v15758_v10  ;;  %v2942_v10 = vrot.slane %v13032_v17, 2 }
 0x1de   : > { %10343 = vmatprep.mubr.msk.f32.mxu0 %vm614_vm1, %v12805_v28 }
 0x1e1   : > { %10344 = vmatmul.mubr.msk.f32.gmra.mrb[46].mxu0 %vm614_vm1, %v15759_v57  ;;  %v2945_v57 = vrot.slane %v13046_v34, 2 }
 0x1e2   : > { %10346 = vmatprep.mubr.msk.f32.mxu0 %vm614_vm1, %v12822_v6 }
 0x1e5   : > { %10347 = vmatmul.mubr.msk.f32.gmra.mrb[48].mxu0 %vm614_vm1, %v12826_v5  ;;  %v2947_v5 = vrot.slane %v13211_v41, 2 }
 0x1e6   : > { %10349 = vmatprep.mubr.msk.f32.mxu0 %vm614_vm1, %v12838_v43 }
 0x1e9   : > { %10350 = vmatmul.mubr.msk.f32.gmra.mrb[50].mxu0 %vm614_vm1, %v12843_v19  ;;  %v13363_v19 = vsel %vm1508_vm3, %v2942_v10, %v2943_v52 }
 0x1ea   : > { %10352 = vmatprep.mubr.msk.f32.mxu0 %vm614_vm1, %v12855_v18  ;;  %v13367_v18 = vsel %vm1508_vm3, %v2943_v52, %v2945_v57  ;;  %v11746_v52 = vld [vmem:[%s11874_s16 + $0x40] sm:$0xff] }
 0x1ec   : > { %v10191_v28 = vpop.f32.mrb[62].mxu0 }
 0x1ed   : > { %v2463_v6 = vpop.f32.mrb[63].mxu0  ;;  %10353 = vmatmul.mubr.msk.f32.gmra.mrb[52].mxu0 %vm614_vm1, %v12859_v49 }
 0x1ee   : > { %v13358_v43 = vadd.f32 %v2463_v6, %v13242_v60  ;;  %10355 = vmatprep.mubr.msk.f32.mxu0 %vm614_vm1, %v12870_v13  ;;  %v13374_v6 = vsel %vm1508_vm3, %v2945_v57, %v2947_v5 }
 0x1f0   : > { %v10194_v28 = vpop.f32.mrb[64].mxu0 }
 0x1f1   : > { %v2473_v4 = vpop.f32.mrb[65].mxu0  ;;  %10356 = vmatmul.mubr.msk.f32.gmra.mrb[78].mxu0 %vm614_vm1, %v13363_v19  ;;  %v11747_v28 = vld [vmem:[%s11874_s16 + $0x48] sm:$0xff] }
 0x1f2   : > { %10358 = vmatprep.mubr.msk.f32.mxu0 %vm614_vm1, %v13367_v18  ;;  %v13383_v4 = vld [vmem:[%s15233_s2 + $0x20] sm:$0xf] }
 0x1f4   : > { %v10199_v10 = vpop.f32.mrb[66].mxu0 }
 0x1f5   : > { %v2619_v60 = vpop.f32.mrb[67].mxu0  ;;  %10359 = vmatmul.mubr.msk.f32.gmra.mrb[80].mxu0 %vm614_vm1, %v13374_v6  ;;  %v11748_v10 = vld [vmem:[%s11874_s16 + $0x50] sm:$0xff] }
 0x1f6   : > { %10363 = vmatprep.mubr.msk.f32.mxu0 %vm614_vm1, %v11746_v52  ;;  %v11749_v60 = vld [vmem:[%s11874_s16 + $0x60] sm:$0xff]  ;;  %v11751_v52 = vld [vmem:[%s11874_s16 + $0x70] sm:$0xff] }
 0x1f8   : > { %v10202_v41 = vpop.f32.mrb[68].mxu0 }
 0x1f9   : > { %v13386_v5 = vadd.f32 %v10202_v41, %v13250_v46  ;;  %v2629_v57 = vpop.f32.mrb[69].mxu0  ;;  %10364 = vmatmul.mubr.msk.f32.vlgmr.msra.gmra.mrb[82].mxu0 %vm614_vm1, %v11747_v28  ;;  %v11750_v46 = vld [vmem:[%s11874_s16 + $0x68] sm:$0xff]  ;;  %v11755_v28 = vld [vmem:[%s11874_s16 + $0xa0] sm:$0xff] }
 0x1fa   : > { %10445 = vmatpush3.msk.msra.mxu0 %vm723_vm0, %v13247_v12  ;;  %10366 = vmatprep.mubr.msk.f32.mxu0 %vm614_vm1, %v11748_v10  ;;  %v11752_v12 = vld [vmem:[%s11874_s16 + $0x80] sm:$0xff]  ;;  %v11753_v41 = vld [vmem:[%s11874_s16 + $0x88] sm:$0xff]  ;;  %v11754_v57 = vld [vmem:[%s11874_s16 + $0x90] sm:$0xff] }
 0x1fb   : > { %10527 = vmatprep.subr.msk.mxu0 %vm723_vm0, %v13383_v4  ;;  %v11756_v10 = vld [vmem:[%s11874_s16 + $0xa8] sm:$0xff] }
 0x1fd   : > { %10367 = vmatmul.mubr.msk.f32.gmra.mrb[84].mxu0 %vm614_vm1, %v11749_v60  ;;  %v11757_v60 = vld [vmem:[%s11874_s16 + $0xb0] sm:$0xff] }
 0x1fe   : > { %10369 = vmatprep.mubr.msk.f32.mxu0 %vm614_vm1, %v11750_v46  ;;  %v11758_v46 = vld [vmem:[%s11874_s16 + $0xc0] sm:$0xff] }
 0x201   : > { %10370 = vmatmul.mubr.msk.f32.gmra.mrb[4].mxu0 %vm614_vm1, %v11751_v52  ;;  %v11759_v52 = vld [vmem:[%s11874_s16 + $0xc8] sm:$0xff] }
 0x202   : > { %10372 = vmatprep.mubr.msk.f32.mxu0 %vm614_vm1, %v11752_v12  ;;  %v11760_v12 = vld [vmem:[%s11874_s16 + $0xd0] sm:$0xff] }
 0x205   : > { %10373 = vmatmul.mubr.msk.f32.gmra.mrb[6].mxu0 %vm614_vm1, %v11753_v41  ;;  %v11761_v41 = vld [vmem:[%s11874_s16 + $0xe0] sm:$0xff] }
 0x206   : > { %10375 = vmatprep.mubr.msk.f32.mxu0 %vm614_vm1, %v11754_v57  ;;  %v11762_v57 = vld [vmem:[%s11874_s16 + $0xe8] sm:$0xff] }
 0x209   : > { %10376 = vmatmul.mubr.msk.f32.gmra.mrb[8].mxu0 %vm614_vm1, %v11755_v28  ;;  %v11763_v28 = vld [vmem:[%s11874_s16 + $0xf0] sm:$0xff] }
 0x20a   : > { %10378 = vmatprep.mubr.msk.f32.mxu0 %vm614_vm1, %v11756_v10  ;;  %v11764_v10 = vld [vmem:[%s11874_s16 + $0x100] sm:$0xff] }
 0x20d   : > { %10379 = vmatmul.mubr.msk.f32.gmra.mrb[10].mxu0 %vm614_vm1, %v11757_v60  ;;  %v11765_v60 = vld [vmem:[%s11874_s16 + $0x108] sm:$0xff] }
 0x20e   : > { %10381 = vmatprep.mubr.msk.f32.mxu0 %vm614_vm1, %v11758_v46  ;;  %v11766_v46 = vld [vmem:[%s11874_s16 + $0x110] sm:$0xff] }
 0x211   : > { %10382 = vmatmul.mubr.msk.f32.gmra.mrb[12].mxu0 %vm614_vm1, %v11759_v52  ;;  %v11767_v52 = vld [vmem:[%s11874_s16 + $0x120] sm:$0xff] }
 0x212   : > { %10384 = vmatprep.mubr.msk.f32.mxu0 %vm614_vm1, %v11760_v12  ;;  %v11768_v12 = vld [vmem:[%s11874_s16 + $0x128] sm:$0xff] }
 0x215   : > { %10385 = vmatmul.mubr.msk.f32.gmra.mrb[14].mxu0 %vm614_vm1, %v11761_v41  ;;  %v11769_v41 = vld [vmem:[%s11874_s16 + $0x130] sm:$0xff] }
 0x216   : > { %10387 = vmatprep.mubr.msk.f32.mxu0 %vm614_vm1, %v11762_v57  ;;  %v11770_v57 = vld [vmem:[%s11874_s16 + $0x140] sm:$0xff] }
 0x219   : > { %10388 = vmatmul.mubr.msk.f32.gmra.mrb[16].mxu0 %vm614_vm1, %v11763_v28  ;;  %v11771_v28 = vld [vmem:[%s11874_s16 + $0x148] sm:$0xff] }
 0x21a   : > { %10390 = vmatprep.mubr.msk.f32.mxu0 %vm614_vm1, %v11764_v10  ;;  %v11772_v10 = vld [vmem:[%s11874_s16 + $0x150] sm:$0xff] }
 0x21d   : > { %10391 = vmatmul.mubr.msk.f32.gmra.mrb[18].mxu0 %vm614_vm1, %v11765_v60  ;;  %v11773_v60 = vld [vmem:[%s11874_s16 + $0x160] sm:$0xff] }
 0x21e   : > { %10393 = vmatprep.mubr.msk.f32.mxu0 %vm614_vm1, %v11766_v46  ;;  %v11774_v46 = vld [vmem:[%s11874_s16 + $0x168] sm:$0xff] }
 0x221   : > { %10394 = vmatmul.mubr.msk.f32.gmra.mrb[20].mxu0 %vm614_vm1, %v11767_v52  ;;  %v11775_v52 = vld [vmem:[%s11874_s16 + $0x170] sm:$0xff] }
 0x222   : > { %10396 = vmatprep.mubr.msk.f32.mxu0 %vm614_vm1, %v11768_v12  ;;  %v11776_v12 = vld [vmem:[%s11874_s16 + $0x180] sm:$0xff] }
 0x225   : > { %10397 = vmatmul.mubr.msk.f32.gmra.mrb[22].mxu0 %vm614_vm1, %v11769_v41  ;;  %v11777_v41 = vld [vmem:[%s11874_s16 + $0x188] sm:$0xff] }
 0x226   : > { %10399 = vmatprep.mubr.msk.f32.mxu0 %vm614_vm1, %v11770_v57  ;;  %v11778_v57 = vld [vmem:[%s11874_s16 + $0x190] sm:$0xff] }
 0x229   : > { %10400 = vmatmul.mubr.msk.f32.gmra.mrb[24].mxu0 %vm614_vm1, %v11771_v28  ;;  %v11779_v28 = vld [vmem:[%s11874_s16 + $0x1a0] sm:$0xff] }
 0x22a   : > { %10402 = vmatprep.mubr.msk.f32.mxu0 %vm614_vm1, %v11772_v10  ;;  %v11780_v10 = vld [vmem:[%s11874_s16 + $0x1a8] sm:$0xff] }
 0x22d   : > { %10403 = vmatmul.mubr.msk.f32.gmra.mrb[30].mxu0 %vm614_vm1, %v11773_v60  ;;  %v11781_v60 = vld [vmem:[%s11874_s16 + $0x1b0] sm:$0xff] }
 0x22e   : > { %10405 = vmatprep.mubr.msk.f32.mxu0 %vm614_vm1, %v11774_v46  ;;  %v11782_v46 = vld [vmem:[%s11874_s16 + $0x1c0] sm:$0xff] }
 0x231   : > { %10406 = vmatmul.mubr.msk.f32.gmra.mrb[32].mxu0 %vm614_vm1, %v11775_v52  ;;  %v11783_v52 = vld [vmem:[%s11874_s16 + $0x1c8] sm:$0xff] }
 0x232   : > { %10408 = vmatprep.mubr.msk.f32.mxu0 %vm614_vm1, %v11776_v12  ;;  %v11784_v12 = vld [vmem:[%s11874_s16 + $0x1d0] sm:$0xff] }
 0x235   : > { %10409 = vmatmul.mubr.msk.f32.gmra.mrb[34].mxu0 %vm614_vm1, %v11777_v41  ;;  %v11785_v41 = vld [vmem:[%s11874_s16 + $0x1e0] sm:$0xff] }
 0x236   : > { %10411 = vmatprep.mubr.msk.f32.mxu0 %vm614_vm1, %v11778_v57  ;;  %v11786_v57 = vld [vmem:[%s11874_s16 + $0x1e8] sm:$0xff] }
 0x239   : > { %10412 = vmatmul.mubr.msk.f32.gmra.mrb[36].mxu0 %vm614_vm1, %v11779_v28  ;;  %v11787_v28 = vld [vmem:[%s11874_s16 + $0x1f0] sm:$0xff] }
 0x23a   : > { %10414 = vmatprep.mubr.msk.f32.mxu0 %vm614_vm1, %v11780_v10 }
 0x23d   : > { %10415 = vmatmul.mubr.msk.f32.gmra.mrb[38].mxu0 %vm614_vm1, %v11781_v60 }
 0x23e   : > { %10417 = vmatprep.mubr.msk.f32.mxu0 %vm614_vm1, %v11782_v46 }
 0x241   : > { %10418 = vmatmul.mubr.msk.f32.gmra.mrb[40].mxu0 %vm614_vm1, %v11783_v52  ;;  %v15784_v52 = vld [vmem:[#allocation84_spill] sm:$0xff] }
 0x242   : > { %10420 = vmatprep.mubr.msk.f32.mxu0 %vm614_vm1, %v11784_v12  ;;  %v15785_v12 = vld [vmem:[#allocation86_spill] sm:$0xff] }
 0x245   : > { %10421 = vmatmul.mubr.msk.f32.gmra.mrb[42].mxu0 %vm614_vm1, %v11785_v41  ;;  %v4871_v41 = vld [vmem:[%s15235_s4 + $0x8] sm:$0xff] }
 0x246   : > { %10423 = vmatprep.mubr.msk.f32.mxu0 %vm614_vm1, %v11786_v57  ;;  %v15786_v57 = vld [vmem:[#allocation88_spill] sm:$0xff]  ;;  %10610 = vmatprep.subr.mxu1 %v4871_v41 }
 0x247   : > { %10611 = vmatpush3.msra.mxu1 %v4871_v41 }
 0x249   : > { %10424 = vmatmul.mubr.msk.f32.gmra.mrb[44].mxu0 %vm614_vm1, %v11787_v28  ;;  %v15787_v28 = vld [vmem:[#allocation90_spill] sm:$0xff] }
 0x24a   : > { %10426 = vmatprep.mubr.msk.f32.mxu0 %vm614_vm1, %v12537_v32 }
 0x24d   : > { %10427 = vmatmul.mubr.msk.f32.gmra.mrb[46].mxu0 %vm614_vm1, %v12540_v16 }
 0x24e   : > { %10429 = vmatprep.mubr.msk.f32.mxu0 %vm614_vm1, %v12564_v62 }
 0x251   : > { %10430 = vmatmul.mubr.msk.f32.gmra.mrb[48].mxu0 %vm614_vm1, %v12595_v54  ;;  %v13496_v54 = vld [vmem:[%s11874_s16 + $0x260] sm:$0xff] }
 0x252   : > { %10432 = vmatprep.mubr.msk.f32.mxu0 %vm614_vm1, %v12598_v1  ;;  %v13499_v1 = vld [vmem:[%s11874_s16 + $0x268] sm:$0xff] }
 0x253   : > { %15760 = vst [vmem:[#allocation39_spill] sm:$0xff] %v13499_v1 }
 0x255   : > { %10433 = vmatmul.mubr.msk.f32.gmra.mrb[50].mxu0 %vm614_vm1, %v12605_v35 }
 0x256   : > { %10435 = vmatprep.mubr.msk.f32.mxu0 %vm614_vm1, %v13032_v17  ;;  %v13506_v17 = vld [vmem:[%s11874_s16 + $0x270] sm:$0xff] }
 0x258   : > { %v10274_v32 = vpop.f32.mrb[70].mxu0 }
 0x259   : > { %v2869_v10 = vpop.f32.mrb[71].mxu0  ;;  %10436 = vmatmul.mubr.msk.f32.gmra.mrb[52].mxu0 %vm614_vm1, %v13035_v21  ;;  %v3749_v32 = vrot.slane %v13496_v54, 1 }
 0x25a   : > { %v13491_v16 = vadd.f32 %v2869_v10, %v13358_v43  ;;  %10438 = vmatprep.mubr.msk.f32.mxu0 %vm614_vm1, %v13046_v34  ;;  %v3750_v10 = vrot.slane %v13499_v1, 1 }
 0x25c   : > { %v10277_v62 = vpop.f32.mrb[72].mxu0 }
 0x25d   : > { %v2879_v35 = vpop.f32.mrb[73].mxu0  ;;  %10439 = vmatmul.mubr.msk.f32.gmra.mrb[86].mxu0 %vm614_vm1, %v13496_v54  ;;  %v15788_v62 = vld [vmem:[#allocation36_spill] sm:$0xff] }
 0x25e   : > { %10441 = vmatprep.mubr.msk.f32.mxu0 %vm614_vm1, %v13499_v1  ;;  %v3752_v35 = vrot.slane %v13506_v17, 1 }
 0x260   : > { %v10282_v21 = vpop.f32.mrb[74].mxu0 }
 0x261   : > { %v3024_v43 = vpop.f32.mrb[75].mxu0  ;;  %10442 = vmatmul.mubr.msk.f32.gmra.mrb[88].mxu0 %vm614_vm1, %v13506_v17  ;;  %v405_v21 = vld [vmem:[%s11874_s16 + $0x278] sm:$0x3] }
 0x262   : > { %10446 = vmatprep.mubr.msk.f32.mxu0 %vm614_vm1, %v15656_v25  ;;  %v15771_v25 = vld [vmem:[#allocation58_spill] sm:$0xff] }
 0x264   : > { %v10285_v34 = vpop.f32.mrb[76].mxu0 }
 0x265   : > { %v13513_v60 = vadd.f32 %v10285_v34, %v13386_v5  ;;  %v3034_v46 = vpop.f32.mrb[77].mxu0  ;;  %10447 = vmatmul.mubr.msk.f32.vlgmr.msra.gmra.mrb[90].mxu0 %vm614_vm1, %v15657_v0  ;;  %v15772_v0 = vld [vmem:[#allocation60_spill] sm:$0xff]  ;;  %v15783_v5 = vld [vmem:[#allocation82_spill] sm:$0xff] }
 0x266   : > { %10528 = vmatpush3.msk.msra.mxu0 %vm723_vm0, %v13383_v4  ;;  %10449 = vmatprep.mubr.msk.f32.mxu0 %vm614_vm1, %v15658_v39  ;;  %v15773_v39 = vld [vmem:[#allocation62_spill] sm:$0xff]  ;;  %v15782_v4 = vld [vmem:[#allocation80_spill] sm:$0xff] }
 0x269   : > { %10450 = vmatmul.mubr.msk.f32.gmra.mrb[92].mxu0 %vm614_vm1, %v15659_v37  ;;  %v15774_v37 = vld [vmem:[#allocation64_spill] sm:$0xff] }
 0x26a   : > { %10452 = vmatprep.mubr.msk.f32.mxu0 %vm614_vm1, %v15660_v45  ;;  %v15775_v45 = vld [vmem:[#allocation66_spill] sm:$0xff] }
 0x26d   : > { %10453 = vmatmul.mubr.msk.f32.gmra.mrb[4].mxu0 %vm614_vm1, %v15661_v2  ;;  %v15776_v2 = vld [vmem:[#allocation68_spill] sm:$0xff] }
 0x26e   : > { %10455 = vmatprep.mubr.msk.f32.mxu0 %vm614_vm1, %v15662_v61  ;;  %v15777_v61 = vld [vmem:[#allocation70_spill] sm:$0xff] }
 0x271   : > { %10456 = vmatmul.mubr.msk.f32.gmra.mrb[6].mxu0 %vm614_vm1, %v15663_v11  ;;  %v15778_v11 = vld [vmem:[#allocation72_spill] sm:$0xff] }
 0x272   : > { %10458 = vmatprep.mubr.msk.f32.mxu0 %vm614_vm1, %v15664_v8  ;;  %v15779_v8 = vld [vmem:[#allocation74_spill] sm:$0xff] }
 0x275   : > { %10459 = vmatmul.mubr.msk.f32.gmra.mrb[8].mxu0 %vm614_vm1, %v15665_v15  ;;  %v15780_v15 = vld [vmem:[#allocation76_spill] sm:$0xff] }
 0x276   : > { %10461 = vmatprep.mubr.msk.f32.mxu0 %vm614_vm1, %v15666_v9  ;;  %v15781_v9 = vld [vmem:[#allocation78_spill] sm:$0xff] }
 0x279   : > { %10462 = vmatmul.mubr.msk.f32.gmra.mrb[10].mxu0 %vm614_vm1, %v15667_v44  ;;  %v15770_v44 = vld [vmem:[#allocation56_spill] sm:$0xff] }
 0x27a   : > { %10464 = vmatprep.mubr.msk.f32.mxu0 %vm614_vm1, %v15668_v36  ;;  %v15769_v36 = vld [vmem:[#allocation54_spill] sm:$0xff] }
 0x27d   : > { %10465 = vmatmul.mubr.msk.f32.gmra.mrb[12].mxu0 %vm614_vm1, %v15669_v29  ;;  %v15761_v29 = vld [vmem:[#allocation38_spill] sm:$0xff] }
 0x27e   : > { %10467 = vmatprep.mubr.msk.f32.mxu0 %vm614_vm1, %v15670_v22  ;;  %v15762_v22 = vld [vmem:[#allocation40_spill] sm:$0xff] }
 0x281   : > { %10468 = vmatmul.mubr.msk.f32.gmra.mrb[14].mxu0 %vm614_vm1, %v15671_v23  ;;  %v15763_v23 = vld [vmem:[#allocation42_spill] sm:$0xff] }
 0x282   : > { %10470 = vmatprep.mubr.msk.f32.mxu0 %vm614_vm1, %v15672_v59  ;;  %v15764_v59 = vld [vmem:[#allocation44_spill] sm:$0xff] }
 0x285   : > { %10471 = vmatmul.mubr.msk.f32.gmra.mrb[16].mxu0 %vm614_vm1, %v15673_v53  ;;  %v15765_v53 = vld [vmem:[#allocation46_spill] sm:$0xff] }
 0x286   : > { %10473 = vmatprep.mubr.msk.f32.mxu0 %vm614_vm1, %v15674_v33  ;;  %v15766_v33 = vld [vmem:[#allocation48_spill] sm:$0xff] }
 0x289   : > { %10474 = vmatmul.mubr.msk.f32.gmra.mrb[18].mxu0 %vm614_vm1, %v15675_v58  ;;  %v15767_v58 = vld [vmem:[#allocation50_spill] sm:$0xff] }
 0x28a   : > { %10476 = vmatprep.mubr.msk.f32.mxu0 %vm614_vm1, %v15676_v51  ;;  %v15768_v51 = vld [vmem:[#allocation52_spill] sm:$0xff] }
 0x28d   : > { %10477 = vmatmul.mubr.msk.f32.gmra.mrb[20].mxu0 %vm614_vm1, %v15761_v29  ;;  %v3751_v29 = vsel %vm487_vm2, %v3749_v32, %v3750_v10 }
 0x28e   : > { %10479 = vmatprep.mubr.msk.f32.mxu0 %vm614_vm1, %v15762_v22  ;;  %v3754_v22 = vrot.slane %v405_v21, 1 }
 0x290   : > { %v3755_v17 = vsel %vm487_vm2, %v3752_v35, %v3754_v22 }
 0x291   : > { %10480 = vmatmul.mubr.msk.f32.gmra.mrb[22].mxu0 %vm614_vm1, %v15763_v23  ;;  %v3753_v23 = vsel %vm487_vm2, %v3750_v10, %v3752_v35  ;;  %v4870_v10 = vld [vmem:[%s15235_s4] sm:$0xff] }
 0x292   : > { %10482 = vmatprep.mubr.msk.f32.mxu0 %vm614_vm1, %v15764_v59  ;;  %10660 = vmatprep.subr.mxu1 %v4870_v10 }
 0x295   : > { %10483 = vmatmul.mubr.msk.f32.gmra.mrb[24].mxu0 %vm614_vm1, %v15765_v53 }
 0x296   : > { %10485 = vmatprep.mubr.msk.f32.mxu0 %vm614_vm1, %v15766_v33 }
 0x299   : > { %10486 = vmatmul.mubr.msk.f32.gmra.mrb[30].mxu0 %vm614_vm1, %v15767_v58 }
 0x29a   : > { %10488 = vmatprep.mubr.msk.f32.mxu0 %vm614_vm1, %v15768_v51  ;;  %v15789_v51 = vld [vmem:[#allocation53_spill] sm:$0xff] }
 0x29d   : > { %10489 = vmatmul.mubr.msk.f32.gmra.mrb[32].mxu0 %vm614_vm1, %v15769_v36  ;;  %v15790_v36 = vld [vmem:[#allocation55_spill] sm:$0xff] }
 0x29e   : > { %10491 = vmatprep.mubr.msk.f32.mxu0 %vm614_vm1, %v15770_v44  ;;  %v15793_v44 = vld [vmem:[#allocation61_spill] sm:$0xff] }
 0x2a1   : > { %10492 = vmatmul.mubr.msk.f32.gmra.mrb[34].mxu0 %vm614_vm1, %v15771_v25  ;;  %v15797_v25 = vld [vmem:[#allocation69_spill] sm:$0xff] }
 0x2a2   : > { %10494 = vmatprep.mubr.msk.f32.mxu0 %vm614_vm1, %v15772_v0  ;;  %v15798_v0 = vld [vmem:[#allocation77_spill] sm:$0xff] }
 0x2a5   : > { %10495 = vmatmul.mubr.msk.f32.gmra.mrb[36].mxu0 %vm614_vm1, %v15773_v39  ;;  %v15799_v39 = vld [vmem:[#allocation81_spill] sm:$0xff] }
 0x2a6   : > { %10497 = vmatprep.mubr.msk.f32.mxu0 %vm614_vm1, %v15774_v37  ;;  %v15800_v37 = vld [vmem:[#allocation85_spill] sm:$0xff] }
 0x2a9   : > { %10498 = vmatmul.mubr.msk.f32.gmra.mrb[38].mxu0 %vm614_vm1, %v15775_v45  ;;  %v15806_v45 = vld [vmem:[#allocation94_spill] sm:$0xff] }
 0x2aa   : > { %10500 = vmatprep.mubr.msk.f32.mxu0 %vm614_vm1, %v15776_v2  ;;  %v15807_v2 = vld [vmem:[#allocation96_spill] sm:$0xff] }
 0x2ad   : > { %10501 = vmatmul.mubr.msk.f32.gmra.mrb[40].mxu0 %vm614_vm1, %v15777_v61  ;;  %v15811_v61 = vld [vmem:[#allocation102_spill] sm:$0xff] }
 0x2ae   : > { %10503 = vmatprep.mubr.msk.f32.mxu0 %vm614_vm1, %v15778_v11  ;;  %v15813_v11 = vld [vmem:[#allocation104_spill] sm:$0xff] }
 0x2b1   : > { %10504 = vmatmul.mubr.msk.f32.gmra.mrb[42].mxu0 %vm614_vm1, %v15779_v8  ;;  %v15817_v8 = vld [vmem:[#allocation108_spill] sm:$0xff] }
 0x2b2   : > { %10506 = vmatprep.mubr.msk.f32.mxu0 %vm614_vm1, %v15780_v15  ;;  %v15818_v15 = vld [vmem:[#allocation109_spill] sm:$0xff] }
 0x2b5   : > { %10507 = vmatmul.mubr.msk.f32.gmra.mrb[44].mxu0 %vm614_vm1, %v15781_v9  ;;  %v4154_v9 = vrot.slane %v13496_v54, 2 }
 0x2b6   : > { %10509 = vmatprep.mubr.msk.f32.mxu0 %vm614_vm1, %v15782_v4  ;;  %v15425_v4 = vrot.slane %v13499_v1, 2 }
 0x2b9   : > { %10510 = vmatmul.mubr.msk.f32.gmra.mrb[46].mxu0 %vm614_vm1, %v15783_v5 }
 0x2ba   : > { %10512 = vmatprep.mubr.msk.f32.mxu0 %vm614_vm1, %v15784_v52 }
 0x2bd   : > { %10513 = vmatmul.mubr.msk.f32.gmra.mrb[48].mxu0 %vm614_vm1, %v15785_v12 }
 0x2be   : > { %10515 = vmatprep.mubr.msk.f32.mxu0 %vm614_vm1, %v15786_v57 }
 0x2c1   : > { %10516 = vmatmul.mubr.msk.f32.gmra.mrb[50].mxu0 %vm614_vm1, %v15787_v28 }
 0x2c2   : > { %10518 = vmatprep.mubr.msk.f32.mxu0 %vm614_vm1, %v15788_v62  ;;  %v13759_v62 = vld [vmem:[%s15235_s4 + $0x10] sm:$0xff] }
 0x2c4   : > { %v10357_v43 = vpop.f32.mrb[78].mxu0 }
 0x2c5   : > { %v3274_v34 = vpop.f32.mrb[79].mxu0  ;;  %10519 = vmatmul.mubr.msk.f32.gmra.mrb[52].mxu0 %vm614_vm1, %v13226_v42 }
 0x2c6   : > { %v13623_v46 = vadd.f32 %v3274_v34, %v13491_v16  ;;  %10521 = vmatprep.mubr.msk.f32.mxu0 %vm614_vm1, %v13235_v24 }
 0x2c8   : > { %v10360_v59 = vpop.f32.mrb[80].mxu0 }
 0x2c9   : > { %v3284_v53 = vpop.f32.mrb[81].mxu0  ;;  %10522 = vmatmul.mubr.msk.f32.gmra.mrb[94].mxu0 %vm614_vm1, %v3751_v29 }
 0x2ca   : > { %10524 = vmatprep.mubr.msk.f32.mxu0 %vm614_vm1, %v3753_v23  ;;  %v4782_v23 = vlaneseq  ;;  %v13767_v53 = vld [vmem:[%s15234_s3] ss:$0 sm:$0xff] }
 0x2cc   : > { %v10365_v42 = vpop.f32.mrb[82].mxu0 }
 0x2cd   : > { %v3425_v33 = vpop.f32.mrb[83].mxu0  ;;  %10525 = vmatmul.mubr.msk.f32.gmra.mrb[96].mxu0 %vm614_vm1, %v3755_v17 }
 0x2ce   : > { %10529 = vmatprep.mubr.msk.f32.mxu0 %vm614_vm1, %v15728_v20  ;;  %v15791_v20 = vld [vmem:[#allocation57_spill] sm:$0xff]  ;;  %v13769_v33 = vshrl.u32 %v4782_v23, 7 }
 0x2d0   : > { %v10368_v24 = vpop.f32.mrb[84].mxu0  ;;  %vm4786_vm6 = vcmp.ge.s32.totalorder %v13769_v33, 1 }
 0x2d1   : > { %v13636_v16 = vadd.f32 %v10368_v24, %v13513_v60  ;;  %v3435_v58 = vpop.f32.mrb[85].mxu0  ;;  %10530 = vmatmul.mubr.msk.f32.vlgmr.msra.gmra.mrb[98].mxu0 %vm614_vm1, %v15729_v7  ;;  %v15792_v60 = vld [vmem:[#allocation59_spill] sm:$0xff] }
 0x2d2   : > { %10532 = vmatprep.mubr.msk.f32.mxu0 %vm614_vm1, %v15730_v55  ;;  %v15794_v7 = vld [vmem:[#allocation63_spill] sm:$0xff]  ;;  %v15795_v55 = vld [vmem:[#allocation65_spill] sm:$0xff]  ;;  %v13773_v58 = vadd.s32 16, %v13769_v33 }
 0x2d4   : > { %vm4797_vm7 = vcmp.le.s32.totalorder %v13773_v58, 16 }
 0x2d5   : > { %10533 = vmatmul.mubr.msk.f32.gmra.mrb[100].mxu0 %vm614_vm1, %v15731_v38  ;;  %v15796_v38 = vld [vmem:[#allocation67_spill] sm:$0xff] }
 0x2d6   : > { %10535 = vmatprep.mubr.msk.f32.mxu0 %vm614_vm1, %v15789_v51 }
 0x2d9   : > { %10536 = vmatmul.mubr.msk.f32.gmra.mrb[4].mxu0 %vm614_vm1, %v15790_v36  ;;  %v15820_v36 = vld [vmem:[#allocation10_spill] sm:$0xff] }
 0x2da   : > { %10538 = vmatprep.mubr.msk.f32.mxu0 %vm614_vm1, %v15791_v20 }
 0x2dd   : > { %10539 = vmatmul.mubr.msk.f32.gmra.mrb[6].mxu0 %vm614_vm1, %v15792_v60 }
 0x2de   : > { %10541 = vmatprep.mubr.msk.f32.mxu0 %vm614_vm1, %v15793_v44  ;;  %v15821_v44 = vld [vmem:[#allocation13_spill] sm:$0xff] }
 0x2e1   : > { %10542 = vmatmul.mubr.msk.f32.gmra.mrb[8].mxu0 %vm614_vm1, %v15794_v7 }
 0x2e2   : > { %10544 = vmatprep.mubr.msk.f32.mxu0 %vm614_vm1, %v15795_v55 }
 0x2e5   : > { %10545 = vmatmul.mubr.msk.f32.gmra.mrb[10].mxu0 %vm614_vm1, %v15796_v38 }
 0x2e6   : > { %10547 = vmatprep.mubr.msk.f32.mxu0 %vm614_vm1, %v15797_v25 }
 0x2e9   : > { %10548 = vmatmul.mubr.msk.f32.gmra.mrb[12].mxu0 %vm614_vm1, %v15741_v47  ;;  %v15801_v47 = vld [vmem:[#allocation87_spill] sm:$0xff] }
 0x2ea   : > { %10550 = vmatprep.mubr.msk.f32.mxu0 %vm614_vm1, %v15742_v14  ;;  %v15802_v14 = vld [vmem:[#allocation89_spill] sm:$0xff] }
 0x2ed   : > { %10551 = vmatmul.mubr.msk.f32.gmra.mrb[14].mxu0 %vm614_vm1, %v15743_v27  ;;  %v15803_v27 = vld [vmem:[#allocation91_spill] sm:$0xff] }
 0x2ee   : > { %10553 = vmatprep.mubr.msk.f32.mxu0 %vm614_vm1, %v15798_v0 }
 0x2f1   : > { %10554 = vmatmul.mubr.msk.f32.gmra.mrb[16].mxu0 %vm614_vm1, %v15745_v26  ;;  %v15804_v26 = vld [vmem:[#allocation92_spill] sm:$0xff] }
 0x2f2   : > { %10556 = vmatprep.mubr.msk.f32.mxu0 %vm614_vm1, %v15799_v39 }
 0x2f5   : > { %10557 = vmatmul.mubr.msk.f32.gmra.mrb[18].mxu0 %vm614_vm1, %v15747_v48  ;;  %v15805_v48 = vld [vmem:[#allocation93_spill] sm:$0xff] }
 0x2f6   : > { %10559 = vmatprep.mubr.msk.f32.mxu0 %vm614_vm1, %v15800_v37 }
 0x2f9   : > { %10560 = vmatmul.mubr.msk.f32.gmra.mrb[20].mxu0 %vm614_vm1, %v15801_v47  ;;  %v15822_v47 = vld [vmem:[#allocation14_spill] sm:$0xff] }
 0x2fa   : > { %10562 = vmatprep.mubr.msk.f32.mxu0 %vm614_vm1, %v15802_v14 }
 0x2fd   : > { %10563 = vmatmul.mubr.msk.f32.gmra.mrb[22].mxu0 %vm614_vm1, %v12672_v63  ;;  %v15808_v63 = vld [vmem:[#allocation97_spill] sm:$0xff] }
 0x2fe   : > { %10565 = vmatprep.mubr.msk.f32.mxu0 %vm614_vm1, %v15803_v27 }
 0x301   : > { %10566 = vmatmul.mubr.msk.f32.gmra.mrb[24].mxu0 %vm614_vm1, %v12688_v50  ;;  %v15809_v50 = vld [vmem:[#allocation100_spill] sm:$0xff] }
 0x302   : > { %10568 = vmatprep.mubr.msk.f32.mxu0 %vm614_vm1, %v15804_v26 }
 0x305   : > { %10569 = vmatmul.mubr.msk.f32.gmra.mrb[30].mxu0 %vm614_vm1, %v15805_v48  ;;  %v15823_v48 = vld [vmem:[#allocation15_spill] sm:$0xff] }
 0x306   : > { %10571 = vmatprep.mubr.msk.f32.mxu0 %vm614_vm1, %v15806_v45 }
 0x309   : > { %10572 = vmatmul.mubr.msk.f32.gmra.mrb[32].mxu0 %vm614_vm1, %v15752_v56  ;;  %v15810_v56 = vld [vmem:[#allocation101_spill] sm:$0xff] }
 0x30a   : > { %10574 = vmatprep.mubr.msk.f32.mxu0 %vm614_vm1, %v15807_v2 }
 0x30d   : > { %10575 = vmatmul.mubr.msk.f32.gmra.mrb[34].mxu0 %vm614_vm1, %v12738_v31  ;;  %v15812_v31 = vld [vmem:[#allocation103_spill] sm:$0xff] }
 0x30e   : > { %10577 = vmatprep.mubr.msk.f32.mxu0 %vm614_vm1, %v15808_v63 }
 0x311   : > { %10578 = vmatmul.mubr.msk.f32.gmra.mrb[36].mxu0 %vm614_vm1, %v12755_v40  ;;  %v15814_v40 = vld [vmem:[#allocation105_spill] sm:$0xff] }
 0x312   : > { %10580 = vmatprep.mubr.msk.f32.mxu0 %vm614_vm1, %v15755_v3  ;;  %v15815_v3 = vld [vmem:[#allocation106_spill] sm:$0xff] }
 0x315   : > { %10581 = vmatmul.mubr.msk.f32.gmra.mrb[38].mxu0 %vm614_vm1, %v15756_v30  ;;  %v15816_v30 = vld [vmem:[#allocation107_spill] sm:$0xff] }
 0x316   : > { %10583 = vmatprep.mubr.msk.f32.mxu0 %vm614_vm1, %v15809_v50 }
 0x319   : > { %10584 = vmatmul.mubr.msk.f32.gmra.mrb[40].mxu0 %vm614_vm1, %v15810_v56 }
 0x31a   : > { %10586 = vmatprep.mubr.msk.f32.mxu0 %vm614_vm1, %v15811_v61 }
 0x31d   : > { %10587 = vmatmul.mubr.msk.f32.gmra.mrb[42].mxu0 %vm614_vm1, %v15812_v31 }
 0x31e   : > { %10589 = vmatprep.mubr.msk.f32.mxu0 %vm614_vm1, %v15813_v11 }
 0x321   : > { %10590 = vmatmul.mubr.msk.f32.gmra.mrb[44].mxu0 %vm614_vm1, %v15814_v40 }
 0x322   : > { %10592 = vmatprep.mubr.msk.f32.mxu0 %vm614_vm1, %v15815_v3  ;;  %v15824_v3 = vld [vmem:[#allocation18_spill] sm:$0xff] }
 0x325   : > { %10593 = vmatmul.mubr.msk.f32.gmra.mrb[46].mxu0 %vm614_vm1, %v15816_v30 }
 0x326   : > { %10595 = vmatprep.mubr.msk.f32.mxu0 %vm614_vm1, %v15817_v8 }
 0x329   : > { %10596 = vmatmul.mubr.msk.f32.gmra.mrb[48].mxu0 %vm614_vm1, %v15818_v15 }
 0x32a   : > { %10598 = vmatprep.mubr.msk.f32.mxu0 %vm614_vm1, %v12859_v49  ;;  %v4156_v49 = vsel %vm1508_vm3, %v4154_v9, %v15425_v4 }
 0x32d   : > { %10599 = vmatmul.mubr.msk.f32.gmra.mrb[50].mxu0 %vm614_vm1, %v12870_v13  ;;  %v15426_v13 = vmov 0.0  }
 0x32e   : > { %10601 = vmatprep.mubr.msk.f32.mxu0 %vm614_vm1, %v13363_v19  ;;  %v13745_v54 = vrot.slane %v15426_v13, 1 }
 0x330   : > { %v10440_v5 = vpop.f32.mrb[86].mxu0  ;;  %15819 = vst [vmem:[#allocation41_spill] sm:$0xff] %v13745_v54  ;;  %10612 = vmatprep.mubr.msk.f32.mxu1 %vm5007_vm4, %v13745_v54 }
 0x331   : > { %v3675_v52 = vpop.f32.mrb[87].mxu0  ;;  %10602 = vmatmul.mubr.msk.f32.gmra.mrb[52].mxu0 %vm614_vm1, %v13367_v18  ;;  %10613 = vmatmul.mubr.msk.f32.vlgmr.msra.gmra.mrb[58].mxu1 %vm5007_vm4, %v13745_v54  ;;  %v15825_v5 = vld [vmem:[#allocation19_spill] sm:$0xff] }
 0x332   : > { %v3744_v12 = vadd.f32 %v3675_v52, %v13623_v46  ;;  %10604 = vmatprep.mubr.msk.f32.mxu0 %vm614_vm1, %v13374_v6  ;;  %10661 = vmatpush3.msra.mxu1 %v4870_v10 }
 0x333   : > { %10710 = vmatprep.subr.mxu1 %v13759_v62 }
 0x334   : > { %v10443_v19 = vpop.f32.mrb[88].mxu0 }
 0x335   : > { %v3685_v41 = vpop.f32.mrb[89].mxu0  ;;  %10605 = vmatmul.mubr.msk.f32.gmra.mrb[102].mxu0 %vm614_vm1, %v4156_v49 }
 0x338   : > { %v10448_v18 = vpop.f32.mrb[90].mxu0 }
 0x339   : > { %v3831_v6 = vpop.f32.mrb[91].mxu0 }
 0x33c   : > { %v10451_v57 = vpop.f32.mrb[92].mxu0 }
 0x33d   : > { %v4103_v28 = vadd.f32 %v10451_v57, %v13636_v16  ;;  %v3841_v32 = vpop.f32.mrb[93].mxu0 }
 0x39c   : > { %v10523_v35 = vpop.f32.mrb[94].mxu0 }
 0x39d   : > { %v4081_v21 = vpop.f32.mrb[95].mxu0 }
 0x39e   : > { %v13762_v43 = vadd.f32 %v4081_v21, %v3744_v12  ;;  %v15828_v21 = vld [vmem:[#allocation22_spill] sm:$0xff] }
 0x3a0   : > { %v10526_v34 = vpop.f32.mrb[96].mxu0 }
 0x3a1   : > { %v4091_v46 = vpop.f32.mrb[97].mxu0 }
 0x3a4   : > { %v10531_v29 = vpop.f32.mrb[98].mxu0 }
 0x3a5   : > { %v4236_v22 = vpop.f32.mrb[99].mxu0 }
 0x3a6   : > { %v15829_v22 = vld [vmem:[#allocation25_spill] sm:$0xff] }
 0x3a8   : > { %v10534_v59 = vpop.f32.mrb[100].mxu0 }
 0x3a9   : > { %v4508_v17 = vadd.f32 %v10534_v59, %v4103_v28  ;;  %v4246_v42 = vpop.f32.mrb[101].mxu0 }
 0x3ab   : > { %v4569_v24 = vadd.f32 %v13767_v53, %v4508_v17 }
 0x3ac   : > { %v10537_v16 = vpop.f32.mrb[4].mxu0 }
 0x3ad   : > { %vm4623_vm5 = vcmp.ge.f32.partialorder %v4569_v24, 0.0  ;;  %v4677_v51 = vmul.f32 0.01, %v4569_v24  ;;  %v11112_v20 = vadd.f32 %v10537_v16, %v15820_v36  ;;  %v4256_v60 = vpop.f32.mrb[5].mxu0 }
 0x3ae   : > { %v11113_v7 = vadd.f32 %v4256_v60, %v15821_v44 }
 0x3af   : > { %v4731_v55 = vsel %vm4623_vm5, %v4569_v24, %v4677_v51  ;;  %v4571_v38 = vadd.f32 %v11112_v20, %v13767_v53 }
 0x3b0   : > { %v4570_v25 = vadd.f32 %v11113_v7, %v13767_v53  ;;  %v10540_v0 = vpop.f32.mrb[6].mxu0  ;;  %v13783_v39 = vsel %vm4786_vm6, %v4731_v55, 0.0  ;;  %v15831_v7 = vld [vmem:[#allocation26_spill] sm:$0xff] }
 0x3b1   : > { %vm4625_vm8 = vcmp.ge.f32.partialorder %v4571_v38, 0.0  ;;  %v4679_v37 = vmul.f32 0.01, %v4571_v38  ;;  %v11114_v14 = vadd.f32 %v10540_v0, %v15822_v47  ;;  %v4266_v27 = vpop.f32.mrb[7].mxu0  ;;  %v4932_v11 = vrot.slane %v13783_v39, 1  ;;  %v15832_v0 = vld [vmem:[#allocation27_spill] sm:$0xff] }
 0x3b2   : > { %vm4624_vm9 = vcmp.ge.f32.partialorder %v4570_v25, 0.0  ;;  %v4678_v26 = vmul.f32 0.01, %v4570_v25  ;;  %v11115_v45 = vadd.f32 %v4266_v27, %v15823_v48 }
 0x3b3   : > { %v4733_v2 = vsel %vm4625_vm8, %v4571_v38, %v4679_v37  ;;  %v4573_v63 = vadd.f32 %v11114_v14, %v13767_v53 }
 0x3b4   : > { %v13790_v50 = vsel %vm4797_vm7, %v4733_v2, 0.0  ;;  %v13792_v56 = vsel %vm4624_vm9, %v4570_v25, %v4678_v26  ;;  %v4572_v61 = vadd.f32 %v11115_v45, %v13767_v53  ;;  %v10543_v31 = vpop.f32.mrb[8].mxu0 }
 0x3b5   : > { %vm4627_vm10 = vcmp.ge.f32.partialorder %v4573_v63, 0.0  ;;  %v4681_v40 = vmul.f32 0.01, %v4573_v63  ;;  %v11116_v30 = vadd.f32 %v10543_v31, %v15824_v3  ;;  %v4276_v8 = vpop.f32.mrb[9].mxu0  ;;  %v4933_v15 = vrot.slane %v13792_v56, 1 }
 0x3b6   : > { %vm4626_vm11 = vcmp.ge.f32.partialorder %v4572_v61, 0.0  ;;  %v4680_v9 = vmul.f32 0.01, %v4572_v61  ;;  %v11117_v52 = vadd.f32 %v4276_v8, %v15825_v5  ;;  %v4935_v12 = vrot.slane %v13790_v50, 1 }
 0x3b7   : > { %v13800_v49 = vsel %vm4627_vm10, %v4573_v63, %v4681_v40  ;;  %v4575_v19 = vadd.f32 %v11116_v30, %v13767_v53  ;;  %v13804_v41 = vsel %vm487_vm2, %v4932_v11, %v4933_v15  ;;  %v15834_v11 = vld [vmem:[#allocation30_spill] sm:$0xff] }
 0x3b8   : > { %15826 = vst [vmem:[#allocation43_spill] sm:$0xff] %v13804_v41  ;;  %v4734_v18 = vsel %vm4626_vm11, %v4572_v61, %v4680_v9  ;;  %v4574_v6 = vadd.f32 %v11117_v52, %v13767_v53  ;;  %v10546_v57 = vpop.f32.mrb[10].mxu0  ;;  %10615 = vmatprep.mubr.msk.f32.mxu1 %vm5007_vm4, %v13804_v41  ;;  %v13810_v28 = vsel %vm487_vm2, %v4933_v15, %v4935_v12  ;;  %v4938_v32 = vrot.slane %v13800_v49, 1  ;;  %v15835_v15 = vld [vmem:[#allocation31_spill] sm:$0xff] }
 0x3b9   : > { %15827 = vst [vmem:[#allocation45_spill] sm:$0xff] %v13810_v28  ;;  %v13815_v10 = vsel %vm4786_vm6, %v4734_v18, 0.0  ;;  %vm4629_vm12 = vcmp.ge.f32.partialorder %v4575_v19, 0.0  ;;  %v4683_v35 = vmul.f32 0.01, %v4575_v19  ;;  %v11118_v34 = vadd.f32 %v10546_v57, %v15828_v21  ;;  %v4286_v46 = vpop.f32.mrb[11].mxu0  ;;  %10616 = vmatmul.mubr.msk.f32.gmra.mrb[60].mxu1 %vm5007_vm4, %v13810_v28 }
 0x3ba   : > { %vm4628_vm13 = vcmp.ge.f32.partialorder %v4574_v6, 0.0  ;;  %v4682_v29 = vmul.f32 0.01, %v4574_v6  ;;  %v11119_v23 = vadd.f32 %v4286_v46, %v15829_v22  ;;  %v4937_v59 = vrot.slane %v13815_v10, 1  ;;  %v15838_v46 = vld [vmem:[#allocation110_spill] sm:$0xff] }
 0x3bb   : > { %v4737_v17 = vsel %vm4629_vm12, %v4575_v19, %v4683_v35  ;;  %v4577_v42 = vadd.f32 %v11118_v34, %v13767_v53 }
 0x3bc   : > { %v13825_v24 = vsel %vm4786_vm6, %v4737_v17, 0.0  ;;  %v4736_v16 = vsel %vm4628_vm13, %v4574_v6, %v4682_v29  ;;  %v4576_v51 = vadd.f32 %v11119_v23, %v13767_v53  ;;  %v10549_v36 = vpop.f32.mrb[12].mxu0  ;;  %v13829_v20 = vsel %vm487_vm2, %v4937_v59, %v4938_v32  ;;  %v15839_v59 = vld [vmem:[#allocation111_spill] sm:$0xff] }
 0x3bd   : > { %15830 = vst [vmem:[#allocation47_spill] sm:$0xff] %v13829_v20  ;;  %v13833_v60 = vsel %vm4797_vm7, %v4736_v16, 0.0  ;;  %vm4631_vm14 = vcmp.ge.f32.partialorder %v4577_v42, 0.0  ;;  %v4685_v44 = vmul.f32 0.01, %v4577_v42  ;;  %v11120_v55 = vadd.f32 %v10549_v36, %v15831_v7  ;;  %v4296_v38 = vpop.f32.mrb[13].mxu0  ;;  %10618 = vmatprep.mubr.msk.f32.mxu1 %vm5007_vm4, %v13829_v20 }
 0x3be   : > { %vm4630_vm15 = vcmp.ge.f32.partialorder %v4576_v51, 0.0  ;;  %v4684_v25 = vmul.f32 0.01, %v4576_v51  ;;  %v11121_v37 = vadd.f32 %v4296_v38, %v15832_v0  ;;  %v4940_v47 = vrot.slane %v13833_v60, 1 }
 0x3bf   : > { %v4739_v14 = vsel %vm4631_vm14, %v4577_v42, %v4685_v44  ;;  %v4579_v27 = vadd.f32 %v11120_v55, %v13767_v53  ;;  %v4942_v26 = vrot.slane %v13825_v24, 1 }
 0x3c0   : > { %v13844_v48 = vsel %vm4797_vm7, %v4739_v14, 0.0  ;;  %v13846_v45 = vsel %vm4630_vm15, %v4576_v51, %v4684_v25  ;;  %v4578_v2 = vadd.f32 %v11121_v37, %v13767_v53  ;;  %v10552_v63 = vpop.f32.mrb[14].mxu0  ;;  %v13850_v61 = vsel %vm487_vm2, %v4938_v32, %v4940_v47  ;;  %v15841_v37 = vld [vmem:[#allocation112_spill] sm:$0xff] }
 0x3c1   : > { %15833 = vst [vmem:[#allocation49_spill] sm:$0xff] %v13850_v61  ;;  %vm4633_vm5 = vcmp.ge.f32.partialorder %v4579_v27, 0.0  ;;  %v4687_v31 = vmul.f32 0.01, %v4579_v27  ;;  %v11122_v40 = vadd.f32 %v10552_v63, %v15834_v11  ;;  %v4306_v3 = vpop.f32.mrb[15].mxu0  ;;  %10619 = vmatmul.mubr.msk.f32.gmra.mrb[62].mxu1 %vm5007_vm4, %v13850_v61  ;;  %v4943_v30 = vrot.slane %v13846_v45, 1 }
 0x3c2   : > { %vm4632_vm8 = vcmp.ge.f32.partialorder %v4578_v2, 0.0  ;;  %v4686_v8 = vmul.f32 0.01, %v4578_v2  ;;  %v11123_v9 = vadd.f32 %v4306_v3, %v15835_v15  ;;  %v4945_v5 = vrot.slane %v13844_v48, 1 }
 0x3c3   : > { %v13858_v52 = vsel %vm4633_vm5, %v4579_v27, %v4687_v31  ;;  %v4581_v12 = vadd.f32 %v11122_v40, %v13767_v53  ;;  %v13862_v19 = vsel %vm487_vm2, %v4942_v26, %v4943_v30  ;;  %v15842_v26 = vld [vmem:[#allocation113_spill] sm:$0xff] }
 0x3c4   : > { %15836 = vst [vmem:[#allocation51_spill] sm:$0xff] %v13862_v19  ;;  %v4740_v18 = vsel %vm4632_vm8, %v4578_v2, %v4686_v8  ;;  %v4580_v6 = vadd.f32 %v11123_v9, %v13767_v53  ;;  %v10555_v57 = vpop.f32.mrb[16].mxu0  ;;  %10621 = vmatprep.mubr.msk.f32.mxu1 %vm5007_vm4, %v13862_v19  ;;  %v13868_v32 = vsel %vm487_vm2, %v4943_v30, %v4945_v5  ;;  %v4948_v35 = vrot.slane %v13858_v52, 1  ;;  %v15911_v33 = vld [vmem:[#allocation47_spill] sm:$0xff] }
 0x3c5   : > { %15837 = vst [vmem:[#allocation71_spill] sm:$0xff] %v13868_v32  ;;  %v13873_v21 = vsel %vm4786_vm6, %v4740_v18, 0.0  ;;  %vm4635_vm9 = vcmp.ge.f32.partialorder %v4581_v12, 0.0  ;;  %v4689_v34 = vmul.f32 0.01, %v4581_v12  ;;  %v11124_v29 = vadd.f32 %v10555_v57, %v15838_v46  ;;  %v4316_v22 = vpop.f32.mrb[17].mxu0  ;;  %10622 = vmatmul.mubr.msk.f32.gmra.mrb[64].mxu1 %vm5007_vm4, %v13868_v32 }
 0x3c6   : > { %vm4634_vm10 = vcmp.ge.f32.partialorder %v4580_v6, 0.0  ;;  %v4688_v23 = vmul.f32 0.01, %v4580_v6  ;;  %v11125_v17 = vadd.f32 %v4316_v22, %v15839_v59  ;;  %v4947_v42 = vrot.slane %v13873_v21, 1  ;;  %v15845_v46 = vld [vmem:[#allocation115_spill] sm:$0xff] }
 0x3c7   : > { %v4743_v16 = vsel %vm4635_vm9, %v4581_v12, %v4689_v34  ;;  %v4583_v51 = vadd.f32 %v11124_v29, %v13767_v53  ;;  %v15844_v12 = vld [vmem:[#allocation114_spill] sm:$0xff] }
 0x3c8   : > { %v13883_v36 = vsel %vm4786_vm6, %v4743_v16, 0.0  ;;  %v4742_v44 = vsel %vm4634_vm10, %v4580_v6, %v4688_v23  ;;  %v4582_v7 = vadd.f32 %v11125_v17, %v13767_v53  ;;  %v10558_v55 = vpop.f32.mrb[18].mxu0  ;;  %v13887_v38 = vsel %vm487_vm2, %v4947_v42, %v4948_v35 }
 0x3c9   : > { %15840 = vst [vmem:[#allocation73_spill] sm:$0xff] %v13887_v38  ;;  %v13891_v25 = vsel %vm4797_vm7, %v4742_v44, 0.0  ;;  %vm4637_vm11 = vcmp.ge.f32.partialorder %v4583_v51, 0.0  ;;  %v4691_v0 = vmul.f32 0.01, %v4583_v51  ;;  %v11126_v47 = vadd.f32 %v10558_v55, %v15841_v37  ;;  %v4326_v14 = vpop.f32.mrb[19].mxu0  ;;  %10624 = vmatprep.mubr.msk.f32.mxu1 %vm5007_vm4, %v13887_v38 }
 0x3ca   : > { %vm4636_vm12 = vcmp.ge.f32.partialorder %v4582_v7, 0.0  ;;  %v4690_v27 = vmul.f32 0.01, %v4582_v7  ;;  %v11127_v2 = vadd.f32 %v4326_v14, %v15842_v26  ;;  %v4950_v63 = vrot.slane %v13891_v25, 1 }
 0x3cb   : > { %v4745_v31 = vsel %vm4637_vm11, %v4583_v51, %v4691_v0  ;;  %v4585_v11 = vadd.f32 %v11126_v47, %v13767_v53  ;;  %v4952_v40 = vrot.slane %v13883_v36, 1  ;;  %v15848_v0 = vld [vmem:[#allocation116_spill] sm:$0xff] }
 0x3cc   : > { %v13902_v3 = vsel %vm4797_vm7, %v4745_v31, 0.0  ;;  %v13904_v30 = vsel %vm4636_vm12, %v4582_v7, %v4690_v27  ;;  %v4584_v8 = vadd.f32 %v11127_v2, %v13767_v53  ;;  %v10561_v15 = vpop.f32.mrb[20].mxu0  ;;  %v13908_v9 = vsel %vm487_vm2, %v4948_v35, %v4950_v63  ;;  %v15849_v27 = vld [vmem:[#allocation117_spill] sm:$0xff] }
 0x3cd   : > { %15843 = vst [vmem:[#allocation75_spill] sm:$0xff] %v13908_v9  ;;  %vm4639_vm13 = vcmp.ge.f32.partialorder %v4585_v11, 0.0  ;;  %v4693_v5 = vmul.f32 0.01, %v4585_v11  ;;  %v11128_v18 = vadd.f32 %v10561_v15, %v15844_v12  ;;  %v4336_v6 = vpop.f32.mrb[21].mxu0  ;;  %10625 = vmatmul.mubr.msk.f32.gmra.mrb[66].mxu1 %vm5007_vm4, %v13908_v9  ;;  %v4953_v57 = vrot.slane %v13904_v30, 1 }
 0x3ce   : > { %vm4638_vm14 = vcmp.ge.f32.partialorder %v4584_v8, 0.0  ;;  %v4692_v34 = vmul.f32 0.01, %v4584_v8  ;;  %v11129_v29 = vadd.f32 %v4336_v6, %v15845_v46  ;;  %v4955_v22 = vrot.slane %v13902_v3, 1  ;;  %v15851_v6 = vld [vmem:[#allocation118_spill] sm:$0xff] }
 0x3cf   : > { %v13916_v23 = vsel %vm4639_vm13, %v4585_v11, %v4693_v5  ;;  %v4587_v35 = vadd.f32 %v11128_v18, %v13767_v53  ;;  %v13920_v59 = vsel %vm487_vm2, %v4952_v40, %v4953_v57 }
 0x3d0   : > { %15846 = vst [vmem:[#allocation79_spill] sm:$0xff] %v13920_v59  ;;  %v4746_v17 = vsel %vm4638_vm14, %v4584_v8, %v4692_v34  ;;  %v4586_v42 = vadd.f32 %v11129_v29, %v13767_v53  ;;  %v10564_v16 = vpop.f32.mrb[22].mxu0  ;;  %10627 = vmatprep.mubr.msk.f32.mxu1 %vm5007_vm4, %v13920_v59  ;;  %v13926_v51 = vsel %vm487_vm2, %v4953_v57, %v4955_v22  ;;  %v4958_v44 = vrot.slane %v13916_v23, 1  ;;  %v15852_v29 = vld [vmem:[#allocation119_spill] sm:$0xff] }
 0x3d1   : > { %15847 = vst [vmem:[#allocation83_spill] sm:$0xff] %v13926_v51  ;;  %v13931_v7 = vsel %vm4786_vm6, %v4746_v17, 0.0  ;;  %vm4641_vm15 = vcmp.ge.f32.partialorder %v4587_v35, 0.0  ;;  %v4695_v55 = vmul.f32 0.01, %v4587_v35  ;;  %v11130_v37 = vadd.f32 %v10564_v16, %v15848_v0  ;;  %v4346_v47 = vpop.f32.mrb[23].mxu0  ;;  %10628 = vmatmul.mubr.msk.f32.gmra.mrb[68].mxu1 %vm5007_vm4, %v13926_v51 }
 0x3d2   : > { %vm4640_vm5 = vcmp.ge.f32.partialorder %v4586_v42, 0.0  ;;  %v4694_v14 = vmul.f32 0.01, %v4586_v42  ;;  %v11131_v26 = vadd.f32 %v4346_v47, %v15849_v27  ;;  %v4957_v2 = vrot.slane %v13931_v7, 1 }
 0x3d3   : > { %v4749_v63 = vsel %vm4641_vm15, %v4587_v35, %v4695_v55  ;;  %v4589_v31 = vadd.f32 %v11130_v37, %v13767_v53 }
 0x3d4   : > { %v13941_v11 = vsel %vm4786_vm6, %v4749_v63, 0.0  ;;  %v4748_v40 = vsel %vm4640_vm5, %v4586_v42, %v4694_v14  ;;  %v4588_v8 = vadd.f32 %v11131_v26, %v13767_v53  ;;  %v10567_v15 = vpop.f32.mrb[24].mxu0  ;;  %v13945_v5 = vsel %vm487_vm2, %v4957_v2, %v4958_v44  ;;  %v15854_v26 = vld [vmem:[#allocation2_spill] sm:$0xff] }
 0x3d5   : > { %15850 = vst [vmem:[#allocation95_spill] sm:$0xff] %v13945_v5  ;;  %v13949_v12 = vsel %vm4797_vm7, %v4748_v40, 0.0  ;;  %vm4643_vm8 = vcmp.ge.f32.partialorder %v4589_v31, 0.0  ;;  %v4697_v18 = vmul.f32 0.01, %v4589_v31  ;;  %v11132_v57 = vadd.f32 %v10567_v15, %v15851_v6  ;;  %v4356_v34 = vpop.f32.mrb[25].mxu0  ;;  %10630 = vmatprep.mubr.msk.f32.mxu1 %vm5007_vm4, %v13945_v5 }
 0x3d6   : > { %vm4642_vm9 = vcmp.ge.f32.partialorder %v4588_v8, 0.0  ;;  %v4696_v46 = vmul.f32 0.01, %v4588_v8  ;;  %v11133_v22 = vadd.f32 %v4356_v34, %v15852_v29  ;;  %v4960_v35 = vrot.slane %v13949_v12, 1 }
 0x3d7   : > { %v4751_v17 = vsel %vm4643_vm8, %v4589_v31, %v4697_v18  ;;  %v4591_v42 = vadd.f32 %v11132_v57, %v13767_v53  ;;  %v4962_v16 = vrot.slane %v13941_v11, 1 }
 0x3d8   : > { %v13960_v55 = vsel %vm4797_vm7, %v4751_v17, 0.0  ;;  %v13962_v0 = vsel %vm4642_vm9, %v4588_v8, %v4696_v46  ;;  %v4590_v37 = vadd.f32 %v11133_v22, %v13767_v53  ;;  %v10570_v47 = vpop.f32.mrb[30].mxu0  ;;  %v13966_v14 = vsel %vm487_vm2, %v4958_v44, %v4960_v35  ;;  %v15855_v8 = vld [vmem:[#allocation3_spill] sm:$0xff] }
 0x3d9   : > { %15853 = vst [vmem:[#allocation98_spill] sm:$0xff] %v13966_v14  ;;  %vm4645_vm10 = vcmp.ge.f32.partialorder %v4591_v42, 0.0  ;;  %v4699_v27 = vmul.f32 0.01, %v4591_v42  ;;  %v11134_v2 = vadd.f32 %v10570_v47, %v15854_v26  ;;  %v4366_v63 = vpop.f32.mrb[31].mxu0  ;;  %10631 = vmatmul.mubr.msk.f32.gmra.mrb[70].mxu1 %vm5007_vm4, %v13966_v14  ;;  %v4963_v31 = vrot.slane %v13962_v0, 1 }
 0x3da   : > { %vm4644_vm11 = vcmp.ge.f32.partialorder %v4590_v37, 0.0  ;;  %v4698_v40 = vmul.f32 0.01, %v4590_v37  ;;  %v11135_v15 = vadd.f32 %v4366_v63, %v15855_v8  ;;  %v4965_v18 = vrot.slane %v13960_v55, 1  ;;  %v15859_v26 = vld [vmem:[#allocation5_spill] sm:$0xff] }
 0x3db   : > { %v13974_v6 = vsel %vm4645_vm10, %v4591_v42, %v4699_v27  ;;  %v4593_v44 = vadd.f32 %v11134_v2, %v13767_v53  ;;  %v13978_v57 = vsel %vm487_vm2, %v4962_v16, %v4963_v31  ;;  %v15858_v16 = vld [vmem:[#allocation4_spill] sm:$0xff] }
 0x3dc   : > { %15856 = vst [vmem:[#allocation99_spill] sm:$0xff] %v13978_v57  ;;  %v4752_v34 = vsel %vm4644_vm11, %v4590_v37, %v4698_v40  ;;  %v4592_v46 = vadd.f32 %v11135_v15, %v13767_v53  ;;  %v10573_v29 = vpop.f32.mrb[32].mxu0  ;;  %10633 = vmatprep.mubr.msk.f32.mxu1 %vm5007_vm4, %v13978_v57  ;;  %v13984_v22 = vsel %vm487_vm2, %v4963_v31, %v4965_v18  ;;  %v4968_v35 = vrot.slane %v13974_v6, 1 }
 0x3dd   : > { %15857 = vst [vmem:[#allocation38_spill] sm:$0xff] %v13984_v22  ;;  %v13989_v17 = vsel %vm4786_vm6, %v4752_v34, 0.0  ;;  %vm4647_vm12 = vcmp.ge.f32.partialorder %v4593_v44, 0.0  ;;  %v4701_v42 = vmul.f32 0.01, %v4593_v44  ;;  %v11136_v47 = vadd.f32 %v10573_v29, %v15858_v16  ;;  %v4376_v37 = vpop.f32.mrb[33].mxu0  ;;  %10634 = vmatmul.mubr.msk.f32.gmra.mrb[72].mxu1 %vm5007_vm4, %v13984_v22 }
 0x3de   : > { %vm4646_vm13 = vcmp.ge.f32.partialorder %v4592_v46, 0.0  ;;  %v4700_v27 = vmul.f32 0.01, %v4592_v46  ;;  %v11137_v2 = vadd.f32 %v4376_v37, %v15859_v26  ;;  %v4967_v63 = vrot.slane %v13989_v17, 1 }
 0x3df   : > { %v4755_v31 = vsel %vm4647_vm12, %v4593_v44, %v4701_v42  ;;  %v4595_v40 = vadd.f32 %v11136_v47, %v13767_v53  ;;  %v15861_v44 = vld [vmem:[#allocation6_spill] sm:$0xff] }
 0x3e0   : > { %v13999_v8 = vsel %vm4786_vm6, %v4755_v31, 0.0  ;;  %v4754_v15 = vsel %vm4646_vm13, %v4592_v46, %v4700_v27  ;;  %v4594_v18 = vadd.f32 %v11137_v2, %v13767_v53  ;;  %v10576_v34 = vpop.f32.mrb[34].mxu0  ;;  %v14003_v29 = vsel %vm487_vm2, %v4967_v63, %v4968_v35  ;;  %v15862_v27 = vld [vmem:[#allocation7_spill] sm:$0xff] }
 0x3e1   : > { %15860 = vst [vmem:[#allocation40_spill] sm:$0xff] %v14003_v29  ;;  %v14007_v16 = vsel %vm4797_vm7, %v4754_v15, 0.0  ;;  %vm4649_vm14 = vcmp.ge.f32.partialorder %v4595_v40, 0.0  ;;  %v4703_v37 = vmul.f32 0.01, %v4595_v40  ;;  %v11138_v42 = vadd.f32 %v10576_v34, %v15861_v44  ;;  %v4386_v47 = vpop.f32.mrb[35].mxu0  ;;  %10636 = vmatprep.mubr.msk.f32.mxu1 %vm5007_vm4, %v14003_v29 }
 0x3e2   : > { %vm4648_vm15 = vcmp.ge.f32.partialorder %v4594_v18, 0.0  ;;  %v4702_v46 = vmul.f32 0.01, %v4594_v18  ;;  %v11139_v26 = vadd.f32 %v4386_v47, %v15862_v27  ;;  %v4970_v2 = vrot.slane %v14007_v16, 1  ;;  %v15864_v27 = vld [vmem:[#allocation8_spill] sm:$0xff] }
 0x3e3   : > { %v4757_v63 = vsel %vm4649_vm14, %v4595_v40, %v4703_v37  ;;  %v4597_v31 = vadd.f32 %v11138_v42, %v13767_v53  ;;  %v4972_v15 = vrot.slane %v13999_v8, 1 }
 0x3e4   : > { %v14018_v4 = vsel %vm4797_vm7, %v4757_v63, 0.0  ;;  %v14020_v34 = vsel %vm4648_vm15, %v4594_v18, %v4702_v46  ;;  %v4596_v44 = vadd.f32 %v11139_v26, %v13767_v53  ;;  %v10579_v13 = vpop.f32.mrb[36].mxu0  ;;  %v14024_v1 = vsel %vm487_vm2, %v4968_v35, %v4970_v2  ;;  %v15865_v18 = vld [vmem:[#allocation9_spill] sm:$0xff] }
 0x3e5   : > { %15863 = vst [vmem:[#allocation42_spill] sm:$0xff] %v14024_v1  ;;  %vm4651_vm5 = vcmp.ge.f32.partialorder %v4597_v31, 0.0  ;;  %v4705_v47 = vmul.f32 0.01, %v4597_v31  ;;  %v11140_v40 = vadd.f32 %v10579_v13, %v15864_v27  ;;  %v4396_v37 = vpop.f32.mrb[37].mxu0  ;;  %10637 = vmatmul.mubr.msk.f32.gmra.mrb[74].mxu1 %vm5007_vm4, %v14024_v1  ;;  %v4973_v42 = vrot.slane %v14020_v34, 1 }
 0x3e6   : > { %vm4650_vm8 = vcmp.ge.f32.partialorder %v4596_v44, 0.0  ;;  %v4704_v63 = vmul.f32 0.01, %v4596_v44  ;;  %v11141_v46 = vadd.f32 %v4396_v37, %v15865_v18  ;;  %v4975_v26 = vrot.slane %v14018_v4, 1  ;;  %v15869_v18 = vld [vmem:[#allocation12_spill] sm:$0xff] }
 0x3e7   : > { %v14032_v54 = vsel %vm4651_vm5, %v4597_v31, %v4705_v47  ;;  %v4599_v35 = vadd.f32 %v11140_v40, %v13767_v53  ;;  %v14036_v2 = vsel %vm487_vm2, %v4972_v15, %v4973_v42  ;;  %v15868_v15 = vld [vmem:[#allocation11_spill] sm:$0xff] }
 0x3e8   : > { %15866 = vst [vmem:[#allocation44_spill] sm:$0xff] %v14036_v2  ;;  %v4758_v13 = vsel %vm4650_vm8, %v4596_v44, %v4704_v63  ;;  %v4598_v27 = vadd.f32 %v11141_v46, %v13767_v53  ;;  %v10582_v29 = vpop.f32.mrb[38].mxu0  ;;  %10639 = vmatprep.mubr.msk.f32.mxu1 %vm5007_vm4, %v14036_v2  ;;  %v14042_v1 = vsel %vm487_vm2, %v4973_v42, %v4975_v26  ;;  %v4978_v37 = vrot.slane %v14032_v54, 1 }
 0x3e9   : > { %15867 = vst [vmem:[#allocation46_spill] sm:$0xff] %v14042_v1  ;;  %v14047_v31 = vsel %vm4786_vm6, %v4758_v13, 0.0  ;;  %vm4653_vm9 = vcmp.ge.f32.partialorder %v4599_v35, 0.0  ;;  %v4707_v47 = vmul.f32 0.01, %v4599_v35  ;;  %v11142_v40 = vadd.f32 %v10582_v29, %v15868_v15  ;;  %v4406_v44 = vpop.f32.mrb[39].mxu0  ;;  %10640 = vmatmul.mubr.msk.f32.gmra.mrb[76].mxu1 %vm5007_vm4, %v14042_v1 }
 0x3ea   : > { %vm4652_vm10 = vcmp.ge.f32.partialorder %v4598_v27, 0.0  ;;  %v4706_v63 = vmul.f32 0.01, %v4598_v27  ;;  %v11143_v46 = vadd.f32 %v4406_v44, %v15869_v18  ;;  %v4977_v42 = vrot.slane %v14047_v31, 1 }
 0x3eb   : > { %v4761_v26 = vsel %vm4653_vm9, %v4599_v35, %v4707_v47  ;;  %v4601_v2 = vadd.f32 %v11142_v40, %v13767_v53  ;;  %v15871_v35 = vld [vmem:[#allocation16_spill] sm:$0xff] }
 0x3ec   : > { %v14057_v13 = vsel %vm4786_vm6, %v4761_v26, 0.0  ;;  %v4760_v22 = vsel %vm4652_vm10, %v4598_v27, %v4706_v63  ;;  %v4600_v29 = vadd.f32 %v11143_v46, %v13767_v53  ;;  %v10585_v15 = vpop.f32.mrb[40].mxu0  ;;  %v14061_v57 = vsel %vm487_vm2, %v4977_v42, %v4978_v37  ;;  %v15872_v63 = vld [vmem:[#allocation17_spill] sm:$0xff] }
 0x3ed   : > { %15870 = vst [vmem:[#allocation48_spill] sm:$0xff] %v14061_v57  ;;  %v14065_v1 = vsel %vm4797_vm7, %v4760_v22, 0.0  ;;  %vm4655_vm11 = vcmp.ge.f32.partialorder %v4601_v2, 0.0  ;;  %v4709_v44 = vmul.f32 0.01, %v4601_v2  ;;  %v11144_v47 = vadd.f32 %v10585_v15, %v15871_v35  ;;  %v4416_v40 = vpop.f32.mrb[41].mxu0  ;;  %10642 = vmatprep.mubr.msk.f32.mxu1 %vm5007_vm4, %v14061_v57 }
 0x3ee   : > { %vm4654_vm12 = vcmp.ge.f32.partialorder %v4600_v29, 0.0  ;;  %v4708_v27 = vmul.f32 0.01, %v4600_v29  ;;  %v11145_v18 = vadd.f32 %v4416_v40, %v15872_v63  ;;  %v4980_v46 = vrot.slane %v14065_v1, 1  ;;  %v15874_v63 = vld [vmem:[#allocation20_spill] sm:$0xff] }
 0x3ef   : > { %v4763_v42 = vsel %vm4655_vm11, %v4601_v2, %v4709_v44  ;;  %v4603_v26 = vadd.f32 %v11144_v47, %v13767_v53  ;;  %v4982_v22 = vrot.slane %v14057_v13, 1 }
 0x3f0   : > { %v14076_v14 = vsel %vm4797_vm7, %v4763_v42, 0.0  ;;  %v14078_v15 = vsel %vm4654_vm12, %v4600_v29, %v4708_v27  ;;  %v4602_v35 = vadd.f32 %v11145_v18, %v13767_v53  ;;  %v10588_v57 = vpop.f32.mrb[42].mxu0  ;;  %v14082_v5 = vsel %vm487_vm2, %v4978_v37, %v4980_v46  ;;  %v15875_v29 = vld [vmem:[#allocation21_spill] sm:$0xff] }
 0x3f1   : > { %15873 = vst [vmem:[#allocation50_spill] sm:$0xff] %v14082_v5  ;;  %vm4657_vm13 = vcmp.ge.f32.partialorder %v4603_v26, 0.0  ;;  %v4711_v40 = vmul.f32 0.01, %v4603_v26  ;;  %v11146_v2 = vadd.f32 %v10588_v57, %v15874_v63  ;;  %v4426_v44 = vpop.f32.mrb[43].mxu0  ;;  %10643 = vmatmul.mubr.msk.f32.gmra.mrb[78].mxu1 %vm5007_vm4, %v14082_v5  ;;  %v4983_v47 = vrot.slane %v14078_v15, 1 }
 0x3f2   : > { %vm4656_vm14 = vcmp.ge.f32.partialorder %v4602_v35, 0.0  ;;  %v4710_v42 = vmul.f32 0.01, %v4602_v35  ;;  %v11147_v27 = vadd.f32 %v4426_v44, %v15875_v29  ;;  %v4985_v18 = vrot.slane %v14076_v14, 1  ;;  %v15879_v29 = vld [vmem:[#allocation24_spill] sm:$0xff] }
 0x3f3   : > { %v14090_v51 = vsel %vm4657_vm13, %v4603_v26, %v4711_v40  ;;  %v4605_v37 = vadd.f32 %v11146_v2, %v13767_v53  ;;  %v14094_v46 = vsel %vm487_vm2, %v4982_v22, %v4983_v47  ;;  %v15878_v22 = vld [vmem:[#allocation23_spill] sm:$0xff] }
 0x3f4   : > { %15876 = vst [vmem:[#allocation52_spill] sm:$0xff] %v14094_v46  ;;  %v4764_v57 = vsel %vm4656_vm14, %v4602_v35, %v4710_v42  ;;  %v4604_v63 = vadd.f32 %v11147_v27, %v13767_v53  ;;  %v10591_v59 = vpop.f32.mrb[44].mxu0  ;;  %10645 = vmatprep.mubr.msk.f32.mxu1 %vm5007_vm4, %v14094_v46  ;;  %v14100_v5 = vsel %vm487_vm2, %v4983_v47, %v4985_v18  ;;  %v4988_v44 = vrot.slane %v14090_v51, 1 }
 0x3f5   : > { %15877 = vst [vmem:[#allocation54_spill] sm:$0xff] %v14100_v5  ;;  %v14105_v26 = vsel %vm4786_vm6, %v4764_v57, 0.0  ;;  %vm4659_vm15 = vcmp.ge.f32.partialorder %v4605_v37, 0.0  ;;  %v4713_v40 = vmul.f32 0.01, %v4605_v37  ;;  %v11148_v2 = vadd.f32 %v10591_v59, %v15878_v22  ;;  %v4436_v35 = vpop.f32.mrb[45].mxu0  ;;  %10646 = vmatmul.mubr.msk.f32.gmra.mrb[80].mxu1 %vm5007_vm4, %v14100_v5 }
 0x3f6   : > { %vm4658_vm5 = vcmp.ge.f32.partialorder %v4604_v63, 0.0  ;;  %v4712_v42 = vmul.f32 0.01, %v4604_v63  ;;  %v11149_v27 = vadd.f32 %v4436_v35, %v15879_v29  ;;  %v4987_v47 = vrot.slane %v14105_v26, 1 }
 0x3f7   : > { %v4767_v18 = vsel %vm4659_vm15, %v4605_v37, %v4713_v40  ;;  %v4607_v46 = vadd.f32 %v11148_v2, %v13767_v53  ;;  %v15881_v37 = vld [vmem:[#allocation28_spill] sm:$0xff] }
 0x3f8   : > { %v14115_v57 = vsel %vm4786_vm6, %v4767_v18, 0.0  ;;  %v4766_v9 = vsel %vm4658_vm5, %v4604_v63, %v4712_v42  ;;  %v4606_v59 = vadd.f32 %v11149_v27, %v13767_v53  ;;  %v10594_v22 = vpop.f32.mrb[46].mxu0  ;;  %v14119_v38 = vsel %vm487_vm2, %v4987_v47, %v4988_v44  ;;  %v15882_v42 = vld [vmem:[#allocation29_spill] sm:$0xff] }
 0x3f9   : > { %15880 = vst [vmem:[#allocation56_spill] sm:$0xff] %v14119_v38  ;;  %v14123_v5 = vsel %vm4797_vm7, %v4766_v9, 0.0  ;;  %vm4661_vm8 = vcmp.ge.f32.partialorder %v4607_v46, 0.0  ;;  %v4715_v35 = vmul.f32 0.01, %v4607_v46  ;;  %v11150_v40 = vadd.f32 %v10594_v22, %v15881_v37  ;;  %v4446_v2 = vpop.f32.mrb[47].mxu0  ;;  %10648 = vmatprep.mubr.msk.f32.mxu1 %vm5007_vm4, %v14119_v38 }
 0x3fa   : > { %vm4660_vm9 = vcmp.ge.f32.partialorder %v4606_v59, 0.0  ;;  %v4714_v63 = vmul.f32 0.01, %v4606_v59  ;;  %v11151_v29 = vadd.f32 %v4446_v2, %v15882_v42  ;;  %v4990_v27 = vrot.slane %v14123_v5, 1  ;;  %v15884_v42 = vld [vmem:[#allocation32_spill] sm:$0xff] }
 0x3fb   : > { %v4769_v47 = vsel %vm4661_vm8, %v4607_v46, %v4715_v35  ;;  %v4609_v18 = vadd.f32 %v11150_v40, %v13767_v53  ;;  %v4992_v9 = vrot.slane %v14115_v57, 1 }
 0x3fc   : > { %v14134_v32 = vsel %vm4797_vm7, %v4769_v47, 0.0  ;;  %v14136_v22 = vsel %vm4660_vm9, %v4606_v59, %v4714_v63  ;;  %v4608_v37 = vadd.f32 %v11151_v29, %v13767_v53  ;;  %v10597_v38 = vpop.f32.mrb[48].mxu0  ;;  %v14140_v19 = vsel %vm487_vm2, %v4988_v44, %v4990_v27  ;;  %v15885_v59 = vld [vmem:[#allocation33_spill] sm:$0xff] }
 0x3fd   : > { %15883 = vst [vmem:[#allocation58_spill] sm:$0xff] %v14140_v19  ;;  %vm4663_vm10 = vcmp.ge.f32.partialorder %v4609_v18, 0.0  ;;  %v4717_v2 = vmul.f32 0.01, %v4609_v18  ;;  %v11152_v46 = vadd.f32 %v10597_v38, %v15884_v42  ;;  %v4456_v35 = vpop.f32.mrb[49].mxu0  ;;  %10649 = vmatmul.mubr.msk.f32.gmra.mrb[82].mxu1 %vm5007_vm4, %v14140_v19  ;;  %v4993_v40 = vrot.slane %v14136_v22, 1 }
 0x3fe   : > { %vm4662_vm11 = vcmp.ge.f32.partialorder %v4608_v37, 0.0  ;;  %v4716_v47 = vmul.f32 0.01, %v4608_v37  ;;  %v11153_v63 = vadd.f32 %v4456_v35, %v15885_v59  ;;  %v4995_v29 = vrot.slane %v14134_v32, 1  ;;  %v15889_v59 = vld [vmem:[#allocation35_spill] sm:$0xff] }
 0x3ff   : > { %v14148_v61 = vsel %vm4663_vm10, %v4609_v18, %v4717_v2  ;;  %v4611_v44 = vadd.f32 %v11152_v46, %v13767_v53  ;;  %v14152_v27 = vsel %vm487_vm2, %v4992_v9, %v4993_v40  ;;  %v15888_v9 = vld [vmem:[#allocation34_spill] sm:$0xff] }
 0x400   : > { %15886 = vst [vmem:[#allocation60_spill] sm:$0xff] %v14152_v27  ;;  %v4770_v38 = vsel %vm4662_vm11, %v4608_v37, %v4716_v47  ;;  %v4610_v42 = vadd.f32 %v11153_v63, %v13767_v53  ;;  %v10600_v20 = vpop.f32.mrb[50].mxu0  ;;  %10651 = vmatprep.mubr.msk.f32.mxu1 %vm5007_vm4, %v14152_v27  ;;  %v14158_v19 = vsel %vm487_vm2, %v4993_v40, %v4995_v29  ;;  %v4998_v35 = vrot.slane %v14148_v61, 1 }
 0x401   : > { %15887 = vst [vmem:[#allocation62_spill] sm:$0xff] %v14158_v19  ;;  %v14163_v18 = vsel %vm4786_vm6, %v4770_v38, 0.0  ;;  %vm4665_vm12 = vcmp.ge.f32.partialorder %v4611_v44, 0.0  ;;  %v4719_v2 = vmul.f32 0.01, %v4611_v44  ;;  %v11154_v46 = vadd.f32 %v10600_v20, %v15888_v9  ;;  %v4466_v37 = vpop.f32.mrb[51].mxu0  ;;  %10652 = vmatmul.mubr.msk.f32.gmra.mrb[84].mxu1 %vm5007_vm4, %v14158_v19 }
 0x402   : > { %vm4664_vm13 = vcmp.ge.f32.partialorder %v4610_v42, 0.0  ;;  %v4718_v47 = vmul.f32 0.01, %v4610_v42  ;;  %v11155_v63 = vadd.f32 %v4466_v37, %v15889_v59  ;;  %v4997_v40 = vrot.slane %v14163_v18, 1 }
 0x403   : > { %v4773_v29 = vsel %vm4665_vm12, %v4611_v44, %v4719_v2  ;;  %v4613_v27 = vadd.f32 %v11154_v46, %v13767_v53  ;;  %v15890_v44 = vld [vmem:[#allocation37_spill] sm:$0xff] }
 0x404   : > { %v14173_v38 = vsel %vm4786_vm6, %v4773_v29, 0.0  ;;  %v4772_v28 = vsel %vm4664_vm13, %v4610_v42, %v4718_v47  ;;  %v4612_v20 = vadd.f32 %v11155_v63, %v13767_v53  ;;  %v10603_v9 = vpop.f32.mrb[52].mxu0  ;;  %v14177_v41 = vsel %vm487_vm2, %v4997_v40, %v4998_v35  ;;  %v15891_v53 = vld [vmem:[#allocation120_spill] sm:$0xff] }
 0x405   : > { %v14181_v19 = vsel %vm4797_vm7, %v4772_v28, 0.0  ;;  %vm4667_vm14 = vcmp.ge.f32.partialorder %v4613_v27, 0.0  ;;  %v4721_v37 = vmul.f32 0.01, %v4613_v27  ;;  %v14184_v2 = vadd.f32 %v10603_v9, %v15890_v44  ;;  %v4476_v46 = vpop.f32.mrb[53].mxu0  ;;  %10654 = vmatprep.mubr.msk.f32.mxu1 %vm5007_vm4, %v14177_v41 }
 0x406   : > { %vm4666_vm15 = vcmp.ge.f32.partialorder %v4612_v20, 0.0  ;;  %v4720_v42 = vmul.f32 0.01, %v4612_v20  ;;  %v14189_v47 = vadd.f32 %v4476_v46, %v15891_v53  ;;  %v5000_v59 = vrot.slane %v14181_v19, 1 }
 0x407   : > { %v4775_v63 = vsel %vm4667_vm14, %v4613_v27, %v4721_v37  ;;  %v5002_v46 = vrot.slane %v14173_v38, 1 }
 0x408   : > { %v14194_v28 = vsel %vm4797_vm7, %v4775_v63, 0.0  ;;  %v14196_v40 = vsel %vm4666_vm15, %v4612_v20, %v4720_v42  ;;  %v10606_v29 = vpop.f32.mrb[102].mxu0  ;;  %v14199_v9 = vsel %vm487_vm2, %v4998_v35, %v5000_v59  ;;  %v15892_v35 = vmov 0.0   ;;  %v4873_v59 = vld [vmem:[%s15235_s4 + $0x18] sm:$0xff] }
 0x409   : > { %v4486_v44 = vpop.f32.mrb[103].mxu0  ;;  %10655 = vmatmul.mubr.msk.f32.gmra.mrb[86].mxu1 %vm5007_vm4, %v14199_v9  ;;  %v5003_v53 = vrot.slane %v14196_v40, 1  ;;  %v5005_v27 = vrot.slane %v14194_v28, 1  ;;  %v5591_v63 = vrot.slane %v13783_v39, 2  ;;  %v5594_v29 = vrot.slane %v13790_v50, 2 }
 0x40a   : > { %v14207_v37 = vadd.f32 %v4486_v44, %v13762_v43  ;;  %v5592_v43 = vrot.slane %v13792_v56, 2  ;;  %v14296_v44 = vld [vmem:[%s15235_s4 + $0x20] sm:$0xff] }
 0x40b   : > { %v14210_v20 = vsel %vm487_vm2, %v5002_v46, %v5003_v53  ;;  %v14213_v42 = vsel %vm487_vm2, %v5003_v53, %v5005_v27  ;;  %v5596_v53 = vrot.slane %v13815_v10, 2  ;;  %v5597_v27 = vrot.slane %v13800_v49, 2 }
 0x40c   : > { %10657 = vmatprep.mubr.msk.f32.mxu1 %vm5007_vm4, %v14210_v20  ;;  %v14301_v46 = vsel %vm1508_vm3, %v5591_v63, %v5592_v43  ;;  %v14309_v50 = vsel %vm1508_vm3, %v5592_v43, %v5594_v29  ;;  %v5604_v43 = vrot.slane %v13844_v48, 2  ;;  %v5606_v29 = vrot.slane %v13873_v21, 2 }
 0x40d   : > { %10658 = vmatmul.mubr.msk.f32.gmra.mrb[88].mxu1 %vm5007_vm4, %v14213_v42  ;;  %15894 = vst [vmem:[#allocation66_spill] sm:$0xff] %v14301_v46  ;;  %v14315_v63 = vsel %vm1508_vm3, %v5596_v53, %v5597_v27  ;;  %v5607_v53 = vrot.slane %v13858_v52, 2 }
 0x40e   : > { %10662 = vmatprep.mubr.f32.mxu1 %v15892_v35  ;;  %15895 = vst [vmem:[#allocation68_spill] sm:$0xff] %v14315_v63 }
 0x40f   : > { %v14341_v48 = vsel %vm1508_vm3, %v5606_v29, %v5607_v53  ;;  %v5617_v29 = vrot.slane %v13916_v23, 2 }
 0x410   : > { %15897 = vst [vmem:[#allocation72_spill] sm:$0xff] %v14341_v48 }
 0x411   : > { %10663 = vmatmul.mubr.f32.vlgmr.msra.gmra.mrb[58].mxu1 %v15892_v35 }
 0x412   : > { %10711 = vmatpush3.msra.mxu1 %v13759_v62  ;;  %10665 = vmatprep.mubr.msk.f32.mxu1 %vm5007_vm4, %v13783_v39  ;;  %v14284_v62 = vrot.slane %v15892_v35, 2  ;;  %v5599_v35 = vrot.slane %v13833_v60, 2 }
 0x413   : > { %10760 = vmatprep.subr.mxu1 %v4873_v59 }
 0x414   : > { %15893 = vst [vmem:[#allocation64_spill] sm:$0xff] %v14284_v62 }
 0x415   : > { %10666 = vmatmul.mubr.msk.f32.gmra.mrb[60].mxu1 %vm5007_vm4, %v13792_v56 }
 0x416   : > { %10668 = vmatprep.mubr.msk.f32.mxu1 %vm5007_vm4, %v13815_v10 }
 0x419   : > { %10669 = vmatmul.mubr.msk.f32.gmra.mrb[62].mxu1 %vm5007_vm4, %v13800_v49 }
 0x41a   : > { %10671 = vmatprep.mubr.msk.f32.mxu1 %vm5007_vm4, %v13825_v24 }
 0x41d   : > { %10672 = vmatmul.mubr.msk.f32.gmra.mrb[64].mxu1 %vm5007_vm4, %v13846_v45 }
 0x41e   : > { %10674 = vmatprep.mubr.msk.f32.mxu1 %vm5007_vm4, %v13873_v21 }
 0x421   : > { %10675 = vmatmul.mubr.msk.f32.gmra.mrb[66].mxu1 %vm5007_vm4, %v13858_v52 }
 0x422   : > { %10677 = vmatprep.mubr.msk.f32.mxu1 %vm5007_vm4, %v13883_v36 }
 0x425   : > { %10678 = vmatmul.mubr.msk.f32.gmra.mrb[68].mxu1 %vm5007_vm4, %v13904_v30 }
 0x426   : > { %10680 = vmatprep.mubr.msk.f32.mxu1 %vm5007_vm4, %v13931_v7 }
 0x429   : > { %10681 = vmatmul.mubr.msk.f32.gmra.mrb[70].mxu1 %vm5007_vm4, %v13916_v23 }
 0x42a   : > { %10683 = vmatprep.mubr.msk.f32.mxu1 %vm5007_vm4, %v13941_v11 }
 0x42d   : > { %10684 = vmatmul.mubr.msk.f32.gmra.mrb[72].mxu1 %vm5007_vm4, %v13962_v0 }
 0x42e   : > { %10686 = vmatprep.mubr.msk.f32.mxu1 %vm5007_vm4, %v13989_v17 }
 0x431   : > { %10687 = vmatmul.mubr.msk.f32.gmra.mrb[74].mxu1 %vm5007_vm4, %v13974_v6 }
 0x432   : > { %10689 = vmatprep.mubr.msk.f32.mxu1 %vm5007_vm4, %v13999_v8 }
 0x435   : > { %10690 = vmatmul.mubr.msk.f32.gmra.mrb[76].mxu1 %vm5007_vm4, %v14020_v34 }
 0x436   : > { %10692 = vmatprep.mubr.msk.f32.mxu1 %vm5007_vm4, %v14047_v31 }
 0x439   : > { %10693 = vmatmul.mubr.msk.f32.gmra.mrb[78].mxu1 %vm5007_vm4, %v14032_v54 }
 0x43a   : > { %10695 = vmatprep.mubr.msk.f32.mxu1 %vm5007_vm4, %v14057_v13 }
 0x43d   : > { %10696 = vmatmul.mubr.msk.f32.gmra.mrb[80].mxu1 %vm5007_vm4, %v14078_v15 }
 0x43e   : > { %10698 = vmatprep.mubr.msk.f32.mxu1 %vm5007_vm4, %v14105_v26 }
 0x441   : > { %10699 = vmatmul.mubr.msk.f32.gmra.mrb[82].mxu1 %vm5007_vm4, %v14090_v51 }
 0x442   : > { %10701 = vmatprep.mubr.msk.f32.mxu1 %vm5007_vm4, %v14115_v57 }
 0x445   : > { %10702 = vmatmul.mubr.msk.f32.gmra.mrb[84].mxu1 %vm5007_vm4, %v14136_v22 }
 0x446   : > { %10704 = vmatprep.mubr.msk.f32.mxu1 %vm5007_vm4, %v14163_v18 }
 0x449   : > { %10705 = vmatmul.mubr.msk.f32.gmra.mrb[86].mxu1 %vm5007_vm4, %v14148_v61 }
 0x44a   : > { %10707 = vmatprep.mubr.msk.f32.mxu1 %vm5007_vm4, %v14173_v38 }
 0x44d   : > { %10708 = vmatmul.mubr.msk.f32.gmra.mrb[88].mxu1 %vm5007_vm4, %v14196_v40 }
 0x44e   : > { %10712 = vmatprep.mubr.msk.f32.mxu1 %vm5007_vm4, %v14284_v62 }
 0x451   : > { %10713 = vmatmul.mubr.msk.f32.vlgmr.msra.gmra.mrb[58].mxu1 %vm5007_vm4, %v14284_v62  ;;  %v5601_v62 = vrot.slane %v13825_v24, 2 }
 0x452   : > { %10761 = vmatpush3.msra.mxu1 %v4873_v59  ;;  %10715 = vmatprep.mubr.msk.f32.mxu1 %vm5007_vm4, %v14301_v46  ;;  %v5602_v59 = vrot.slane %v13846_v45, 2  ;;  %v14322_v46 = vsel %vm1508_vm3, %v5597_v27, %v5599_v35  ;;  %v5609_v35 = vrot.slane %v13891_v25, 2  ;;  %v5611_v27 = vrot.slane %v13883_v36, 2 }
 0x453   : > { %10810 = vmatprep.subr.mxu1 %v14296_v44 }
 0x454   : > { %v14328_v60 = vsel %vm1508_vm3, %v5601_v62, %v5602_v59  ;;  %v5612_v62 = vrot.slane %v13904_v30, 2 }
 0x455   : > { %10716 = vmatmul.mubr.msk.f32.gmra.mrb[60].mxu1 %vm5007_vm4, %v14309_v50  ;;  %15896 = vst [vmem:[#allocation70_spill] sm:$0xff] %v14328_v60 }
 0x456   : > { %10718 = vmatprep.mubr.msk.f32.mxu1 %vm5007_vm4, %v14315_v63  ;;  %v14335_v63 = vsel %vm1508_vm3, %v5602_v59, %v5604_v43  ;;  %v5614_v59 = vrot.slane %v13902_v3, 2  ;;  %v14354_v25 = vsel %vm1508_vm3, %v5611_v27, %v5612_v62  ;;  %v5616_v43 = vrot.slane %v13931_v7, 2 }
 0x457   : > { %15898 = vst [vmem:[#allocation74_spill] sm:$0xff] %v14354_v25  ;;  %v5621_v27 = vrot.slane %v13941_v11, 2 }
 0x458   : > { %v14367_v3 = vsel %vm1508_vm3, %v5616_v43, %v5617_v29  ;;  %v5627_v43 = vrot.slane %v13974_v6, 2 }
 0x459   : > { %10719 = vmatmul.mubr.msk.f32.gmra.mrb[62].mxu1 %vm5007_vm4, %v14322_v46  ;;  %15899 = vst [vmem:[#allocation76_spill] sm:$0xff] %v14367_v3 }
 0x45a   : > { %10721 = vmatprep.mubr.msk.f32.mxu1 %vm5007_vm4, %v14328_v60  ;;  %v14348_v60 = vsel %vm1508_vm3, %v5607_v53, %v5609_v35  ;;  %v5619_v53 = vrot.slane %v13949_v12, 2  ;;  %v5622_v35 = vrot.slane %v13962_v0, 2 }
 0x45c   : > { %v14380_v12 = vsel %vm1508_vm3, %v5621_v27, %v5622_v35  ;;  %v5631_v27 = vrot.slane %v13999_v8, 2 }
 0x45d   : > { %10722 = vmatmul.mubr.msk.f32.gmra.mrb[64].mxu1 %vm5007_vm4, %v14335_v63  ;;  %15900 = vst [vmem:[#allocation78_spill] sm:$0xff] %v14380_v12 }
 0x45e   : > { %10724 = vmatprep.mubr.msk.f32.mxu1 %vm5007_vm4, %v14341_v48  ;;  %v14361_v48 = vsel %vm1508_vm3, %v5612_v62, %v5614_v59  ;;  %v5624_v62 = vrot.slane %v13960_v55, 2  ;;  %v5626_v59 = vrot.slane %v13989_v17, 2 }
 0x460   : > { %v14393_v55 = vsel %vm1508_vm3, %v5626_v59, %v5627_v43  ;;  %v5637_v59 = vrot.slane %v14032_v54, 2 }
 0x461   : > { %10725 = vmatmul.mubr.msk.f32.gmra.mrb[66].mxu1 %vm5007_vm4, %v14348_v60  ;;  %15901 = vst [vmem:[#allocation80_spill] sm:$0xff] %v14393_v55 }
 0x462   : > { %10727 = vmatprep.mubr.msk.f32.mxu1 %vm5007_vm4, %v14354_v25  ;;  %v14374_v25 = vsel %vm1508_vm3, %v5617_v29, %v5619_v53  ;;  %v5629_v29 = vrot.slane %v14007_v16, 2  ;;  %v5632_v53 = vrot.slane %v14020_v34, 2 }
 0x464   : > { %v14406_v16 = vsel %vm1508_vm3, %v5631_v27, %v5632_v53  ;;  %v5641_v27 = vrot.slane %v14057_v13, 2 }
 0x465   : > { %10728 = vmatmul.mubr.msk.f32.gmra.mrb[68].mxu1 %vm5007_vm4, %v14361_v48  ;;  %15902 = vst [vmem:[#allocation82_spill] sm:$0xff] %v14406_v16 }
 0x466   : > { %10730 = vmatprep.mubr.msk.f32.mxu1 %vm5007_vm4, %v14367_v3  ;;  %v14387_v3 = vsel %vm1508_vm3, %v5622_v35, %v5624_v62  ;;  %v5634_v35 = vrot.slane %v14018_v4, 2  ;;  %v5636_v62 = vrot.slane %v14047_v31, 2 }
 0x468   : > { %v14419_v4 = vsel %vm1508_vm3, %v5636_v62, %v5637_v59  ;;  %v5647_v62 = vrot.slane %v14090_v51, 2 }
 0x469   : > { %10731 = vmatmul.mubr.msk.f32.gmra.mrb[70].mxu1 %vm5007_vm4, %v14374_v25  ;;  %15903 = vst [vmem:[#allocation84_spill] sm:$0xff] %v14419_v4 }
 0x46a   : > { %10733 = vmatprep.mubr.msk.f32.mxu1 %vm5007_vm4, %v14380_v12  ;;  %v14400_v12 = vsel %vm1508_vm3, %v5627_v43, %v5629_v29  ;;  %v5639_v43 = vrot.slane %v14065_v1, 2  ;;  %v5642_v29 = vrot.slane %v14078_v15, 2 }
 0x46c   : > { %v14432_v1 = vsel %vm1508_vm3, %v5641_v27, %v5642_v29  ;;  %v5651_v27 = vrot.slane %v14115_v57, 2 }
 0x46d   : > { %10734 = vmatmul.mubr.msk.f32.gmra.mrb[72].mxu1 %vm5007_vm4, %v14387_v3  ;;  %15904 = vst [vmem:[#allocation86_spill] sm:$0xff] %v14432_v1 }
 0x46e   : > { %10736 = vmatprep.mubr.msk.f32.mxu1 %vm5007_vm4, %v14393_v55  ;;  %v14413_v55 = vsel %vm1508_vm3, %v5632_v53, %v5634_v35  ;;  %v5644_v53 = vrot.slane %v14076_v14, 2  ;;  %v5646_v35 = vrot.slane %v14105_v26, 2 }
 0x470   : > { %v14445_v14 = vsel %vm1508_vm3, %v5646_v35, %v5647_v62  ;;  %v5657_v35 = vrot.slane %v14148_v61, 2 }
 0x471   : > { %10737 = vmatmul.mubr.msk.f32.gmra.mrb[74].mxu1 %vm5007_vm4, %v14400_v12  ;;  %15905 = vst [vmem:[#allocation88_spill] sm:$0xff] %v14445_v14 }
 0x472   : > { %10739 = vmatprep.mubr.msk.f32.mxu1 %vm5007_vm4, %v14406_v16  ;;  %v14426_v16 = vsel %vm1508_vm3, %v5637_v59, %v5639_v43  ;;  %v5649_v59 = vrot.slane %v14123_v5, 2  ;;  %v5652_v43 = vrot.slane %v14136_v22, 2 }
 0x474   : > { %v14458_v5 = vsel %vm1508_vm3, %v5651_v27, %v5652_v43  ;;  %v5661_v27 = vrot.slane %v14173_v38, 2 }
 0x475   : > { %10740 = vmatmul.mubr.msk.f32.gmra.mrb[76].mxu1 %vm5007_vm4, %v14413_v55  ;;  %15907 = vst [vmem:[#allocation36_spill] sm:$0xff] %v14458_v5 }
 0x476   : > { %10742 = vmatprep.mubr.msk.f32.mxu1 %vm5007_vm4, %v14419_v4  ;;  %v14439_v4 = vsel %vm1508_vm3, %v5642_v29, %v5644_v53  ;;  %v5654_v29 = vrot.slane %v14134_v32, 2  ;;  %v5656_v53 = vrot.slane %v14163_v18, 2 }
 0x478   : > { %v14471_v32 = vsel %vm1508_vm3, %v5656_v53, %v5657_v35 }
 0x479   : > { %10743 = vmatmul.mubr.msk.f32.gmra.mrb[78].mxu1 %vm5007_vm4, %v14426_v16  ;;  %15908 = vst [vmem:[#allocation53_spill] sm:$0xff] %v14471_v32 }
 0x47a   : > { %10745 = vmatprep.mubr.msk.f32.mxu1 %vm5007_vm4, %v14432_v1  ;;  %v14452_v1 = vsel %vm1508_vm3, %v5647_v62, %v5649_v59  ;;  %v5659_v62 = vrot.slane %v14181_v19, 2  ;;  %v5662_v59 = vrot.slane %v14196_v40, 2 }
 0x47b   : > { %15906 = vst [vmem:[#allocation90_spill] sm:$0xff] %v14452_v1 }
 0x47c   : > { %v14484_v19 = vsel %vm1508_vm3, %v5661_v27, %v5662_v59  ;;  %v4876_v27 = vld [vmem:[%s15235_s4 + $0x30] sm:$0xff] }
 0x47d   : > { %10746 = vmatmul.mubr.msk.f32.gmra.mrb[80].mxu1 %vm5007_vm4, %v14439_v4 }
 0x47e   : > { %10748 = vmatprep.mubr.msk.f32.mxu1 %vm5007_vm4, %v14445_v14  ;;  %v14465_v14 = vsel %vm1508_vm3, %v5652_v43, %v5654_v29  ;;  %v5664_v43 = vrot.slane %v14194_v28, 2  ;;  %v4875_v28 = vld [vmem:[%s15235_s4 + $0x28] sm:$0xff] }
 0x480   : > { %v14489_v29 = vsel %vm1508_vm3, %v5662_v59, %v5664_v43  ;;  %v15909_v59 = vld [vmem:[#allocation43_spill] sm:$0xff]  ;;  %v15910_v43 = vld [vmem:[#allocation45_spill] sm:$0xff] }
 0x481   : > { %10749 = vmatmul.mubr.msk.f32.gmra.mrb[82].mxu1 %vm5007_vm4, %v14452_v1 }
 0x482   : > { %10751 = vmatprep.mubr.msk.f32.mxu1 %vm5007_vm4, %v14458_v5  ;;  %v14478_v5 = vsel %vm1508_vm3, %v5657_v35, %v5659_v62 }
 0x485   : > { %10752 = vmatmul.mubr.msk.f32.gmra.mrb[84].mxu1 %vm5007_vm4, %v14465_v14 }
 0x486   : > { %10754 = vmatprep.mubr.msk.f32.mxu1 %vm5007_vm4, %v14471_v32 }
 0x489   : > { %10755 = vmatmul.mubr.msk.f32.gmra.mrb[86].mxu1 %vm5007_vm4, %v14478_v5 }
 0x48a   : > { %10757 = vmatprep.mubr.msk.f32.mxu1 %vm5007_vm4, %v14484_v19 }
 0x48d   : > { %10758 = vmatmul.mubr.msk.f32.gmra.mrb[88].mxu1 %vm5007_vm4, %v14489_v29 }
 0x48e   : > { %10762 = vmatprep.mubr.msk.f32.mxu1 %vm5007_vm4, %v13783_v39  ;;  %v11788_v39 = vld [vmem:[%s15234_s3] ss:$0 sm:$0xff] }
 0x48f   : > { %v4615_v53 = vadd.f32 %v11788_v39, %v14184_v2 }
 0x491   : > { %10763 = vmatmul.mubr.msk.f32.vlgmr.msra.gmra.mrb[58].mxu1 %vm5007_vm4, %v13792_v56  ;;  %v4614_v56 = vadd.f32 %v11788_v39, %v14189_v47  ;;  %v4723_v35 = vmul.f32 0.01, %v4615_v53  ;;  %vm4669_vm8 = vcmp.ge.f32.partialorder %v4615_v53, 0.0 }
 0x492   : > { %10811 = vmatpush3.msra.mxu1 %v14296_v44  ;;  %10765 = vmatprep.mubr.msk.f32.mxu1 %vm5007_vm4, %v13815_v10 }
 0x493   : > { %10860 = vmatprep.subr.mxu1 %v4875_v28  ;;  %v4722_v44 = vmul.f32 0.01, %v4614_v56  ;;  %vm4668_vm5 = vcmp.ge.f32.partialorder %v4614_v56, 0.0  ;;  %v14568_v2 = vsel %vm4669_vm8, %v4615_v53, %v4723_v35  ;;  %v15914_v53 = vld [vmem:[#allocation71_spill] sm:$0xff] }
 0x494   : > { %v15916_v35 = vld [vmem:[#allocation75_spill] sm:$0xff] }
 0x495   : > { %10766 = vmatmul.mubr.msk.f32.gmra.mrb[60].mxu1 %vm5007_vm4, %v13800_v49  ;;  %v4776_v47 = vsel %vm4668_vm5, %v4614_v56, %v4722_v44  ;;  %v15912_v56 = vld [vmem:[#allocation49_spill] sm:$0xff]  ;;  %v15913_v44 = vld [vmem:[#allocation51_spill] sm:$0xff] }
 0x496   : > { %10768 = vmatprep.mubr.msk.f32.mxu1 %vm5007_vm4, %v13825_v24  ;;  %v14564_v62 = vsel %vm4786_vm6, %v4776_v47, 0.0  ;;  %v15915_v47 = vld [vmem:[#allocation73_spill] sm:$0xff] }
 0x499   : > { %10769 = vmatmul.mubr.msk.f32.gmra.mrb[62].mxu1 %vm5007_vm4, %v13846_v45 }
 0x49a   : > { %10771 = vmatprep.mubr.msk.f32.mxu1 %vm5007_vm4, %v13873_v21 }
 0x49d   : > { %10772 = vmatmul.mubr.msk.f32.gmra.mrb[64].mxu1 %vm5007_vm4, %v13858_v52 }
 0x49e   : > { %10774 = vmatprep.mubr.msk.f32.mxu1 %vm5007_vm4, %v13883_v36 }
 0x4a1   : > { %10775 = vmatmul.mubr.msk.f32.gmra.mrb[66].mxu1 %vm5007_vm4, %v13904_v30 }
 0x4a2   : > { %10777 = vmatprep.mubr.msk.f32.mxu1 %vm5007_vm4, %v13931_v7 }
 0x4a5   : > { %10778 = vmatmul.mubr.msk.f32.gmra.mrb[68].mxu1 %vm5007_vm4, %v13916_v23 }
 0x4a6   : > { %10780 = vmatprep.mubr.msk.f32.mxu1 %vm5007_vm4, %v13941_v11 }
 0x4a9   : > { %10781 = vmatmul.mubr.msk.f32.gmra.mrb[70].mxu1 %vm5007_vm4, %v13962_v0 }
 0x4aa   : > { %10783 = vmatprep.mubr.msk.f32.mxu1 %vm5007_vm4, %v13989_v17 }
 0x4ad   : > { %10784 = vmatmul.mubr.msk.f32.gmra.mrb[72].mxu1 %vm5007_vm4, %v13974_v6 }
 0x4ae   : > { %10786 = vmatprep.mubr.msk.f32.mxu1 %vm5007_vm4, %v13999_v8 }
 0x4b1   : > { %10787 = vmatmul.mubr.msk.f32.gmra.mrb[74].mxu1 %vm5007_vm4, %v14020_v34 }
 0x4b2   : > { %10789 = vmatprep.mubr.msk.f32.mxu1 %vm5007_vm4, %v14047_v31 }
 0x4b5   : > { %10790 = vmatmul.mubr.msk.f32.gmra.mrb[76].mxu1 %vm5007_vm4, %v14032_v54 }
 0x4b6   : > { %10792 = vmatprep.mubr.msk.f32.mxu1 %vm5007_vm4, %v14057_v13 }
 0x4b9   : > { %10793 = vmatmul.mubr.msk.f32.gmra.mrb[78].mxu1 %vm5007_vm4, %v14078_v15 }
 0x4ba   : > { %10795 = vmatprep.mubr.msk.f32.mxu1 %vm5007_vm4, %v14105_v26 }
 0x4bd   : > { %10796 = vmatmul.mubr.msk.f32.gmra.mrb[80].mxu1 %vm5007_vm4, %v14090_v51 }
 0x4be   : > { %10798 = vmatprep.mubr.msk.f32.mxu1 %vm5007_vm4, %v14115_v57 }
 0x4c1   : > { %10799 = vmatmul.mubr.msk.f32.gmra.mrb[82].mxu1 %vm5007_vm4, %v14136_v22 }
 0x4c2   : > { %10801 = vmatprep.mubr.msk.f32.mxu1 %vm5007_vm4, %v14163_v18 }
 0x4c5   : > { %10802 = vmatmul.mubr.msk.f32.gmra.mrb[84].mxu1 %vm5007_vm4, %v14148_v61 }
 0x4c6   : > { %10804 = vmatprep.mubr.msk.f32.mxu1 %vm5007_vm4, %v14173_v38 }
 0x4c9   : > { %10805 = vmatmul.mubr.msk.f32.gmra.mrb[86].mxu1 %vm5007_vm4, %v14196_v40 }
 0x4ca   : > { %10807 = vmatprep.mubr.msk.f32.mxu1 %vm5007_vm4, %v14564_v62 }
 0x4cd   : > { %10808 = vmatmul.mubr.msk.f32.gmra.mrb[88].mxu1 %vm5007_vm4, %v14568_v2 }
 0x4ce   : > { %10812 = vmatprep.mubr.msk.f32.mxu1 %vm5007_vm4, %v15909_v59  ;;  %v15918_v59 = vld [vmem:[#allocation83_spill] sm:$0xff] }
 0x4d1   : > { %10813 = vmatmul.mubr.msk.f32.vlgmr.msra.gmra.mrb[58].mxu1 %vm5007_vm4, %v15910_v43  ;;  %v15919_v43 = vld [vmem:[#allocation95_spill] sm:$0xff] }
 0x4d2   : > { %10861 = vmatpush3.msra.mxu1 %v4875_v28  ;;  %10815 = vmatprep.mubr.msk.f32.mxu1 %vm5007_vm4, %v15911_v33  ;;  %v15917_v28 = vld [vmem:[#allocation79_spill] sm:$0xff]  ;;  %v15933_v33 = vld [vmem:[#allocation60_spill] sm:$0xff] }
 0x4d3   : > { %10910 = vmatprep.subr.mxu1 %v4876_v27 }
 0x4d5   : > { %10816 = vmatmul.mubr.msk.f32.gmra.mrb[60].mxu1 %vm5007_vm4, %v15912_v56  ;;  %v15920_v56 = vld [vmem:[#allocation98_spill] sm:$0xff] }
 0x4d6   : > { %10818 = vmatprep.mubr.msk.f32.mxu1 %vm5007_vm4, %v15913_v44  ;;  %v15921_v44 = vld [vmem:[#allocation99_spill] sm:$0xff] }
 0x4d9   : > { %10819 = vmatmul.mubr.msk.f32.gmra.mrb[62].mxu1 %vm5007_vm4, %v15914_v53  ;;  %v15922_v53 = vld [vmem:[#allocation38_spill] sm:$0xff] }
 0x4da   : > { %10821 = vmatprep.mubr.msk.f32.mxu1 %vm5007_vm4, %v15915_v47  ;;  %v15923_v47 = vld [vmem:[#allocation40_spill] sm:$0xff] }
 0x4dd   : > { %10822 = vmatmul.mubr.msk.f32.gmra.mrb[64].mxu1 %vm5007_vm4, %v15916_v35  ;;  %v15924_v35 = vld [vmem:[#allocation42_spill] sm:$0xff] }
 0x4de   : > { %10824 = vmatprep.mubr.msk.f32.mxu1 %vm5007_vm4, %v15917_v28  ;;  %v15925_v28 = vld [vmem:[#allocation44_spill] sm:$0xff] }
 0x4e1   : > { %10825 = vmatmul.mubr.msk.f32.gmra.mrb[66].mxu1 %vm5007_vm4, %v15918_v59  ;;  %v15926_v59 = vld [vmem:[#allocation46_spill] sm:$0xff] }
 0x4e2   : > { %10827 = vmatprep.mubr.msk.f32.mxu1 %vm5007_vm4, %v15919_v43  ;;  %v15927_v43 = vld [vmem:[#allocation48_spill] sm:$0xff] }
 0x4e5   : > { %10828 = vmatmul.mubr.msk.f32.gmra.mrb[68].mxu1 %vm5007_vm4, %v15920_v56  ;;  %v15928_v56 = vld [vmem:[#allocation50_spill] sm:$0xff] }
 0x4e6   : > { %10830 = vmatprep.mubr.msk.f32.mxu1 %vm5007_vm4, %v15921_v44  ;;  %v15929_v44 = vld [vmem:[#allocation52_spill] sm:$0xff] }
 0x4e9   : > { %10831 = vmatmul.mubr.msk.f32.gmra.mrb[70].mxu1 %vm5007_vm4, %v15922_v53  ;;  %v15930_v53 = vld [vmem:[#allocation54_spill] sm:$0xff] }
 0x4ea   : > { %10833 = vmatprep.mubr.msk.f32.mxu1 %vm5007_vm4, %v15923_v47  ;;  %v15931_v47 = vld [vmem:[#allocation56_spill] sm:$0xff] }
 0x4ed   : > { %10834 = vmatmul.mubr.msk.f32.gmra.mrb[72].mxu1 %vm5007_vm4, %v15924_v35  ;;  %v4616_v35 = vadd.f32 %v11788_v39, %v14207_v37  ;;  %v6251_v39 = vrot.slane %v14564_v62, 1 }
 0x4ee   : > { %10836 = vmatprep.mubr.msk.f32.mxu1 %vm5007_vm4, %v15925_v28  ;;  %v15932_v28 = vld [vmem:[#allocation58_spill] sm:$0xff] }
 0x4ef   : > { %vm4670_vm6 = vcmp.ge.f32.partialorder %v4616_v35, 0.0 }
 0x4f1   : > { %10837 = vmatmul.mubr.msk.f32.gmra.mrb[74].mxu1 %vm5007_vm4, %v15926_v59  ;;  %v4724_v59 = vmul.f32 0.01, %v4616_v35 }
 0x4f2   : > { %10839 = vmatprep.mubr.msk.f32.mxu1 %vm5007_vm4, %v15927_v43 }
 0x4f5   : > { %10840 = vmatmul.mubr.msk.f32.gmra.mrb[76].mxu1 %vm5007_vm4, %v15928_v56  ;;  %v15934_v56 = vld [vmem:[#allocation62_spill] sm:$0xff] }
 0x4f6   : > { %10842 = vmatprep.mubr.msk.f32.mxu1 %vm5007_vm4, %v15929_v44  ;;  %v4778_v44 = vsel %vm4670_vm6, %v4616_v35, %v4724_v59  ;;  %v4877_v59 = vld [vmem:[%s15235_s4 + $0x38] sm:$0xff] }
 0x4f7   : > { %v4866_v37 = vsel %vm4797_vm7, %v4778_v44, 0.0  ;;  %v15935_v44 = vld [vmem:[#allocation66_spill] sm:$0xff] }
 0x4f9   : > { %10843 = vmatmul.mubr.msk.f32.gmra.mrb[78].mxu1 %vm5007_vm4, %v15930_v53 }
 0x4fa   : > { %10845 = vmatprep.mubr.msk.f32.mxu1 %vm5007_vm4, %v15931_v47 }
 0x4fd   : > { %10846 = vmatmul.mubr.msk.f32.gmra.mrb[80].mxu1 %vm5007_vm4, %v15932_v28  ;;  %v6254_v28 = vrot.slane %v4866_v37, 1 }
 0x4fe   : > { %10848 = vmatprep.mubr.msk.f32.mxu1 %vm5007_vm4, %v15933_v33  ;;  %v6252_v33 = vrot.slane %v14568_v2, 1 }
 0x500   : > { %v14641_v35 = vsel %vm487_vm2, %v6251_v39, %v6252_v33  ;;  %v14646_v58 = vsel %vm487_vm2, %v6252_v33, %v6254_v28  ;;  %v15936_v39 = vld [vmem:[#allocation68_spill] sm:$0xff]  ;;  %v15937_v33 = vld [vmem:[#allocation70_spill] sm:$0xff] }
 0x501   : > { %10849 = vmatmul.mubr.msk.f32.gmra.mrb[82].mxu1 %vm5007_vm4, %v15934_v56  ;;  %v15938_v28 = vld [vmem:[#allocation72_spill] sm:$0xff] }
 0x502   : > { %10851 = vmatprep.mubr.msk.f32.mxu1 %vm5007_vm4, %v14177_v41 }
 0x505   : > { %10852 = vmatmul.mubr.msk.f32.gmra.mrb[84].mxu1 %vm5007_vm4, %v14199_v9 }
 0x506   : > { %10854 = vmatprep.mubr.msk.f32.mxu1 %vm5007_vm4, %v14210_v20 }
 0x509   : > { %10855 = vmatmul.mubr.msk.f32.gmra.mrb[86].mxu1 %vm5007_vm4, %v14213_v42 }
 0x50a   : > { %10857 = vmatprep.mubr.msk.f32.mxu1 %vm5007_vm4, %v14641_v35 }
 0x50d   : > { %10858 = vmatmul.mubr.msk.f32.gmra.mrb[88].mxu1 %vm5007_vm4, %v14646_v58 }
 0x50e   : > { %10862 = vmatprep.mubr.msk.f32.mxu1 %vm5007_vm4, %v15935_v44  ;;  %v15941_v44 = vld [vmem:[#allocation78_spill] sm:$0xff] }
 0x511   : > { %10863 = vmatmul.mubr.msk.f32.vlgmr.msra.gmra.mrb[58].mxu1 %vm5007_vm4, %v14309_v50  ;;  %v15939_v50 = vld [vmem:[#allocation74_spill] sm:$0xff] }
 0x512   : > { %10911 = vmatpush3.msra.mxu1 %v4876_v27  ;;  %10865 = vmatprep.mubr.msk.f32.mxu1 %vm5007_vm4, %v15936_v39  ;;  %v15940_v27 = vld [vmem:[#allocation76_spill] sm:$0xff] }
 0x513   : > { %10960 = vmatprep.subr.mxu1 %v4877_v59 }
 0x515   : > { %10866 = vmatmul.mubr.msk.f32.gmra.mrb[60].mxu1 %vm5007_vm4, %v14322_v46 }
 0x516   : > { %10868 = vmatprep.mubr.msk.f32.mxu1 %vm5007_vm4, %v15937_v33 }
 0x519   : > { %10869 = vmatmul.mubr.msk.f32.gmra.mrb[62].mxu1 %vm5007_vm4, %v14335_v63 }
 0x51a   : > { %10871 = vmatprep.mubr.msk.f32.mxu1 %vm5007_vm4, %v15938_v28  ;;  %v15942_v28 = vld [vmem:[#allocation80_spill] sm:$0xff] }
 0x51d   : > { %10872 = vmatmul.mubr.msk.f32.gmra.mrb[64].mxu1 %vm5007_vm4, %v14348_v60 }
 0x51e   : > { %10874 = vmatprep.mubr.msk.f32.mxu1 %vm5007_vm4, %v15939_v50  ;;  %v15943_v50 = vld [vmem:[#allocation82_spill] sm:$0xff] }
 0x521   : > { %10875 = vmatmul.mubr.msk.f32.gmra.mrb[66].mxu1 %vm5007_vm4, %v14361_v48 }
 0x522   : > { %10877 = vmatprep.mubr.msk.f32.mxu1 %vm5007_vm4, %v15940_v27  ;;  %v15944_v27 = vld [vmem:[#allocation84_spill] sm:$0xff] }
 0x525   : > { %10878 = vmatmul.mubr.msk.f32.gmra.mrb[68].mxu1 %vm5007_vm4, %v14374_v25 }
 0x526   : > { %10880 = vmatprep.mubr.msk.f32.mxu1 %vm5007_vm4, %v15941_v44  ;;  %v15945_v44 = vld [vmem:[#allocation86_spill] sm:$0xff] }
 0x529   : > { %10881 = vmatmul.mubr.msk.f32.gmra.mrb[70].mxu1 %vm5007_vm4, %v14387_v3 }
 0x52a   : > { %10883 = vmatprep.mubr.msk.f32.mxu1 %vm5007_vm4, %v15942_v28  ;;  %v15946_v28 = vld [vmem:[#allocation88_spill] sm:$0xff] }
 0x52d   : > { %10884 = vmatmul.mubr.msk.f32.gmra.mrb[72].mxu1 %vm5007_vm4, %v14400_v12 }
 0x52e   : > { %10886 = vmatprep.mubr.msk.f32.mxu1 %vm5007_vm4, %v15943_v50  ;;  %v15947_v50 = vld [vmem:[#allocation36_spill] sm:$0xff] }
 0x531   : > { %10887 = vmatmul.mubr.msk.f32.gmra.mrb[74].mxu1 %vm5007_vm4, %v14413_v55 }
 0x532   : > { %10889 = vmatprep.mubr.msk.f32.mxu1 %vm5007_vm4, %v15944_v27 }
 0x535   : > { %10890 = vmatmul.mubr.msk.f32.gmra.mrb[76].mxu1 %vm5007_vm4, %v14426_v16 }
 0x536   : > { %10892 = vmatprep.mubr.msk.f32.mxu1 %vm5007_vm4, %v15945_v44  ;;  %v6517_v44 = vrot.slane %v14564_v62, 2 }
 0x539   : > { %10893 = vmatmul.mubr.msk.f32.gmra.mrb[78].mxu1 %vm5007_vm4, %v14439_v4 }
 0x53a   : > { %10895 = vmatprep.mubr.msk.f32.mxu1 %vm5007_vm4, %v15946_v28  ;;  %v6518_v28 = vrot.slane %v14568_v2, 2 }
 0x53d   : > { %10896 = vmatmul.mubr.msk.f32.gmra.mrb[80].mxu1 %vm5007_vm4, %v14452_v1  ;;  %v6520_v1 = vrot.slane %v4866_v37, 2  ;;  %v4878_v37 = vld [vmem:[%s15235_s4 + $0x40] sm:$0xff] }
 0x53e   : > { %10898 = vmatprep.mubr.msk.f32.mxu1 %vm5007_vm4, %v15947_v50  ;;  %v14716_v50 = vsel %vm1508_vm3, %v6517_v44, %v6518_v28 }
 0x541   : > { %10899 = vmatmul.mubr.msk.f32.gmra.mrb[82].mxu1 %vm5007_vm4, %v14465_v14 }
 0x542   : > { %10901 = vmatprep.mubr.msk.f32.mxu1 %vm5007_vm4, %v14471_v32  ;;  %v14721_v32 = vsel %vm1508_vm3, %v6518_v28, %v6520_v1  ;;  %v15973_v1 = vld [vmem:[#allocation74_spill] sm:$0xff] }
 0x545   : > { %10902 = vmatmul.mubr.msk.f32.gmra.mrb[84].mxu1 %vm5007_vm4, %v14478_v5 }
 0x546   : > { %10904 = vmatprep.mubr.msk.f32.mxu1 %vm5007_vm4, %v14484_v19 }
 0x549   : > { %10905 = vmatmul.mubr.msk.f32.gmra.mrb[86].mxu1 %vm5007_vm4, %v14489_v29 }
 0x54a   : > { %10907 = vmatprep.mubr.msk.f32.mxu1 %vm5007_vm4, %v14716_v50 }
 0x54d   : > { %10908 = vmatmul.mubr.msk.f32.gmra.mrb[88].mxu1 %vm5007_vm4, %v14721_v32 }
 0x54e   : > { %10912 = vmatprep.mubr.msk.f32.mxu1 %vm5007_vm4, %v13815_v10  ;;  %v7746_v10 = vld [vmem:[%s15237_s6] sm:$0xf] }
 0x551   : > { %10913 = vmatmul.mubr.msk.f32.vlgmr.msra.gmra.mrb[58].mxu1 %vm5007_vm4, %v13800_v49  ;;  %v15949_v49 = vld [vmem:[#allocation47_spill] sm:$0xff] }
 0x552   : > { %10961 = vmatpush3.msra.mxu1 %v4877_v59  ;;  %10915 = vmatprep.mubr.msk.f32.mxu1 %vm5007_vm4, %v13825_v24  ;;  %v15950_v24 = vld [vmem:[#allocation49_spill] sm:$0xff] }
 0x553   : > { %11010 = vmatprep.subr.mxu1 %v4878_v37 }
 0x555   : > { %10916 = vmatmul.mubr.msk.f32.gmra.mrb[60].mxu1 %vm5007_vm4, %v13846_v45  ;;  %v15951_v45 = vld [vmem:[#allocation51_spill] sm:$0xff] }
 0x556   : > { %10918 = vmatprep.mubr.msk.f32.mxu1 %vm5007_vm4, %v13873_v21  ;;  %v15954_v21 = vld [vmem:[#allocation75_spill] sm:$0xff] }
 0x559   : > { %10919 = vmatmul.mubr.msk.f32.gmra.mrb[62].mxu1 %vm5007_vm4, %v13858_v52  ;;  %v15953_v52 = vld [vmem:[#allocation73_spill] sm:$0xff] }
 0x55a   : > { %10921 = vmatprep.mubr.msk.f32.mxu1 %vm5007_vm4, %v13883_v36  ;;  %v15955_v36 = vld [vmem:[#allocation79_spill] sm:$0xff] }
 0x55d   : > { %10922 = vmatmul.mubr.msk.f32.gmra.mrb[64].mxu1 %vm5007_vm4, %v13904_v30  ;;  %v15956_v30 = vld [vmem:[#allocation83_spill] sm:$0xff] }
 0x55e   : > { %10924 = vmatprep.mubr.msk.f32.mxu1 %vm5007_vm4, %v13931_v7  ;;  %v15959_v7 = vld [vmem:[#allocation99_spill] sm:$0xff] }
 0x561   : > { %10925 = vmatmul.mubr.msk.f32.gmra.mrb[66].mxu1 %vm5007_vm4, %v13916_v23  ;;  %v15957_v23 = vld [vmem:[#allocation95_spill] sm:$0xff] }
 0x562   : > { %10927 = vmatprep.mubr.msk.f32.mxu1 %vm5007_vm4, %v13941_v11  ;;  %v15960_v11 = vld [vmem:[#allocation38_spill] sm:$0xff] }
 0x565   : > { %10928 = vmatmul.mubr.msk.f32.gmra.mrb[68].mxu1 %vm5007_vm4, %v13962_v0  ;;  %v15961_v0 = vld [vmem:[#allocation40_spill] sm:$0xff] }
 0x566   : > { %10930 = vmatprep.mubr.msk.f32.mxu1 %vm5007_vm4, %v13989_v17  ;;  %v15963_v17 = vld [vmem:[#allocation44_spill] sm:$0xff] }
 0x569   : > { %10931 = vmatmul.mubr.msk.f32.gmra.mrb[70].mxu1 %vm5007_vm4, %v13974_v6  ;;  %v15962_v6 = vld [vmem:[#allocation42_spill] sm:$0xff] }
 0x56a   : > { %10933 = vmatprep.mubr.msk.f32.mxu1 %vm5007_vm4, %v13999_v8  ;;  %v15964_v8 = vld [vmem:[#allocation46_spill] sm:$0xff] }
 0x56d   : > { %10934 = vmatmul.mubr.msk.f32.gmra.mrb[72].mxu1 %vm5007_vm4, %v14020_v34  ;;  %v15965_v34 = vld [vmem:[#allocation50_spill] sm:$0xff] }
 0x56e   : > { %10936 = vmatprep.mubr.msk.f32.mxu1 %vm5007_vm4, %v14047_v31  ;;  %v15966_v31 = vld [vmem:[#allocation52_spill] sm:$0xff] }
 0x571   : > { %10937 = vmatmul.mubr.msk.f32.gmra.mrb[74].mxu1 %vm5007_vm4, %v14032_v54  ;;  %v15948_v54 = vmov 0.0  }
 0x572   : > { %10939 = vmatprep.mubr.msk.f32.mxu1 %vm5007_vm4, %v14057_v13  ;;  %v15967_v13 = vld [vmem:[#allocation58_spill] sm:$0xff] }
 0x575   : > { %10940 = vmatmul.mubr.msk.f32.gmra.mrb[76].mxu1 %vm5007_vm4, %v14078_v15  ;;  %v15968_v15 = vld [vmem:[#allocation60_spill] sm:$0xff] }
 0x576   : > { %10942 = vmatprep.mubr.msk.f32.mxu1 %vm5007_vm4, %v14105_v26  ;;  %v11789_v26 = vld [vmem:[%s11874_s16 + $0x270] sm:$0xff] }
 0x579   : > { %10943 = vmatmul.mubr.msk.f32.gmra.mrb[78].mxu1 %vm5007_vm4, %v14090_v51  ;;  %v15958_v51 = vld [vmem:[#allocation98_spill] sm:$0xff] }
 0x57a   : > { %10945 = vmatprep.mubr.msk.f32.mxu1 %vm5007_vm4, %v14115_v57  ;;  %v4157_v57 = vrot.slane %v11789_v26, 2 }
 0x57d   : > { %10946 = vmatmul.mubr.msk.f32.gmra.mrb[80].mxu1 %vm5007_vm4, %v14136_v22  ;;  %v15969_v22 = vld [vmem:[#allocation41_spill] sm:$0xff] }
 0x57e   : > { %10948 = vmatprep.mubr.msk.f32.mxu1 %vm5007_vm4, %v14163_v18 }
 0x581   : > { %10949 = vmatmul.mubr.msk.f32.gmra.mrb[82].mxu1 %vm5007_vm4, %v14148_v61  ;;  %v15952_v61 = vld [vmem:[#allocation71_spill] sm:$0xff] }
 0x582   : > { %10951 = vmatprep.mubr.msk.f32.mxu1 %vm5007_vm4, %v14173_v38 }
 0x585   : > { %10952 = vmatmul.mubr.msk.f32.gmra.mrb[84].mxu1 %vm5007_vm4, %v14196_v40  ;;  %v11790_v40 = vld [vmem:[%s11874_s16 + $0x278] sm:$0x3]  ;;  %s9036_s16 = sshll.u32 %s15985_s28, 8 }
 0x586   : > { %10954 = vmatprep.mubr.msk.f32.mxu1 %vm5007_vm4, %v14564_v62  ;;  %v15975_v62 = vld [vmem:[#allocation78_spill] sm:$0xff]  ;;  %s14931_s17 = scalar_lea.vmem %s15232_s1, %s9036_s16  ;;  %s15073_s24 = scalar_lea.vmem %s15239_s8, %s9036_s16 }
 0x587   : > { %v7727_v59 = vld [vmem:[%s14931_s17 + $0x68] sm:$0xff]  ;;  %v7730_v28 = vld [vmem:[%s14931_s17 + $0x80] sm:$0xff]  ;;  %v7733_v44 = vld [vmem:[%s14931_s17 + $0x98] sm:$0xff] }
 0x589   : > { %10955 = vmatmul.mubr.msk.f32.gmra.mrb[86].mxu1 %vm5007_vm4, %v14568_v2  ;;  %v7720_v2 = vld [vmem:[%s14931_s17 + $0x30] sm:$0xff] }
 0x58a   : > { %10957 = vmatprep.mubr.f32.mxu1 %v15948_v54 }
 0x58d   : > { %10958 = vmatmul.mubr.f32.gmra.mrb[88].mxu1 %v15948_v54  ;;  %v7735_v54 = vld [vmem:[%s14931_s17 + $0xa8] sm:$0xff] }
 0x58e   : > { %10962 = vmatprep.mubr.msk.f32.mxu1 %vm5007_vm4, %v15949_v49  ;;  %v7736_v49 = vld [vmem:[%s14931_s17 + $0xb0] sm:$0xff] }
 0x591   : > { %10963 = vmatmul.mubr.msk.f32.vlgmr.msra.gmra.mrb[58].mxu1 %vm5007_vm4, %v15950_v24  ;;  %v7738_v24 = vld [vmem:[%s14931_s17 + $0xc0] sm:$0xff] }
 0x592   : > { %11011 = vmatpush3.msra.mxu1 %v4878_v37  ;;  %10965 = vmatprep.mubr.msk.f32.mxu1 %vm5007_vm4, %v15951_v45  ;;  %v7734_v37 = vld [vmem:[%s14931_s17 + $0xa0] sm:$0xff]  ;;  %v7739_v45 = vld [vmem:[%s14931_s17 + $0xc8] sm:$0xff] }
 0x593   : > { %11060 = vmatprep.subr.msk.mxu1 %vm723_vm0, %v7746_v10 }
 0x595   : > { %10966 = vmatmul.mubr.msk.f32.gmra.mrb[60].mxu1 %vm5007_vm4, %v15952_v61  ;;  %v7740_v61 = vld [vmem:[%s14931_s17 + $0xd0] sm:$0xff] }
 0x596   : > { %10968 = vmatprep.mubr.msk.f32.mxu1 %vm5007_vm4, %v15953_v52  ;;  %v7741_v52 = vld [vmem:[%s14931_s17 + $0xd8] sm:$0xff] }
 0x599   : > { %10969 = vmatmul.mubr.msk.f32.gmra.mrb[62].mxu1 %vm5007_vm4, %v15954_v21  ;;  %v7742_v21 = vld [vmem:[%s14931_s17 + $0xe0] sm:$0xff] }
 0x59a   : > { %10971 = vmatprep.mubr.msk.f32.mxu1 %vm5007_vm4, %v15955_v36  ;;  %v7743_v36 = vld [vmem:[%s14931_s17 + $0xe8] sm:$0xff] }
 0x59d   : > { %10972 = vmatmul.mubr.msk.f32.gmra.mrb[64].mxu1 %vm5007_vm4, %v15956_v30  ;;  %v7744_v30 = vld [vmem:[%s14931_s17 + $0xf0] sm:$0xff] }
 0x59e   : > { %10974 = vmatprep.mubr.msk.f32.mxu1 %vm5007_vm4, %v15957_v23  ;;  %v7745_v23 = vld [vmem:[%s14931_s17 + $0xf8] sm:$0xff] }
 0x5a1   : > { %10975 = vmatmul.mubr.msk.f32.gmra.mrb[66].mxu1 %vm5007_vm4, %v15958_v51 }
 0x5a2   : > { %10977 = vmatprep.mubr.msk.f32.mxu1 %vm5007_vm4, %v15959_v7 }
 0x5a5   : > { %10978 = vmatmul.mubr.msk.f32.gmra.mrb[68].mxu1 %vm5007_vm4, %v15960_v11 }
 0x5a6   : > { %10980 = vmatprep.mubr.msk.f32.mxu1 %vm5007_vm4, %v15961_v0 }
 0x5a9   : > { %10981 = vmatmul.mubr.msk.f32.gmra.mrb[70].mxu1 %vm5007_vm4, %v15962_v6 }
 0x5aa   : > { %10983 = vmatprep.mubr.msk.f32.mxu1 %vm5007_vm4, %v15963_v17 }
 0x5ad   : > { %10984 = vmatmul.mubr.msk.f32.gmra.mrb[72].mxu1 %vm5007_vm4, %v15964_v8 }
 0x5ae   : > { %10986 = vmatprep.mubr.msk.f32.mxu1 %vm5007_vm4, %v15927_v43  ;;  %v7724_v43 = vld [vmem:[%s14931_s17 + $0x50] sm:$0xff] }
 0x5b1   : > { %10987 = vmatmul.mubr.msk.f32.gmra.mrb[74].mxu1 %vm5007_vm4, %v15965_v34 }
 0x5b2   : > { %10989 = vmatprep.mubr.msk.f32.mxu1 %vm5007_vm4, %v15966_v31 }
 0x5b5   : > { %10990 = vmatmul.mubr.msk.f32.gmra.mrb[76].mxu1 %vm5007_vm4, %v15930_v53  ;;  %v7722_v53 = vld [vmem:[%s14931_s17 + $0x40] sm:$0xff] }
 0x5b6   : > { %10992 = vmatprep.mubr.msk.f32.mxu1 %vm5007_vm4, %v15931_v47  ;;  %v7723_v47 = vld [vmem:[%s14931_s17 + $0x48] sm:$0xff] }
 0x5b9   : > { %10993 = vmatmul.mubr.msk.f32.gmra.mrb[78].mxu1 %vm5007_vm4, %v15967_v13 }
 0x5ba   : > { %10995 = vmatprep.mubr.msk.f32.mxu1 %vm5007_vm4, %v15968_v15 }
 0x5bd   : > { %10996 = vmatmul.mubr.msk.f32.gmra.mrb[80].mxu1 %vm5007_vm4, %v15934_v56  ;;  %v7721_v56 = vld [vmem:[%s14931_s17 + $0x38] sm:$0xff] }
 0x5be   : > { %10998 = vmatprep.mubr.msk.f32.mxu1 %vm5007_vm4, %v14177_v41  ;;  %v15970_v41 = vld [vmem:[#allocation39_spill] sm:$0xff] }
 0x5bf   : > { %v15971_v18 = vrot.slane %v15970_v41, 2 }
 0x5c1   : > { %10999 = vmatmul.mubr.msk.f32.gmra.mrb[82].mxu1 %vm5007_vm4, %v14199_v9  ;;  %v4158_v38 = vsel %vm1508_vm3, %v15971_v18, %v4157_v57  ;;  %v4159_v9 = vrot.slane %v11790_v40, 2 }
 0x5c2   : > { %11001 = vmatprep.mubr.msk.f32.mxu1 %vm5007_vm4, %v14210_v20  ;;  %10607 = vmatprep.mubr.msk.f32.mxu0 %vm614_vm1, %v4158_v38 }
 0x5c3   : > { %v4160_v20 = vsel %vm1508_vm3, %v4157_v57, %v4159_v9 }
 0x5c4   : > { %10608 = vmatmul.mubr.msk.f32.gmra.mrb[104].mxu0 %vm614_vm1, %v4160_v20 }
 0x5c5   : > { %11002 = vmatmul.mubr.msk.f32.gmra.mrb[84].mxu1 %vm5007_vm4, %v14213_v42  ;;  %v15972_v42 = vld [vmem:[#allocation72_spill] sm:$0xff] }
 0x5c6   : > { %11004 = vmatprep.mubr.msk.f32.mxu1 %vm5007_vm4, %v14641_v35  ;;  %v7725_v35 = vld [vmem:[%s14931_s17 + $0x58] sm:$0xff] }
 0x5c9   : > { %11005 = vmatmul.mubr.msk.f32.gmra.mrb[86].mxu1 %vm5007_vm4, %v14646_v58  ;;  %v7726_v58 = vld [vmem:[%s14931_s17 + $0x60] sm:$0xff] }
 0x5ca   : > { %11007 = vmatprep.mubr.msk.f32.mxu1 %vm5007_vm4, %v15969_v22 }
 0x5cd   : > { %11008 = vmatmul.mubr.msk.f32.gmra.mrb[88].mxu1 %vm5007_vm4, %v15969_v22 }
 0x5ce   : > { %11012 = vmatprep.mubr.msk.f32.mxu1 %vm5007_vm4, %v15936_v39  ;;  %v7728_v39 = vld [vmem:[%s14931_s17 + $0x70] sm:$0xff] }
 0x5d1   : > { %11013 = vmatmul.mubr.msk.f32.vlgmr.msra.gmra.mrb[58].mxu1 %vm5007_vm4, %v14322_v46  ;;  %v15974_v46 = vld [vmem:[#allocation76_spill] sm:$0xff] }
 0x5d2   : > { %11061 = vmatpush3.msk.msra.mxu1 %vm723_vm0, %v7746_v10  ;;  %11015 = vmatprep.mubr.msk.f32.mxu1 %vm5007_vm4, %v15937_v33  ;;  %v7729_v33 = vld [vmem:[%s14931_s17 + $0x78] sm:$0xff] }
 0x5d3   : > { %v7737_v10 = vld [vmem:[%s14931_s17 + $0xb8] sm:$0xff] }
 0x5d5   : > { %11016 = vmatmul.mubr.msk.f32.gmra.mrb[60].mxu1 %vm5007_vm4, %v14335_v63  ;;  %v15976_v63 = vld [vmem:[#allocation80_spill] sm:$0xff] }
 0x5d6   : > { %11018 = vmatprep.mubr.msk.f32.mxu1 %vm5007_vm4, %v15972_v42 }
 0x5d9   : > { %11019 = vmatmul.mubr.msk.f32.gmra.mrb[62].mxu1 %vm5007_vm4, %v14348_v60  ;;  %v15977_v60 = vld [vmem:[#allocation82_spill] sm:$0xff] }
 0x5da   : > { %11021 = vmatprep.mubr.msk.f32.mxu1 %vm5007_vm4, %v15973_v1 }
 0x5dd   : > { %11022 = vmatmul.mubr.msk.f32.gmra.mrb[64].mxu1 %vm5007_vm4, %v14361_v48  ;;  %v15978_v48 = vld [vmem:[#allocation86_spill] sm:$0xff] }
 0x5de   : > { %11024 = vmatprep.mubr.msk.f32.mxu1 %vm5007_vm4, %v15974_v46 }
 0x5e1   : > { %11025 = vmatmul.mubr.msk.f32.gmra.mrb[66].mxu1 %vm5007_vm4, %v14374_v25  ;;  %v15979_v25 = vld [vmem:[#allocation88_spill] sm:$0xff] }
 0x5e2   : > { %11027 = vmatprep.mubr.msk.f32.mxu1 %vm5007_vm4, %v15975_v62 }
 0x5e5   : > { %11028 = vmatmul.mubr.msk.f32.gmra.mrb[68].mxu1 %vm5007_vm4, %v14387_v3  ;;  %v15980_v3 = vld [vmem:[#allocation90_spill] sm:$0xff] }
 0x5e6   : > { %11030 = vmatprep.mubr.msk.f32.mxu1 %vm5007_vm4, %v15976_v63 }
 0x5e9   : > { %11031 = vmatmul.mubr.msk.f32.gmra.mrb[70].mxu1 %vm5007_vm4, %v14400_v12  ;;  %v15981_v12 = vld [vmem:[#allocation36_spill] sm:$0xff] }
 0x5ea   : > { %11033 = vmatprep.mubr.msk.f32.mxu1 %vm5007_vm4, %v15977_v60 }
 0x5ed   : > { %11034 = vmatmul.mubr.msk.f32.gmra.mrb[72].mxu1 %vm5007_vm4, %v14413_v55  ;;  %v15982_v55 = vld [vmem:[#allocation53_spill] sm:$0xff] }
 0x5ee   : > { %11036 = vmatprep.mubr.msk.f32.mxu1 %vm5007_vm4, %v15944_v27  ;;  %v7732_v27 = vld [vmem:[%s14931_s17 + $0x90] sm:$0xff] }
 0x5f1   : > { %11037 = vmatmul.mubr.msk.f32.gmra.mrb[74].mxu1 %vm5007_vm4, %v14426_v16  ;;  %v15983_v16 = vld [vmem:[#allocation64_spill] sm:$0xff] }
 0x5f2   : > { %11039 = vmatprep.mubr.msk.f32.mxu1 %vm5007_vm4, %v15978_v48 }
 0x5f5   : > { %11040 = vmatmul.mubr.msk.f32.gmra.mrb[76].mxu1 %vm5007_vm4, %v14439_v4  ;;  %v7714_v4 = vld [vmem:[%s14931_s17] sm:$0xff] }
 0x5f6   : > { %11042 = vmatprep.mubr.msk.f32.mxu1 %vm5007_vm4, %v15979_v25 }
 0x5f9   : > { %11043 = vmatmul.mubr.msk.f32.gmra.mrb[78].mxu1 %vm5007_vm4, %v15980_v3 }
 0x5fa   : > { %11045 = vmatprep.mubr.msk.f32.mxu1 %vm5007_vm4, %v15981_v12  ;;  %v15046_v12 = vld [vmem:[%s15236_s5] ss:$0 sm:$0xff] }
 0x5fd   : > { %11046 = vmatmul.mubr.msk.f32.gmra.mrb[80].mxu1 %vm5007_vm4, %v14465_v14  ;;  %v7715_v14 = vld [vmem:[%s14931_s17 + $0x8] sm:$0xff] }
 0x5fe   : > { %11048 = vmatprep.mubr.msk.f32.mxu1 %vm5007_vm4, %v15982_v55 }
 0x601   : > { %11049 = vmatmul.mubr.msk.f32.gmra.mrb[82].mxu1 %vm5007_vm4, %v14478_v5  ;;  %v7716_v5 = vld [vmem:[%s14931_s17 + $0x10] sm:$0xff] }
 0x602   : > { %11051 = vmatprep.mubr.msk.f32.mxu1 %vm5007_vm4, %v14484_v19  ;;  %v7718_v19 = vld [vmem:[%s14931_s17 + $0x20] sm:$0xff] }
 0x605   : > { %11052 = vmatmul.mubr.msk.f32.gmra.mrb[84].mxu1 %vm5007_vm4, %v14489_v29  ;;  %v7719_v29 = vld [vmem:[%s14931_s17 + $0x28] sm:$0xff] }
 0x606   : > { %11054 = vmatprep.mubr.msk.f32.mxu1 %vm5007_vm4, %v14716_v50  ;;  %v7731_v50 = vld [vmem:[%s14931_s17 + $0x88] sm:$0xff] }
 0x609   : > { %11055 = vmatmul.mubr.msk.f32.gmra.mrb[86].mxu1 %vm5007_vm4, %v14721_v32  ;;  %v7717_v32 = vld [vmem:[%s14931_s17 + $0x18] sm:$0xff] }
 0x60a   : > { %11057 = vmatprep.mubr.msk.f32.mxu1 %vm5007_vm4, %v15983_v16 }
 0x60d   : > { %11058 = vmatmul.mubr.msk.f32.gmra.mrb[88].mxu1 %vm5007_vm4, %v15983_v16 }
 0x60e   : > { %11062 = vmatprep.mubr.msk.f32.mxu1 %vm614_vm1, %v7714_v4 }
 0x611   : > { %11063 = vmatmul.mubr.msk.f32.vlgmr.msra.gmra.mrb[90].mxu1 %vm614_vm1, %v7715_v14 }
 0x612   : > { %11065 = vmatprep.mubr.msk.f32.mxu1 %vm614_vm1, %v7716_v5 }
 0x615   : > { %11066 = vmatmul.mubr.msk.f32.gmra.mrb[92].mxu1 %vm614_vm1, %v7717_v32 }
 0x616   : > { %11068 = vmatprep.mubr.msk.f32.mxu1 %vm614_vm1, %v7718_v19 }
 0x619   : > { %11069 = vmatmul.mubr.msk.f32.gmra.mrb[94].mxu1 %vm614_vm1, %v7719_v29 }
 0x61a   : > { %11071 = vmatprep.mubr.msk.f32.mxu1 %vm614_vm1, %v7720_v2 }
 0x61d   : > { %11072 = vmatmul.mubr.msk.f32.gmra.mrb[96].mxu1 %vm614_vm1, %v7721_v56 }
 0x61e   : > { %11074 = vmatprep.mubr.msk.f32.mxu1 %vm614_vm1, %v7722_v53  ;;  %v15065_v53 = vld [vmem:[%s15238_s7] ss:$0 sm:$0xff] }
 0x621   : > { %11075 = vmatmul.mubr.msk.f32.gmra.mrb[98].mxu1 %vm614_vm1, %v7723_v47 }
 0x622   : > { %11077 = vmatprep.mubr.msk.f32.mxu1 %vm614_vm1, %v7724_v43 }
 0x625   : > { %11078 = vmatmul.mubr.msk.f32.gmra.mrb[100].mxu1 %vm614_vm1, %v7725_v35 }
 0x626   : > { %11080 = vmatprep.mubr.msk.f32.mxu1 %vm614_vm1, %v7726_v58 }
 0x629   : > { %11081 = vmatmul.mubr.msk.f32.gmra.mrb[102].mxu1 %vm614_vm1, %v7727_v59 }
 0x62a   : > { %11083 = vmatprep.mubr.msk.f32.mxu1 %vm614_vm1, %v7728_v39 }
 0x62d   : > { %11084 = vmatmul.mubr.msk.f32.gmra.mrb[104].mxu1 %vm614_vm1, %v7729_v33 }
 0x62e   : > { %11086 = vmatprep.mubr.msk.f32.mxu1 %vm614_vm1, %v7730_v28 }
 0x631   : > { %11087 = vmatmul.mubr.msk.f32.gmra.mrb[106].mxu1 %vm614_vm1, %v7731_v50 }
 0x632   : > { %11089 = vmatprep.mubr.msk.f32.mxu1 %vm614_vm1, %v7732_v27 }
 0x635   : > { %11090 = vmatmul.mubr.msk.f32.gmra.mrb[108].mxu1 %vm614_vm1, %v7733_v44 }
 0x636   : > { %11092 = vmatprep.mubr.msk.f32.mxu1 %vm614_vm1, %v7734_v37 }
 0x639   : > { %11093 = vmatmul.mubr.msk.f32.gmra.mrb[110].mxu1 %vm614_vm1, %v7735_v54 }
 0x63a   : > { %11095 = vmatprep.mubr.msk.f32.mxu1 %vm614_vm1, %v7736_v49 }
 0x63d   : > { %11096 = vmatmul.mubr.msk.f32.gmra.mrb[112].mxu1 %vm614_vm1, %v7737_v10 }
 0x63e   : > { %11098 = vmatprep.mubr.msk.f32.mxu1 %vm614_vm1, %v7738_v24 }
 0x641   : > { %11099 = vmatmul.mubr.msk.f32.gmra.mrb[114].mxu1 %vm614_vm1, %v7739_v45 }
 0x642   : > { %11101 = vmatprep.mubr.msk.f32.mxu1 %vm614_vm1, %v7740_v61 }
 0x645   : > { %11102 = vmatmul.mubr.msk.f32.gmra.mrb[116].mxu1 %vm614_vm1, %v7741_v52 }
 0x646   : > { %11104 = vmatprep.mubr.msk.f32.mxu1 %vm614_vm1, %v7742_v21 }
 0x649   : > { %11105 = vmatmul.mubr.msk.f32.gmra.mrb[118].mxu1 %vm614_vm1, %v7743_v36 }
 0x64a   : > { %11107 = vmatprep.mubr.msk.f32.mxu1 %vm614_vm1, %v7744_v30 }
 0x64d   : > { %11108 = vmatmul.mubr.msk.f32.gmra.mrb[120].mxu1 %vm614_vm1, %v7745_v23 }
 0x697   : > { %v10609_v51 = vpop.f32.mrb[104].mxu0 }
 0x698   : > { %v4496_v11 = vpop.f32.mrb[105].mxu0 }
 0x6a4   : > { %v11014_v7 = vpop.f32.mrb[58].mxu1 }
 0x6a5   : > { %v7388_v0 = vpop.f32.mrb[59].mxu1  ;;  %v7587_v16 = vadd.f32 %v11014_v7, %v15046_v12 }
 0x6a6   : > { %v7586_v5 = vadd.f32 %v15046_v12, %v7388_v0 }
 0x6a7   : > { %v7651_v32 = vmul.f32 0.01, %v7587_v16  ;;  %vm7619_vm0 = vcmp.ge.f32.partialorder %v7587_v16, 0.0 }
 0x6a8   : > { %v11017_v6 = vpop.f32.mrb[60].mxu1  ;;  %v7650_v47 = vmul.f32 0.01, %v7586_v5  ;;  %vm7618_vm1 = vcmp.ge.f32.partialorder %v7586_v5, 0.0 }
 0x6a9   : > { %v7398_v17 = vpop.f32.mrb[61].mxu1  ;;  %v7589_v29 = vadd.f32 %v11017_v6, %v15046_v12  ;;  %v7683_v43 = vsel %vm7619_vm0, %v7587_v16, %v7651_v32 }
 0x6aa   : > { %v7588_v2 = vadd.f32 %v15046_v12, %v7398_v17  ;;  %v7682_v37 = vsel %vm7618_vm1, %v7586_v5, %v7650_v47 }
 0x6ab   : > { %vm7621_vm2 = vcmp.ge.f32.partialorder %v7589_v29, 0.0  ;;  %v7653_v58 = vmul.f32 0.01, %v7589_v29 }
 0x6ac   : > { %v11020_v8 = vpop.f32.mrb[62].mxu1  ;;  %v7652_v59 = vmul.f32 0.01, %v7588_v2  ;;  %vm7620_vm3 = vcmp.ge.f32.partialorder %v7588_v2, 0.0 }
 0x6ad   : > { %v7408_v34 = vpop.f32.mrb[63].mxu1  ;;  %v7591_v28 = vadd.f32 %v11020_v8, %v15046_v12  ;;  %v7685_v10 = vsel %vm7621_vm2, %v7589_v29, %v7653_v58 }
 0x6ae   : > { %v7590_v50 = vadd.f32 %v15046_v12, %v7408_v34  ;;  %v7684_v45 = vsel %vm7620_vm3, %v7588_v2, %v7652_v59 }
 0x6af   : > { %v7655_v52 = vmul.f32 0.01, %v7591_v28  ;;  %vm7623_vm7 = vcmp.ge.f32.partialorder %v7591_v28, 0.0 }
 0x6b0   : > { %v11023_v31 = vpop.f32.mrb[64].mxu1  ;;  %v7654_v21 = vmul.f32 0.01, %v7590_v50  ;;  %vm7622_vm9 = vcmp.ge.f32.partialorder %v7590_v50, 0.0 }
 0x6b1   : > { %v15003_v13 = vpop.f32.mrb[65].mxu1  ;;  %v7593_v36 = vadd.f32 %v11023_v31, %v15046_v12  ;;  %v7687_v34 = vsel %vm7623_vm7, %v7591_v28, %v7655_v52 }
 0x6b2   : > { %v7592_v23 = vadd.f32 %v15046_v12, %v15003_v13  ;;  %v7686_v31 = vsel %vm7622_vm9, %v7590_v50, %v7654_v21 }
 0x6b3   : > { %v7657_v8 = vmul.f32 0.01, %v7593_v36  ;;  %vm7625_vm10 = vcmp.ge.f32.partialorder %v7593_v36, 0.0 }
 0x6b4   : > { %v15005_v15 = vpop.f32.mrb[66].mxu1  ;;  %v7656_v16 = vmul.f32 0.01, %v7592_v23  ;;  %vm7624_vm11 = vcmp.ge.f32.partialorder %v7592_v23, 0.0 }
 0x6b5   : > { %v15007_v26 = vpop.f32.mrb[67].mxu1  ;;  %v7595_v7 = vadd.f32 %v15005_v15, %v15046_v12 }
 0x6b6   : > { %v7594_v15 = vadd.f32 %v15046_v12, %v15007_v26  ;;  %v7689_v26 = vsel %vm7625_vm10, %v7593_v36, %v7657_v8  ;;  %v7688_v28 = vsel %vm7624_vm11, %v7592_v23, %v7656_v16 }
 0x6b7   : > { %v7659_v32 = vmul.f32 0.01, %v7595_v7  ;;  %vm7627_vm12 = vcmp.ge.f32.partialorder %v7595_v7, 0.0 }
 0x6b8   : > { %v15009_v57 = vpop.f32.mrb[68].mxu1  ;;  %vm7626_vm13 = vcmp.ge.f32.partialorder %v7594_v15, 0.0 }
 0x6b9   : > { %v15011_v22 = vpop.f32.mrb[69].mxu1  ;;  %v7597_v47 = vadd.f32 %v15009_v57, %v15046_v12  ;;  %v7691_v50 = vsel %vm7627_vm12, %v7595_v7, %v7659_v32 }
 0x6bb   : > { %vm7629_vm14 = vcmp.ge.f32.partialorder %v7597_v47, 0.0 }
 0x6bc   : > { %v15013_v41 = vpop.f32.mrb[70].mxu1 }
 0x6bd   : > { %v15015_v18 = vpop.f32.mrb[71].mxu1 }
 0x6c0   : > { %v15017_v38 = vpop.f32.mrb[72].mxu1 }
 0x6c1   : > { %v15019_v40 = vpop.f32.mrb[73].mxu1  ;;  %v7601_v7 = vadd.f32 %v15017_v38, %v15046_v12 }
 0x6c3   : > { %vm7633_vm6 = vcmp.ge.f32.partialorder %v7601_v7, 0.0 }
 0x6c4   : > { %v15021_v9 = vpop.f32.mrb[74].mxu1 }
 0x6c5   : > { %v15023_v20 = vpop.f32.mrb[75].mxu1 }
 0x6c8   : > { %v15025_v42 = vpop.f32.mrb[76].mxu1 }
 0x6c9   : > { %v15027_v1 = vpop.f32.mrb[77].mxu1 }
 0x6cc   : > { %v15029_v46 = vpop.f32.mrb[78].mxu1 }
 0x6cd   : > { %v15031_v62 = vpop.f32.mrb[79].mxu1 }
 0x6d0   : > { %v15033_v63 = vpop.f32.mrb[80].mxu1 }
 0x6d1   : > { %v15035_v60 = vpop.f32.mrb[81].mxu1 }
 0x6d4   : > { %v15037_v48 = vpop.f32.mrb[82].mxu1 }
 0x6d5   : > { %v15039_v25 = vpop.f32.mrb[83].mxu1 }
 0x6d8   : > { %v15041_v3 = vpop.f32.mrb[84].mxu1 }
 0x6d9   : > { %v15048_v55 = vpop.f32.mrb[85].mxu1 }
 0x6dc   : > { %v15051_v4 = vpop.f32.mrb[86].mxu1 }
 0x6dd   : > { %v15053_v14 = vpop.f32.mrb[87].mxu1 }
 0x6e0   : > { %v15056_v19 = vpop.f32.mrb[88].mxu1 }
 0x6e1   : > { %v15060_v56 = vpop.f32.mrb[89].mxu1 }
 0x6e4   : > { %v11064_v35 = vpop.f32.mrb[90].mxu1 }
 0x6e5   : > { %v7925_v39 = vadd.f32 %v11064_v35, %v15065_v53  ;;  %v7919_v33 = vpop.f32.mrb[91].mxu1 }
 0x6e6   : > { %v7920_v27 = vadd.f32 %v15065_v53, %v7919_v33 }
 0x6e7   : > { %v8079_v44 = vadd.f32 %v7925_v39, %v7683_v43  ;;  %v7596_v43 = vadd.f32 %v15046_v12, %v15011_v22  ;;  %v7658_v39 = vmul.f32 0.01, %v7594_v15  ;;  %v7661_v22 = vmul.f32 0.01, %v7597_v47 }
 0x6e8   : > { %v8078_v54 = vadd.f32 %v7920_v27, %v7682_v37  ;;  %v11067_v49 = vpop.f32.mrb[92].mxu1 }
 0x6e9   : > { %8111 = vst.msk [vmem:[%s15073_s24 + $0x8] sm:$0xff] %vm5007_vm4, %v8079_v44  ;;  %v7935_v24 = vadd.f32 %v11067_v49, %v15065_v53  ;;  %v7929_v61 = vpop.f32.mrb[93].mxu1  ;;  %v7660_v44 = vmul.f32 0.01, %v7596_v43  ;;  %vm7628_vm15 = vcmp.ge.f32.partialorder %v7596_v43, 0.0  ;;  %v7599_v49 = vadd.f32 %v15013_v41, %v15046_v12 }
 0x6ea   : > { %8110 = vst.msk [vmem:[%s15073_s24] sm:$0xff] %vm5007_vm4, %v8078_v54  ;;  %v7930_v30 = vadd.f32 %v15065_v53, %v7929_v61  ;;  %v7690_v61 = vsel %vm7626_vm13, %v7594_v15, %v7658_v39  ;;  %v7693_v36 = vsel %vm7629_vm14, %v7597_v47, %v7661_v22 }
 0x6eb   : > { %v8081_v51 = vadd.f32 %v7935_v24, %v7685_v10  ;;  %v7598_v10 = vadd.f32 %v15046_v12, %v15015_v18  ;;  %vm7631_vm5 = vcmp.ge.f32.partialorder %v7599_v49, 0.0 }
 0x6ec   : > { %v8080_v11 = vadd.f32 %v7930_v30, %v7684_v45  ;;  %v11070_v0 = vpop.f32.mrb[94].mxu1  ;;  %v7692_v30 = vsel %vm7628_vm15, %v7596_v43, %v7660_v44  ;;  %v7605_v43 = vadd.f32 %v15025_v42, %v15046_v12 }
 0x6ed   : > { %8113 = vst.msk [vmem:[%s15073_s24 + $0x18] sm:$0xff] %vm5007_vm4, %v8081_v51  ;;  %v7945_v6 = vadd.f32 %v11070_v0, %v15065_v53  ;;  %v7939_v17 = vpop.f32.mrb[95].mxu1  ;;  %v7663_v51 = vmul.f32 0.01, %v7599_v49  ;;  %v7662_v18 = vmul.f32 0.01, %v7598_v10  ;;  %v7600_v0 = vadd.f32 %v15046_v12, %v15019_v40 }
 0x6ee   : > { %8112 = vst.msk [vmem:[%s15073_s24 + $0x10] sm:$0xff] %vm5007_vm4, %v8080_v11  ;;  %v7940_v13 = vadd.f32 %v15065_v53, %v7939_v17  ;;  %vm7630_vm8 = vcmp.ge.f32.partialorder %v7598_v10, 0.0  ;;  %v7603_v17 = vadd.f32 %v15021_v9, %v15046_v12  ;;  %v7602_v9 = vadd.f32 %v15046_v12, %v15023_v20 }
 0x6ef   : > { %v8083_v5 = vadd.f32 %v7945_v6, %v7687_v34  ;;  %v7695_v16 = vsel %vm7631_vm5, %v7599_v49, %v7663_v51  ;;  %v7694_v15 = vsel %vm7630_vm8, %v7598_v10, %v7662_v18  ;;  %vm7632_vm0 = vcmp.ge.f32.partialorder %v7600_v0, 0.0 }
 0x6f0   : > { %v8082_v29 = vadd.f32 %v7940_v13, %v7686_v31  ;;  %v11073_v2 = vpop.f32.mrb[96].mxu1  ;;  %v7665_v13 = vmul.f32 0.01, %v7601_v7  ;;  %vm7635_vm1 = vcmp.ge.f32.partialorder %v7603_v17, 0.0  ;;  %v7666_v39 = vmul.f32 0.01, %v7602_v9 }
 0x6f1   : > { %8115 = vst.msk [vmem:[%s15073_s24 + $0x28] sm:$0xff] %vm5007_vm4, %v8083_v5  ;;  %v7955_v35 = vadd.f32 %v11073_v2, %v15065_v53  ;;  %v7949_v58 = vpop.f32.mrb[97].mxu1  ;;  %v7664_v5 = vmul.f32 0.01, %v7600_v0  ;;  %vm7634_vm2 = vcmp.ge.f32.partialorder %v7602_v9, 0.0  ;;  %vm7637_vm3 = vcmp.ge.f32.partialorder %v7605_v43, 0.0 }
 0x6f2   : > { %8114 = vst.msk [vmem:[%s15073_s24 + $0x20] sm:$0xff] %vm5007_vm4, %v8082_v29  ;;  %v7950_v59 = vadd.f32 %v15065_v53, %v7949_v58  ;;  %v7667_v29 = vmul.f32 0.01, %v7603_v17  ;;  %v7697_v20 = vsel %vm7633_vm6, %v7601_v7, %v7665_v13  ;;  %v7608_v51 = vadd.f32 %v15046_v12, %v15035_v60 }
 0x6f3   : > { %v8085_v33 = vadd.f32 %v7955_v35, %v7689_v26  ;;  %v7604_v35 = vadd.f32 %v15046_v12, %v15027_v1  ;;  %v7669_v1 = vmul.f32 0.01, %v7605_v43 }
 0x6f4   : > { %v8084_v57 = vadd.f32 %v7950_v59, %v7688_v28  ;;  %v11076_v27 = vpop.f32.mrb[98].mxu1  ;;  %v7696_v28 = vsel %vm7632_vm0, %v7600_v0, %v7664_v5  ;;  %v7611_v0 = vadd.f32 %v15037_v48, %v15046_v12  ;;  %vm7640_vm12 = vcmp.ge.f32.partialorder %v7608_v51, 0.0 }
 0x6f5   : > { %8117 = vst.msk [vmem:[%s15073_s24 + $0x38] sm:$0xff] %vm5007_vm4, %v8085_v33  ;;  %v7965_v37 = vadd.f32 %v11076_v27, %v15065_v53  ;;  %v7959_v54 = vpop.f32.mrb[99].mxu1  ;;  %v7668_v27 = vmul.f32 0.01, %v7604_v35  ;;  %vm7636_vm7 = vcmp.ge.f32.partialorder %v7604_v35, 0.0 }
 0x6f6   : > { %8116 = vst.msk [vmem:[%s15073_s24 + $0x30] sm:$0xff] %vm5007_vm4, %v8084_v57  ;;  %v7960_v24 = vadd.f32 %v15065_v53, %v7959_v54  ;;  %v7699_v57 = vsel %vm7635_vm1, %v7603_v17, %v7667_v29  ;;  %v7606_v54 = vadd.f32 %v15046_v12, %v15031_v62  ;;  %vm7643_vm13 = vcmp.ge.f32.partialorder %v7611_v0, 0.0 }
 0x6f7   : > { %v8087_v45 = vadd.f32 %v7965_v37, %v7691_v50  ;;  %v7607_v37 = vadd.f32 %v15029_v46, %v15046_v12 }
 0x6f8   : > { %v8086_v52 = vadd.f32 %v7960_v24, %v7690_v61  ;;  %v11079_v21 = vpop.f32.mrb[100].mxu1  ;;  %v7698_v24 = vsel %vm7634_vm2, %v7602_v9, %v7666_v39  ;;  %v7670_v62 = vmul.f32 0.01, %v7606_v54  ;;  %vm7638_vm10 = vcmp.ge.f32.partialorder %v7606_v54, 0.0 }
 0x6f9   : > { %8119 = vst.msk [vmem:[%s15073_s24 + $0x48] sm:$0xff] %vm5007_vm4, %v8087_v45  ;;  %v7975_v41 = vadd.f32 %v11079_v21, %v15065_v53  ;;  %v7969_v23 = vpop.f32.mrb[101].mxu1  ;;  %v7700_v21 = vsel %vm7636_vm7, %v7604_v35, %v7668_v27  ;;  %vm7639_vm9 = vcmp.ge.f32.partialorder %v7607_v37, 0.0  ;;  %v7615_v39 = vadd.f32 %v15051_v4, %v15046_v12 }
 0x6fa   : > { %8118 = vst.msk [vmem:[%s15073_s24 + $0x40] sm:$0xff] %vm5007_vm4, %v8086_v52  ;;  %v7970_v11 = vadd.f32 %v15065_v53, %v7969_v23  ;;  %v7701_v52 = vsel %vm7637_vm3, %v7605_v43, %v7669_v1 }
 0x6fb   : > { %v8089_v6 = vadd.f32 %v7975_v41, %v7693_v36  ;;  %v7671_v41 = vmul.f32 0.01, %v7607_v37  ;;  %vm7647_vm8 = vcmp.ge.f32.partialorder %v7615_v39, 0.0 }
 0x6fc   : > { %v8088_v8 = vadd.f32 %v7970_v11, %v7692_v30  ;;  %v11082_v34 = vpop.f32.mrb[102].mxu1  ;;  %v7609_v30 = vadd.f32 %v15033_v63, %v15046_v12 }
 0x6fd   : > { %8121 = vst.msk [vmem:[%s15073_s24 + $0x58] sm:$0xff] %vm5007_vm4, %v8089_v6  ;;  %v7985_v31 = vadd.f32 %v11082_v34, %v15065_v53  ;;  %v7979_v38 = vpop.f32.mrb[103].mxu1  ;;  %v7702_v34 = vsel %vm7638_vm10, %v7606_v54, %v7670_v62 }
 0x6fe   : > { %8120 = vst.msk [vmem:[%s15073_s24 + $0x50] sm:$0xff] %vm5007_vm4, %v8088_v8  ;;  %v7980_v40 = vadd.f32 %v15065_v53, %v7979_v38  ;;  %v7673_v17 = vmul.f32 0.01, %v7609_v30  ;;  %v7703_v8 = vsel %vm7639_vm9, %v7607_v37, %v7671_v41  ;;  %vm7641_vm11 = vcmp.ge.f32.partialorder %v7609_v30, 0.0 }
 0x6ff   : > { %v8091_v32 = vadd.f32 %v7985_v31, %v7695_v16  ;;  %v7672_v31 = vmul.f32 0.01, %v7608_v51  ;;  %v7610_v38 = vadd.f32 %v15046_v12, %v15039_v25  ;;  %v7617_v37 = vadd.f32 %v15056_v19, %v15046_v12 }
 0x700   : > { %v8090_v2 = vadd.f32 %v7980_v40, %v7694_v15  ;;  %v11085_v47 = vpop.f32.mrb[104].mxu1  ;;  %v7675_v15 = vmul.f32 0.01, %v7611_v0  ;;  %v7613_v40 = vadd.f32 %v15041_v3, %v15046_v12  ;;  %v7705_v25 = vsel %vm7641_vm11, %v7609_v30, %v7673_v17 }
 0x701   : > { %8123 = vst.msk [vmem:[%s15073_s24 + $0x68] sm:$0xff] %vm5007_vm4, %v8091_v32  ;;  %v7995_v58 = vadd.f32 %v11085_v47, %v15065_v53  ;;  %v7989_v26 = vpop.f32.mrb[105].mxu1  ;;  %v7612_v32 = vadd.f32 %v15046_v12, %v15048_v55  ;;  %v7704_v43 = vsel %vm7640_vm12, %v7608_v51, %v7672_v31  ;;  %vm7642_vm14 = vcmp.ge.f32.partialorder %v7610_v38, 0.0 }
 0x702   : > { %8122 = vst.msk [vmem:[%s15073_s24 + $0x60] sm:$0xff] %vm5007_vm4, %v8090_v2  ;;  %v7990_v59 = vadd.f32 %v15065_v53, %v7989_v26  ;;  %v7674_v2 = vmul.f32 0.01, %v7610_v38  ;;  %v7707_v26 = vsel %vm7643_vm13, %v7611_v0, %v7675_v15  ;;  %vm7645_vm15 = vcmp.ge.f32.partialorder %v7613_v40, 0.0 }
 0x703   : > { %v8093_v33 = vadd.f32 %v7995_v58, %v7697_v20  ;;  %v7677_v58 = vmul.f32 0.01, %v7613_v40  ;;  %vm7644_vm5 = vcmp.ge.f32.partialorder %v7612_v32, 0.0  ;;  %vm7649_vm0 = vcmp.ge.f32.partialorder %v7617_v37, 0.0 }
 0x704   : > { %v8092_v42 = vadd.f32 %v7990_v59, %v7696_v28  ;;  %v11088_v50 = vpop.f32.mrb[106].mxu1  ;;  %v7676_v59 = vmul.f32 0.01, %v7612_v32  ;;  %v7614_v28 = vadd.f32 %v15046_v12, %v15053_v14 }
 0x705   : > { %8125 = vst.msk [vmem:[%s15073_s24 + $0x78] sm:$0xff] %vm5007_vm4, %v8093_v33  ;;  %v8005_v22 = vadd.f32 %v11088_v50, %v15065_v53  ;;  %v7999_v44 = vpop.f32.mrb[107].mxu1  ;;  %v7709_v27 = vsel %vm7645_vm15, %v7613_v40, %v7677_v58 }
 0x706   : > { %8124 = vst.msk [vmem:[%s15073_s24 + $0x70] sm:$0xff] %vm5007_vm4, %v8092_v42  ;;  %v8000_v49 = vadd.f32 %v15065_v53, %v7999_v44  ;;  %v7679_v44 = vmul.f32 0.01, %v7615_v39  ;;  %v7708_v14 = vsel %vm7644_vm5, %v7612_v32, %v7676_v59  ;;  %vm7646_vm6 = vcmp.ge.f32.partialorder %v7614_v28, 0.0 }
 0x707   : > { %v8095_v10 = vadd.f32 %v8005_v22, %v7699_v57  ;;  %v7706_v57 = vsel %vm7642_vm14, %v7610_v38, %v7674_v2 }
 0x708   : > { %v8094_v45 = vadd.f32 %v8000_v49, %v7698_v24  ;;  %v11091_v61 = vpop.f32.mrb[108].mxu1  ;;  %v7678_v49 = vmul.f32 0.01, %v7614_v28 }
 0x709   : > { %8127 = vst.msk [vmem:[%s15073_s24 + $0x88] sm:$0xff] %vm5007_vm4, %v8095_v10  ;;  %v8015_v46 = vadd.f32 %v11091_v61, %v15065_v53  ;;  %v8009_v36 = vpop.f32.mrb[109].mxu1  ;;  %v7616_v10 = vadd.f32 %v15046_v12, %v15060_v56 }
 0x70a   : > { %8126 = vst.msk [vmem:[%s15073_s24 + $0x80] sm:$0xff] %vm5007_vm4, %v8094_v45  ;;  %v8010_v23 = vadd.f32 %v15065_v53, %v8009_v36  ;;  %v7710_v41 = vsel %vm7646_vm6, %v7614_v28, %v7678_v49 }
 0x70b   : > { %v8097_v18 = vadd.f32 %v8015_v46, %v7701_v52  ;;  %v7681_v46 = vmul.f32 0.01, %v7617_v37  ;;  %v7680_v12 = vmul.f32 0.01, %v7616_v10  ;;  %vm7648_vm1 = vcmp.ge.f32.partialorder %v7616_v10, 0.0 }
 0x70c   : > { %v8096_v7 = vadd.f32 %v8010_v23, %v7700_v21  ;;  %v11094_v11 = vpop.f32.mrb[110].mxu1  ;;  %v7711_v21 = vsel %vm7647_vm8, %v7615_v39, %v7679_v44 }
 0x70d   : > { %8129 = vst.msk [vmem:[%s15073_s24 + $0x98] sm:$0xff] %vm5007_vm4, %v8097_v18  ;;  %v8025_v6 = vadd.f32 %v11094_v11, %v15065_v53  ;;  %v8019_v63 = vpop.f32.mrb[111].mxu1  ;;  %v7713_v18 = vsel %vm7649_vm0, %v7617_v37, %v7681_v46  ;;  %v7712_v0 = vsel %vm7648_vm1, %v7616_v10, %v7680_v12 }
 0x70e   : > { %8128 = vst.msk [vmem:[%s15073_s24 + $0x90] sm:$0xff] %vm5007_vm4, %v8096_v7  ;;  %v8020_v60 = vadd.f32 %v15065_v53, %v8019_v63 }
 0x70f   : > { %v8099_v48 = vadd.f32 %v8025_v6, %v7703_v8 }
 0x710   : > { %v8098_v13 = vadd.f32 %v8020_v60, %v7702_v34  ;;  %v11097_v16 = vpop.f32.mrb[112].mxu1 }
 0x711   : > { %8131 = vst.msk [vmem:[%s15073_s24 + $0xa8] sm:$0xff] %vm5007_vm4, %v8099_v48  ;;  %v8035_v5 = vadd.f32 %v11097_v16, %v15065_v53  ;;  %v8029_v9 = vpop.f32.mrb[113].mxu1 }
 0x712   : > { %8130 = vst.msk [vmem:[%s15073_s24 + $0xa0] sm:$0xff] %vm5007_vm4, %v8098_v13  ;;  %v8030_v29 = vadd.f32 %v15065_v53, %v8029_v9 }
 0x713   : > { %v8101_v47 = vadd.f32 %v8035_v5, %v7705_v25 }
 0x714   : > { %v8100_v3 = vadd.f32 %v8030_v29, %v7704_v43  ;;  %v11100_v35 = vpop.f32.mrb[114].mxu1 }
 0x715   : > { %8133 = vst.msk [vmem:[%s15073_s24 + $0xb8] sm:$0xff] %vm5007_vm4, %v8101_v47  ;;  %v8045_v20 = vadd.f32 %v11100_v35, %v15065_v53  ;;  %v8039_v55 = vpop.f32.mrb[115].mxu1 }
 0x716   : > { %8132 = vst.msk [vmem:[%s15073_s24 + $0xb0] sm:$0xff] %vm5007_vm4, %v8100_v3  ;;  %v8040_v33 = vadd.f32 %v15065_v53, %v8039_v55 }
 0x717   : > { %v8103_v42 = vadd.f32 %v8045_v20, %v7707_v26 }
 0x718   : > { %v8102_v50 = vadd.f32 %v8040_v33, %v7706_v57  ;;  %v11103_v1 = vpop.f32.mrb[116].mxu1 }
 0x719   : > { %8135 = vst.msk [vmem:[%s15073_s24 + $0xc8] sm:$0xff] %vm5007_vm4, %v8103_v42  ;;  %v8055_v22 = vadd.f32 %v11103_v1, %v15065_v53  ;;  %v8049_v4 = vpop.f32.mrb[117].mxu1 }
 0x71a   : > { %8134 = vst.msk [vmem:[%s15073_s24 + $0xc0] sm:$0xff] %vm5007_vm4, %v8102_v50  ;;  %v8050_v54 = vadd.f32 %v15065_v53, %v8049_v4 }
 0x71b   : > { %v8105_v24 = vadd.f32 %v8055_v22, %v7709_v27 }
 0x71c   : > { %v8104_v45 = vadd.f32 %v8050_v54, %v7708_v14  ;;  %v11106_v61 = vpop.f32.mrb[118].mxu1 }
 0x71d   : > { %8137 = vst.msk [vmem:[%s15073_s24 + $0xd8] sm:$0xff] %vm5007_vm4, %v8105_v24  ;;  %v8065_v52 = vadd.f32 %v11106_v61, %v15065_v53  ;;  %v8059_v19 = vpop.f32.mrb[119].mxu1 }
 0x71e   : > { %8136 = vst.msk [vmem:[%s15073_s24 + $0xd0] sm:$0xff] %vm5007_vm4, %v8104_v45  ;;  %v8060_v36 = vadd.f32 %v15065_v53, %v8059_v19 }
 0x71f   : > { %v8107_v56 = vadd.f32 %v8065_v52, %v7711_v21 }
 0x720   : > { %v8106_v62 = vadd.f32 %v8060_v36, %v7710_v41  ;;  %v11109_v30 = vpop.f32.mrb[120].mxu1 }
 0x721   : > { %8139 = vst.msk [vmem:[%s15073_s24 + $0xe8] sm:$0xff] %vm5007_vm4, %v8107_v56  ;;  %v8075_v23 = vadd.f32 %v11109_v30, %v15065_v53  ;;  %v8069_v51 = vpop.f32.mrb[121].mxu1 }
 0x722   : > { %8138 = vst.msk [vmem:[%s15073_s24 + $0xe0] sm:$0xff] %vm5007_vm4, %v8106_v62  ;;  %v8070_v7 = vadd.f32 %v15065_v53, %v8069_v51 }
 0x723   : > { %v8109_v11 = vadd.f32 %v8075_v23, %v7713_v18 }
 0x724   : > { %v8108_v6 = vadd.f32 %v8070_v7, %v7712_v0 }
 0x725   : > { %8141 = vst.msk [vmem:[%s15073_s24 + $0xf8] sm:$0xff] %vm5007_vm4, %v8109_v11 }
 0x726   : > { %8140 = vst.msk [vmem:[%s15073_s24 + $0xf0] sm:$0xff] %vm5007_vm4, %v8108_v6 }
 0x727 PF: > { %s18_s27 = sadd.s32 1, %s11797_s27  }
 0x728   : > { %p15_p4 = scmp.ge.s32.totalorder %s18_s27, 4  }
 0x72a   :  { %17 = sbr.rel (!%p15_p4) target bundleno = 1 (0x1), region = 85 }

</bundles_post_ra>
